<compile_context>
chip_gen: v6e
topology: v6e:2x2x1
jax: 0.10.0
libtpu: 0.0.40
codegen_flags: <defaults>
</compile_context>

<pallas_src>
import functools
import math

import jax
import jax.numpy as jnp
import numpy as np
from jax.experimental import pallas as pl
from jax.experimental.pallas import tpu as pltpu

# Fixed by the module: 32x32 inputs, 5x5 valid convs, 2x2/2 pools, 16*5*5 flatten.
_H = _W = 32
_IMG = _H * _W            # 1024 flat positions per image
_K = 5                    # conv kernel size
_KK = _K * _K             # 25 taps
_CIN, _C1, _C2 = 3, 6, 16
_CP = 8                   # channel dim padded to one f32 sublane tile
_NF = 128                 # lane-padded width of every FC layer / logits


# ------------------------------ kernel helpers ------------------------------

def _shifted_slab(x, offsets, n):
    """im2col slab: rows [k*_CP, (k+1)*_CP) hold x[:, j + offsets[k]].

    x is (_CP, n); reads past the end see zeros, which only land on invalid
    anchor positions that are never consumed downstream.
    """
    xp = jnp.concatenate(
        [x, jnp.zeros((_CP, max(offsets)), x.dtype)], axis=1)
    return jnp.concatenate([xp[:, s:s + n] for s in offsets], axis=0)


def _window_max(y, d1, d2, n):
    """m[j] = max(y[j], y[j+d1], y[j+d2], y[j+d1+d2])  (zeros past the end)."""
    yp = jnp.concatenate(
        [y, jnp.zeros((y.shape[0], d1 + d2), y.dtype)], axis=1)
    a = jnp.maximum(yp[:, :n + d2], yp[:, d1:n + d1 + d2])
    return jnp.maximum(a[:, :n], a[:, d2:n + d2])


# ------------------------------- fused kernel -------------------------------

def _lenet_kernel(x_ref, w1_ref, b1_ref, w2_ref, b2_ref, sel_ref,
                  wf1_ref, bf1_ref, wf2_ref, bf2_ref, wf3_ref, bf3_ref,
                  o_ref, *, bt):
    n = bt * _IMG
    x = x_ref[...]                                               # (8, n)

    # conv1 (5x5 valid) as ONE im2col matmul + bias + ReLU.
    off1 = [kh * _W + kw for kh in range(_K) for kw in range(_K)]
    y1 = jnp.dot(w1_ref[...], _shifted_slab(x, off1, n),
                 preferred_element_type=jnp.float32)             # (8, n)
    y1 = jnp.maximum(y1 + b1_ref[...], 0.0)

    # pool1: 2x2 window-max; valid only at even (h, w) anchors (rest is garbage
    # that is never read by any valid downstream anchor).
    m1 = _window_max(y1, 1, _W, n)                               # (8, n)

    # conv2 runs on the NON-decimated map with stride-2 dilated tap offsets.
    off2 = [2 * _W * kh + 2 * kw for kh in range(_K) for kw in range(_K)]
    y2 = jnp.dot(w2_ref[...], _shifted_slab(m1, off2, n),
                 preferred_element_type=jnp.float32)             # (16, n)
    y2 = jnp.maximum(y2 + b2_ref[...], 0.0)

    # pool2: 2x2 window-max on the dilated grid.
    m2 = _window_max(y2, 2, 2 * _W, n)                           # (16, n)

    # Per image: gather the 5x5 pooled map (0/1 selection matmul), flatten
    # c-major with an aligned lane concat, then fc1 -> ReLU -> fc2 -> ReLU -> fc3.
    sel = sel_ref[...]                                           # (1024, 128)
    for i in range(bt):
        m2i = m2[:, i * _IMG:(i + 1) * _IMG]                     # (16, 1024)
        p2 = jnp.dot(m2i, sel, preferred_element_type=jnp.float32)  # (16, 128)
        feat = jnp.concatenate(
            [p2[c:c + 1, :] for c in range(_C2)], axis=1)        # (1, 2048)
        h = jnp.maximum(
            jnp.dot(feat, wf1_ref[...], preferred_element_type=jnp.float32)
            + bf1_ref[...], 0.0)
        h = jnp.maximum(
            jnp.dot(h, wf2_ref[...], preferred_element_type=jnp.float32)
            + bf2_ref[...], 0.0)
        out = (jnp.dot(h, wf3_ref[...], preferred_element_type=jnp.float32)
               + bf3_ref[...])
        o_ref[pl.ds(i, 1), :] = out.astype(o_ref.dtype)


# ------------------------------ params / layout ------------------------------

def init_params(key, num_classes):
    """Deterministic init matching the PyTorch module's parameter shapes."""
    def uni(k, shape, fan_in):
        bound = 1.0 / math.sqrt(fan_in)
        return jax.random.uniform(k, shape, jnp.float32, -bound, bound)

    ks = jax.random.split(key, 10)
    return {
        "conv1_w": uni(ks[0], (6, 3, 5, 5), 3 * 5 * 5),
        "conv1_b": uni(ks[1], (6,), 3 * 5 * 5),
        "conv2_w": uni(ks[2], (16, 6, 5, 5), 6 * 5 * 5),
        "conv2_b": uni(ks[3], (16,), 6 * 5 * 5),
        "fc1_w": uni(ks[4], (120, 16 * 5 * 5), 16 * 5 * 5),
        "fc1_b": uni(ks[5], (120,), 16 * 5 * 5),
        "fc2_w": uni(ks[6], (84, 120), 120),
        "fc2_b": uni(ks[7], (84,), 120),
        "fc3_w": uni(ks[8], (num_classes, 84), 84),
        "fc3_b": uni(ks[9], (num_classes,), 84),
    }


def prepare_params(params, num_classes):
    """One-time weight re-layout / zero-padding, done OUTSIDE the jitted forward."""
    assert num_classes <= _NF

    def conv_prep(w, cout_pad):
        w = np.asarray(w, np.float32)                  # (cout, cin, 5, 5)
        cout, cin = w.shape[:2]
        wt = np.transpose(w, (0, 2, 3, 1))             # (cout, kh, kw, cin)
        wt = np.pad(wt, ((0, cout_pad - cout), (0, 0), (0, 0), (0, _CP - cin)))
        return jnp.asarray(wt.reshape(cout_pad, _KK * _CP))

    def pad_bias(b, rows):
        out = np.zeros((rows, 1), np.float32)
        out[:np.asarray(b).shape[0], 0] = np.asarray(b, np.float32)
        return jnp.asarray(out)

    # 0/1 selection matrix: column ph*5+pw picks flat position 128*ph + 4*pw
    # (the valid pool2 anchors on the dilated 32x32 grid).
    sel = np.zeros((_IMG, _NF), np.float32)
    for ph in range(5):
        for pw in range(5):
            sel[(4 * ph) * _W + 4 * pw, ph * 5 + pw] = 1.0

    # fc1 folded onto the (c*128 + ph*5 + pw) feature layout produced in-kernel
    # (torch flatten order is c*25 + ph*5 + pw).
    fc1_w = np.asarray(params["fc1_w"], np.float32)    # (120, 400)
    wf1 = np.zeros((_C2 * _NF, _NF), np.float32)
    for c in range(_C2):
        wf1[c * _NF:c * _NF + 25, :120] = fc1_w[:, c * 25:(c + 1) * 25].T
    bf1 = np.zeros((1, _NF), np.float32)
    bf1[0, :120] = np.asarray(params["fc1_b"], np.float32)

    def pad_fc(w, b):
        w = np.asarray(w, np.float32)                  # (out, in)
        o, i = w.shape
        wp = np.zeros((_NF, _NF), np.float32)
        wp[:i, :o] = w.T
        bp = np.zeros((1, _NF), np.float32)
        bp[0, :o] = np.asarray(b, np.float32)
        return jnp.asarray(wp), jnp.asarray(bp)

    wf2, bf2 = pad_fc(params["fc2_w"], params["fc2_b"])
    wf3, bf3 = pad_fc(params["fc3_w"], params["fc3_b"])

    return {
        "c1_w": conv_prep(params["conv1_w"], _CP),     # (8, 200)
        "c1_b": pad_bias(params["conv1_b"], _CP),      # (8, 1)
        "c2_w": conv_prep(params["conv2_w"], _C2),     # (16, 200)
        "c2_b": pad_bias(params["conv2_b"], _C2),      # (16, 1)
        "sel": jnp.asarray(sel),                       # (1024, 128)
        "fc1_w": jnp.asarray(wf1), "fc1_b": jnp.asarray(bf1),
        "fc2_w": wf2, "fc2_b": bf2,
        "fc3_w": wf3, "fc3_b": bf3,
    }


# --------------------------------- forward ----------------------------------

def _pick_batch_tile(b):
    # Keep >= 2 "parallel" grid steps whenever possible (v7x has 2 TensorCores),
    # and cap the tile so per-step VMEM stays small on every generation.
    for bt in (4, 2):
        if b % bt == 0 and b // bt >= 2:
            return bt
    return 1


@functools.partial(jax.jit, static_argnames=("num_classes",))
def net_forward(x_nchw, prep, *, num_classes):
    x = x_nchw.astype(jnp.float32)
    B, C, H, W = x.shape
    assert (C, H, W) == (_CIN, _H, _W), "Net requires 3x32x32 inputs"
    bt = _pick_batch_tile(B)
    T = B // bt
    n = bt * _IMG

    # (B,3,32,32) -> per-tile channel-major flat layout (T, 8, bt*1024); the
    # channel pad to 8 keeps every in-kernel concatenate sublane-tile aligned.
    xf = jnp.pad(x.reshape(B, C, _IMG), ((0, 0), (0, _CP - C), (0, 0)))
    xt = (xf.reshape(T, bt, _CP, _IMG)
            .transpose(0, 2, 1, 3)
            .reshape(T, _CP, n))

    out = pl.pallas_call(
        functools.partial(_lenet_kernel, bt=bt),
        out_shape=jax.ShapeDtypeStruct((T, bt, _NF), jnp.float32),
        grid=(T,),
        in_specs=[
            pl.BlockSpec((None, _CP, n), lambda t: (t, 0, 0)),
            pl.BlockSpec((_CP, _KK * _CP), lambda t: (0, 0)),
            pl.BlockSpec((_CP, 1), lambda t: (0, 0)),
            pl.BlockSpec((_C2, _KK * _CP), lambda t: (0, 0)),
            pl.BlockSpec((_C2, 1), lambda t: (0, 0)),
            pl.BlockSpec((_IMG, _NF), lambda t: (0, 0)),
            pl.BlockSpec((_C2 * _NF, _NF), lambda t: (0, 0)),
            pl.BlockSpec((1, _NF), lambda t: (0, 0)),
            pl.BlockSpec((_NF, _NF), lambda t: (0, 0)),
            pl.BlockSpec((1, _NF), lambda t: (0, 0)),
            pl.BlockSpec((_NF, _NF), lambda t: (0, 0)),
            pl.BlockSpec((1, _NF), lambda t: (0, 0)),
        ],
        out_specs=pl.BlockSpec((None, bt, _NF), lambda t: (t, 0, 0)),
        compiler_params=pltpu.CompilerParams(
            dimension_semantics=("parallel",),
            vmem_limit_bytes=32 * 1024 * 1024),
    )(xt, prep["c1_w"], prep["c1_b"], prep["c2_w"], prep["c2_b"], prep["sel"],
      prep["fc1_w"], prep["fc1_b"], prep["fc2_w"], prep["fc2_b"],
      prep["fc3_w"], prep["fc3_b"])

    return out.reshape(B, _NF)[:, :num_classes]


# ------------------------- pure-JAX reference forward ------------------------

@jax.jit
def net_forward_reference(x, params):
    def conv(x, w, b):
        y = jax.lax.conv_general_dilated(
            x, w, (1, 1), "VALID",
            dimension_numbers=("NCHW", "OIHW", "NCHW"))
        return jax.nn.relu(y + b[None, :, None, None])

    def pool(x):
        return jax.lax.reduce_window(x, -jnp.inf, jax.lax.max,
                                     (1, 1, 2, 2), (1, 1, 2, 2), "VALID")

    x = x.astype(jnp.float32)
    x = pool(conv(x, params["conv1_w"], params["conv1_b"]))
    x = pool(conv(x, params["conv2_w"], params["conv2_b"]))
    x = x.reshape(x.shape[0], -1)
    x = jax.nn.relu(x @ params["fc1_w"].T + params["fc1_b"])
    x = jax.nn.relu(x @ params["fc2_w"].T + params["fc2_b"])
    return x @ params["fc3_w"].T + params["fc3_b"]


# ----------------------------------- main ------------------------------------

if __name__ == "__main__":
    num_classes = 10
    key = jax.random.PRNGKey(0)
    k_param, k_input = jax.random.split(key)

    params = init_params(k_param, num_classes)
    prep = prepare_params(params, num_classes)

    # 32x32 spatial is required by the module (16*5*5 flatten after two 5x5
    # valid convs + two 2x2 pools).  Small batch for the demo.
    x = jax.random.normal(k_input, (2, 3, 32, 32), jnp.float32)

    out = jax.block_until_ready(net_forward(x, prep, num_classes=num_classes))
    assert out.shape == (2, num_classes), out.shape
    assert bool(jnp.all(jnp.isfinite(out)))

    # Correctness vs. pure-JAX reference (loose tol: MXU default precision).
    ref = jax.block_until_ready(net_forward_reference(x, params))
    max_diff = float(jnp.max(jnp.abs(out - ref)))
    assert max_diff < 1e-1, f"mismatch vs reference: max|diff|={max_diff}"

    print("KERNEL_OK")
</pallas_src>

<mosaic_0001>
module attributes {stable_mosaic.version = 11 : i64} {
  func.func @_lenet_kernel(%arg0: i32, %arg1: memref<1x8x1024xf32, #tpu.memory_space<vmem>>, %arg2: memref<8x200xf32, #tpu.memory_space<vmem>>, %arg3: memref<8x1xf32, #tpu.memory_space<vmem>>, %arg4: memref<16x200xf32, #tpu.memory_space<vmem>>, %arg5: memref<16x1xf32, #tpu.memory_space<vmem>>, %arg6: memref<1024x128xf32, #tpu.memory_space<vmem>>, %arg7: memref<2048x128xf32, #tpu.memory_space<vmem>>, %arg8: memref<1x128xf32, #tpu.memory_space<vmem>>, %arg9: memref<128x128xf32, #tpu.memory_space<vmem>>, %arg10: memref<1x128xf32, #tpu.memory_space<vmem>>, %arg11: memref<128x128xf32, #tpu.memory_space<vmem>>, %arg12: memref<1x128xf32, #tpu.memory_space<vmem>>, %arg13: memref<1x1x128xf32, #tpu.memory_space<vmem>>) attributes {dimension_semantics = [#tpu.dimension_semantics<parallel>], iteration_bounds = array<i64: 2>, scalar_prefetch = 0 : i64, scratch_operands = 0 : i64, tpu.core_type = #tpu.core_type<tc>, window_params = [{transform_indices = @transform_0, window_bounds = array<i64: 1, 8, 1024>}, {pipeline_mode = #tpu.pipeline_mode<synchronous>, transform_indices = @transform_1, window_bounds = array<i64: 8, 200>}, {pipeline_mode = #tpu.pipeline_mode<synchronous>, transform_indices = @transform_2, window_bounds = array<i64: 8, 1>}, {pipeline_mode = #tpu.pipeline_mode<synchronous>, transform_indices = @transform_3, window_bounds = array<i64: 16, 200>}, {pipeline_mode = #tpu.pipeline_mode<synchronous>, transform_indices = @transform_4, window_bounds = array<i64: 16, 1>}, {pipeline_mode = #tpu.pipeline_mode<synchronous>, transform_indices = @transform_5, window_bounds = array<i64: 1024, 128>}, {pipeline_mode = #tpu.pipeline_mode<synchronous>, transform_indices = @transform_6, window_bounds = array<i64: 2048, 128>}, {pipeline_mode = #tpu.pipeline_mode<synchronous>, transform_indices = @transform_7, window_bounds = array<i64: 1, 128>}, {pipeline_mode = #tpu.pipeline_mode<synchronous>, transform_indices = @transform_8, window_bounds = array<i64: 128, 128>}, {pipeline_mode = #tpu.pipeline_mode<synchronous>, transform_indices = @transform_9, window_bounds = array<i64: 1, 128>}, {pipeline_mode = #tpu.pipeline_mode<synchronous>, transform_indices = @transform_10, window_bounds = array<i64: 128, 128>}, {pipeline_mode = #tpu.pipeline_mode<synchronous>, transform_indices = @transform_11, window_bounds = array<i64: 1, 128>}, {transform_indices = @transform_12, window_bounds = array<i64: 1, 1, 128>}]} {
    %c0 = arith.constant 0 : index
    %c0_0 = arith.constant 0 : index
    %c0_1 = arith.constant 0 : index
    %0 = vector.load %arg1[%c0, %c0_0, %c0_1] : memref<1x8x1024xf32, #tpu.memory_space<vmem>>, vector<1x8x1024xf32>
    %1 = vector.shape_cast %0 : vector<1x8x1024xf32> to vector<8x1024xf32>
    %c0_2 = arith.constant 0 : index
    %c0_3 = arith.constant 0 : index
    %2 = vector.load %arg2[%c0_2, %c0_3] : memref<8x200xf32, #tpu.memory_space<vmem>>, vector<8x200xf32>
    %cst = arith.constant 0.000000e+00 : f32
    %3 = vector.broadcast %cst : f32 to vector<8x132xf32>
    %4 = tpu.concatenate %1, %3 in 1 : vector<8x1024xf32>, vector<8x132xf32> -> vector<8x1156xf32>
    %5 = vector.extract_strided_slice %4 {offsets = [0, 0], sizes = [8, 1024], strides = [1, 1]} : vector<8x1156xf32> to vector<8x1024xf32>
    %6 = vector.extract_strided_slice %4 {offsets = [0, 1], sizes = [8, 1024], strides = [1, 1]} : vector<8x1156xf32> to vector<8x1024xf32>
    %7 = vector.extract_strided_slice %4 {offsets = [0, 2], sizes = [8, 1024], strides = [1, 1]} : vector<8x1156xf32> to vector<8x1024xf32>
    %8 = vector.extract_strided_slice %4 {offsets = [0, 3], sizes = [8, 1024], strides = [1, 1]} : vector<8x1156xf32> to vector<8x1024xf32>
    %9 = vector.extract_strided_slice %4 {offsets = [0, 4], sizes = [8, 1024], strides = [1, 1]} : vector<8x1156xf32> to vector<8x1024xf32>
    %10 = vector.extract_strided_slice %4 {offsets = [0, 32], sizes = [8, 1024], strides = [1, 1]} : vector<8x1156xf32> to vector<8x1024xf32>
    %11 = vector.extract_strided_slice %4 {offsets = [0, 33], sizes = [8, 1024], strides = [1, 1]} : vector<8x1156xf32> to vector<8x1024xf32>
    %12 = vector.extract_strided_slice %4 {offsets = [0, 34], sizes = [8, 1024], strides = [1, 1]} : vector<8x1156xf32> to vector<8x1024xf32>
    %13 = vector.extract_strided_slice %4 {offsets = [0, 35], sizes = [8, 1024], strides = [1, 1]} : vector<8x1156xf32> to vector<8x1024xf32>
    %14 = vector.extract_strided_slice %4 {offsets = [0, 36], sizes = [8, 1024], strides = [1, 1]} : vector<8x1156xf32> to vector<8x1024xf32>
    %15 = vector.extract_strided_slice %4 {offsets = [0, 64], sizes = [8, 1024], strides = [1, 1]} : vector<8x1156xf32> to vector<8x1024xf32>
    %16 = vector.extract_strided_slice %4 {offsets = [0, 65], sizes = [8, 1024], strides = [1, 1]} : vector<8x1156xf32> to vector<8x1024xf32>
    %17 = vector.extract_strided_slice %4 {offsets = [0, 66], sizes = [8, 1024], strides = [1, 1]} : vector<8x1156xf32> to vector<8x1024xf32>
    %18 = vector.extract_strided_slice %4 {offsets = [0, 67], sizes = [8, 1024], strides = [1, 1]} : vector<8x1156xf32> to vector<8x1024xf32>
    %19 = vector.extract_strided_slice %4 {offsets = [0, 68], sizes = [8, 1024], strides = [1, 1]} : vector<8x1156xf32> to vector<8x1024xf32>
    %20 = vector.extract_strided_slice %4 {offsets = [0, 96], sizes = [8, 1024], strides = [1, 1]} : vector<8x1156xf32> to vector<8x1024xf32>
    %21 = vector.extract_strided_slice %4 {offsets = [0, 97], sizes = [8, 1024], strides = [1, 1]} : vector<8x1156xf32> to vector<8x1024xf32>
    %22 = vector.extract_strided_slice %4 {offsets = [0, 98], sizes = [8, 1024], strides = [1, 1]} : vector<8x1156xf32> to vector<8x1024xf32>
    %23 = vector.extract_strided_slice %4 {offsets = [0, 99], sizes = [8, 1024], strides = [1, 1]} : vector<8x1156xf32> to vector<8x1024xf32>
    %24 = vector.extract_strided_slice %4 {offsets = [0, 100], sizes = [8, 1024], strides = [1, 1]} : vector<8x1156xf32> to vector<8x1024xf32>
    %25 = vector.extract_strided_slice %4 {offsets = [0, 128], sizes = [8, 1024], strides = [1, 1]} : vector<8x1156xf32> to vector<8x1024xf32>
    %26 = vector.extract_strided_slice %4 {offsets = [0, 129], sizes = [8, 1024], strides = [1, 1]} : vector<8x1156xf32> to vector<8x1024xf32>
    %27 = vector.extract_strided_slice %4 {offsets = [0, 130], sizes = [8, 1024], strides = [1, 1]} : vector<8x1156xf32> to vector<8x1024xf32>
    %28 = vector.extract_strided_slice %4 {offsets = [0, 131], sizes = [8, 1024], strides = [1, 1]} : vector<8x1156xf32> to vector<8x1024xf32>
    %29 = vector.extract_strided_slice %4 {offsets = [0, 132], sizes = [8, 1024], strides = [1, 1]} : vector<8x1156xf32> to vector<8x1024xf32>
    %30 = tpu.concatenate %5, %6, %7, %8, %9, %10, %11, %12, %13, %14, %15, %16, %17, %18, %19, %20 in 0 : vector<8x1024xf32>, vector<8x1024xf32>, vector<8x1024xf32>, vector<8x1024xf32>, vector<8x1024xf32>, vector<8x1024xf32>, vector<8x1024xf32>, vector<8x1024xf32>, vector<8x1024xf32>, vector<8x1024xf32>, vector<8x1024xf32>, vector<8x1024xf32>, vector<8x1024xf32>, vector<8x1024xf32>, vector<8x1024xf32>, vector<8x1024xf32> -> vector<128x1024xf32>
    %31 = tpu.concatenate %21, %22, %23, %24, %25, %26, %27, %28, %29 in 0 : vector<8x1024xf32>, vector<8x1024xf32>, vector<8x1024xf32>, vector<8x1024xf32>, vector<8x1024xf32>, vector<8x1024xf32>, vector<8x1024xf32>, vector<8x1024xf32>, vector<8x1024xf32> -> vector<72x1024xf32>
    %32 = tpu.concatenate %30, %31 in 0 : vector<128x1024xf32>, vector<72x1024xf32> -> vector<200x1024xf32>
    %cst_4 = arith.constant dense<0.000000e+00> : vector<8x1024xf32>
    %33 = tpu.matmul %2, %32, %cst_4 {dimension_numbers = #tpu.dot_dimension_numbers<[1], [0], [0], [1], [0, 0, 1, 1], [], []>} : vector<8x200xf32>, vector<200x1024xf32>, vector<8x1024xf32> -> vector<8x1024xf32>
    %c0_5 = arith.constant 0 : index
    %c0_6 = arith.constant 0 : index
    %34 = vector.load %arg3[%c0_5, %c0_6] : memref<8x1xf32, #tpu.memory_space<vmem>>, vector<8x1xf32>
    %35 = vector.broadcast %34 : vector<8x1xf32> to vector<8x1024xf32>
    %36 = arith.addf %33, %35 : vector<8x1024xf32>
    %cst_7 = arith.constant 0.000000e+00 : f32
    %37 = vector.broadcast %cst_7 : f32 to vector<8x1024xf32>
    %38 = arith.maximumf %36, %37 : vector<8x1024xf32>
    %cst_8 = arith.constant 0.000000e+00 : f32
    %39 = vector.broadcast %cst_8 : f32 to vector<8x33xf32>
    %40 = tpu.concatenate %38, %39 in 1 : vector<8x1024xf32>, vector<8x33xf32> -> vector<8x1057xf32>
    %41 = vector.extract_strided_slice %40 {offsets = [0, 0], sizes = [8, 1056], strides = [1, 1]} : vector<8x1057xf32> to vector<8x1056xf32>
    %42 = vector.extract_strided_slice %40 {offsets = [0, 1], sizes = [8, 1056], strides = [1, 1]} : vector<8x1057xf32> to vector<8x1056xf32>
    %43 = arith.maximumf %41, %42 : vector<8x1056xf32>
    %44 = vector.extract_strided_slice %43 {offsets = [0, 0], sizes = [8, 1024], strides = [1, 1]} : vector<8x1056xf32> to vector<8x1024xf32>
    %45 = vector.extract_strided_slice %43 {offsets = [0, 32], sizes = [8, 1024], strides = [1, 1]} : vector<8x1056xf32> to vector<8x1024xf32>
    %46 = arith.maximumf %44, %45 : vector<8x1024xf32>
    %c0_9 = arith.constant 0 : index
    %c0_10 = arith.constant 0 : index
    %47 = vector.load %arg4[%c0_9, %c0_10] : memref<16x200xf32, #tpu.memory_space<vmem>>, vector<16x200xf32>
    %cst_11 = arith.constant 0.000000e+00 : f32
    %48 = vector.broadcast %cst_11 : f32 to vector<8x264xf32>
    %49 = tpu.concatenate %46, %48 in 1 : vector<8x1024xf32>, vector<8x264xf32> -> vector<8x1288xf32>
    %50 = vector.extract_strided_slice %49 {offsets = [0, 0], sizes = [8, 1024], strides = [1, 1]} : vector<8x1288xf32> to vector<8x1024xf32>
    %51 = vector.extract_strided_slice %49 {offsets = [0, 2], sizes = [8, 1024], strides = [1, 1]} : vector<8x1288xf32> to vector<8x1024xf32>
    %52 = vector.extract_strided_slice %49 {offsets = [0, 4], sizes = [8, 1024], strides = [1, 1]} : vector<8x1288xf32> to vector<8x1024xf32>
    %53 = vector.extract_strided_slice %49 {offsets = [0, 6], sizes = [8, 1024], strides = [1, 1]} : vector<8x1288xf32> to vector<8x1024xf32>
    %54 = vector.extract_strided_slice %49 {offsets = [0, 8], sizes = [8, 1024], strides = [1, 1]} : vector<8x1288xf32> to vector<8x1024xf32>
    %55 = vector.extract_strided_slice %49 {offsets = [0, 64], sizes = [8, 1024], strides = [1, 1]} : vector<8x1288xf32> to vector<8x1024xf32>
    %56 = vector.extract_strided_slice %49 {offsets = [0, 66], sizes = [8, 1024], strides = [1, 1]} : vector<8x1288xf32> to vector<8x1024xf32>
    %57 = vector.extract_strided_slice %49 {offsets = [0, 68], sizes = [8, 1024], strides = [1, 1]} : vector<8x1288xf32> to vector<8x1024xf32>
    %58 = vector.extract_strided_slice %49 {offsets = [0, 70], sizes = [8, 1024], strides = [1, 1]} : vector<8x1288xf32> to vector<8x1024xf32>
    %59 = vector.extract_strided_slice %49 {offsets = [0, 72], sizes = [8, 1024], strides = [1, 1]} : vector<8x1288xf32> to vector<8x1024xf32>
    %60 = vector.extract_strided_slice %49 {offsets = [0, 128], sizes = [8, 1024], strides = [1, 1]} : vector<8x1288xf32> to vector<8x1024xf32>
    %61 = vector.extract_strided_slice %49 {offsets = [0, 130], sizes = [8, 1024], strides = [1, 1]} : vector<8x1288xf32> to vector<8x1024xf32>
    %62 = vector.extract_strided_slice %49 {offsets = [0, 132], sizes = [8, 1024], strides = [1, 1]} : vector<8x1288xf32> to vector<8x1024xf32>
    %63 = vector.extract_strided_slice %49 {offsets = [0, 134], sizes = [8, 1024], strides = [1, 1]} : vector<8x1288xf32> to vector<8x1024xf32>
    %64 = vector.extract_strided_slice %49 {offsets = [0, 136], sizes = [8, 1024], strides = [1, 1]} : vector<8x1288xf32> to vector<8x1024xf32>
    %65 = vector.extract_strided_slice %49 {offsets = [0, 192], sizes = [8, 1024], strides = [1, 1]} : vector<8x1288xf32> to vector<8x1024xf32>
    %66 = vector.extract_strided_slice %49 {offsets = [0, 194], sizes = [8, 1024], strides = [1, 1]} : vector<8x1288xf32> to vector<8x1024xf32>
    %67 = vector.extract_strided_slice %49 {offsets = [0, 196], sizes = [8, 1024], strides = [1, 1]} : vector<8x1288xf32> to vector<8x1024xf32>
    %68 = vector.extract_strided_slice %49 {offsets = [0, 198], sizes = [8, 1024], strides = [1, 1]} : vector<8x1288xf32> to vector<8x1024xf32>
    %69 = vector.extract_strided_slice %49 {offsets = [0, 200], sizes = [8, 1024], strides = [1, 1]} : vector<8x1288xf32> to vector<8x1024xf32>
    %70 = vector.extract_strided_slice %49 {offsets = [0, 256], sizes = [8, 1024], strides = [1, 1]} : vector<8x1288xf32> to vector<8x1024xf32>
    %71 = vector.extract_strided_slice %49 {offsets = [0, 258], sizes = [8, 1024], strides = [1, 1]} : vector<8x1288xf32> to vector<8x1024xf32>
    %72 = vector.extract_strided_slice %49 {offsets = [0, 260], sizes = [8, 1024], strides = [1, 1]} : vector<8x1288xf32> to vector<8x1024xf32>
    %73 = vector.extract_strided_slice %49 {offsets = [0, 262], sizes = [8, 1024], strides = [1, 1]} : vector<8x1288xf32> to vector<8x1024xf32>
    %74 = vector.extract_strided_slice %49 {offsets = [0, 264], sizes = [8, 1024], strides = [1, 1]} : vector<8x1288xf32> to vector<8x1024xf32>
    %75 = tpu.concatenate %50, %51, %52, %53, %54, %55, %56, %57, %58, %59, %60, %61, %62, %63, %64, %65 in 0 : vector<8x1024xf32>, vector<8x1024xf32>, vector<8x1024xf32>, vector<8x1024xf32>, vector<8x1024xf32>, vector<8x1024xf32>, vector<8x1024xf32>, vector<8x1024xf32>, vector<8x1024xf32>, vector<8x1024xf32>, vector<8x1024xf32>, vector<8x1024xf32>, vector<8x1024xf32>, vector<8x1024xf32>, vector<8x1024xf32>, vector<8x1024xf32> -> vector<128x1024xf32>
    %76 = tpu.concatenate %66, %67, %68, %69, %70, %71, %72, %73, %74 in 0 : vector<8x1024xf32>, vector<8x1024xf32>, vector<8x1024xf32>, vector<8x1024xf32>, vector<8x1024xf32>, vector<8x1024xf32>, vector<8x1024xf32>, vector<8x1024xf32>, vector<8x1024xf32> -> vector<72x1024xf32>
    %77 = tpu.concatenate %75, %76 in 0 : vector<128x1024xf32>, vector<72x1024xf32> -> vector<200x1024xf32>
    %cst_12 = arith.constant dense<0.000000e+00> : vector<16x1024xf32>
    %78 = tpu.matmul %47, %77, %cst_12 {dimension_numbers = #tpu.dot_dimension_numbers<[1], [0], [0], [1], [0, 0, 1, 1], [], []>} : vector<16x200xf32>, vector<200x1024xf32>, vector<16x1024xf32> -> vector<16x1024xf32>
    %c0_13 = arith.constant 0 : index
    %c0_14 = arith.constant 0 : index
    %79 = vector.load %arg5[%c0_13, %c0_14] : memref<16x1xf32, #tpu.memory_space<vmem>>, vector<16x1xf32>
    %80 = vector.broadcast %79 : vector<16x1xf32> to vector<16x1024xf32>
    %81 = arith.addf %78, %80 : vector<16x1024xf32>
    %cst_15 = arith.constant 0.000000e+00 : f32
    %82 = vector.broadcast %cst_15 : f32 to vector<16x1024xf32>
    %83 = arith.maximumf %81, %82 : vector<16x1024xf32>
    %cst_16 = arith.constant 0.000000e+00 : f32
    %84 = vector.broadcast %cst_16 : f32 to vector<16x66xf32>
    %85 = tpu.concatenate %83, %84 in 1 : vector<16x1024xf32>, vector<16x66xf32> -> vector<16x1090xf32>
    %86 = vector.extract_strided_slice %85 {offsets = [0, 0], sizes = [16, 1088], strides = [1, 1]} : vector<16x1090xf32> to vector<16x1088xf32>
    %87 = vector.extract_strided_slice %85 {offsets = [0, 2], sizes = [16, 1088], strides = [1, 1]} : vector<16x1090xf32> to vector<16x1088xf32>
    %88 = arith.maximumf %86, %87 : vector<16x1088xf32>
    %89 = vector.extract_strided_slice %88 {offsets = [0, 0], sizes = [16, 1024], strides = [1, 1]} : vector<16x1088xf32> to vector<16x1024xf32>
    %90 = vector.extract_strided_slice %88 {offsets = [0, 64], sizes = [16, 1024], strides = [1, 1]} : vector<16x1088xf32> to vector<16x1024xf32>
    %91 = arith.maximumf %89, %90 : vector<16x1024xf32>
    %c0_17 = arith.constant 0 : index
    %c0_18 = arith.constant 0 : index
    %92 = vector.load %arg6[%c0_17, %c0_18] : memref<1024x128xf32, #tpu.memory_space<vmem>>, vector<1024x128xf32>
    %cst_19 = arith.constant dense<0.000000e+00> : vector<16x128xf32>
    %93 = tpu.matmul %91, %92, %cst_19 {dimension_numbers = #tpu.dot_dimension_numbers<[1], [0], [0], [1], [0, 0, 1, 1], [], []>} : vector<16x1024xf32>, vector<1024x128xf32>, vector<16x128xf32> -> vector<16x128xf32>
    %94 = vector.extract_strided_slice %93 {offsets = [0, 0], sizes = [1, 128], strides = [1, 1]} : vector<16x128xf32> to vector<1x128xf32>
    %95 = vector.extract_strided_slice %93 {offsets = [1, 0], sizes = [1, 128], strides = [1, 1]} : vector<16x128xf32> to vector<1x128xf32>
    %96 = vector.extract_strided_slice %93 {offsets = [2, 0], sizes = [1, 128], strides = [1, 1]} : vector<16x128xf32> to vector<1x128xf32>
    %97 = vector.extract_strided_slice %93 {offsets = [3, 0], sizes = [1, 128], strides = [1, 1]} : vector<16x128xf32> to vector<1x128xf32>
    %98 = vector.extract_strided_slice %93 {offsets = [4, 0], sizes = [1, 128], strides = [1, 1]} : vector<16x128xf32> to vector<1x128xf32>
    %99 = vector.extract_strided_slice %93 {offsets = [5, 0], sizes = [1, 128], strides = [1, 1]} : vector<16x128xf32> to vector<1x128xf32>
    %100 = vector.extract_strided_slice %93 {offsets = [6, 0], sizes = [1, 128], strides = [1, 1]} : vector<16x128xf32> to vector<1x128xf32>
    %101 = vector.extract_strided_slice %93 {offsets = [7, 0], sizes = [1, 128], strides = [1, 1]} : vector<16x128xf32> to vector<1x128xf32>
    %102 = vector.extract_strided_slice %93 {offsets = [8, 0], sizes = [1, 128], strides = [1, 1]} : vector<16x128xf32> to vector<1x128xf32>
    %103 = vector.extract_strided_slice %93 {offsets = [9, 0], sizes = [1, 128], strides = [1, 1]} : vector<16x128xf32> to vector<1x128xf32>
    %104 = vector.extract_strided_slice %93 {offsets = [10, 0], sizes = [1, 128], strides = [1, 1]} : vector<16x128xf32> to vector<1x128xf32>
    %105 = vector.extract_strided_slice %93 {offsets = [11, 0], sizes = [1, 128], strides = [1, 1]} : vector<16x128xf32> to vector<1x128xf32>
    %106 = vector.extract_strided_slice %93 {offsets = [12, 0], sizes = [1, 128], strides = [1, 1]} : vector<16x128xf32> to vector<1x128xf32>
    %107 = vector.extract_strided_slice %93 {offsets = [13, 0], sizes = [1, 128], strides = [1, 1]} : vector<16x128xf32> to vector<1x128xf32>
    %108 = vector.extract_strided_slice %93 {offsets = [14, 0], sizes = [1, 128], strides = [1, 1]} : vector<16x128xf32> to vector<1x128xf32>
    %109 = vector.extract_strided_slice %93 {offsets = [15, 0], sizes = [1, 128], strides = [1, 1]} : vector<16x128xf32> to vector<1x128xf32>
    %110 = tpu.concatenate %94, %95, %96, %97, %98, %99, %100, %101, %102, %103, %104, %105, %106, %107, %108, %109 in 1 : vector<1x128xf32>, vector<1x128xf32>, vector<1x128xf32>, vector<1x128xf32>, vector<1x128xf32>, vector<1x128xf32>, vector<1x128xf32>, vector<1x128xf32>, vector<1x128xf32>, vector<1x128xf32>, vector<1x128xf32>, vector<1x128xf32>, vector<1x128xf32>, vector<1x128xf32>, vector<1x128xf32>, vector<1x128xf32> -> vector<1x2048xf32>
    %c0_20 = arith.constant 0 : index
    %c0_21 = arith.constant 0 : index
    %111 = vector.load %arg7[%c0_20, %c0_21] : memref<2048x128xf32, #tpu.memory_space<vmem>>, vector<2048x128xf32>
    %cst_22 = arith.constant dense<0.000000e+00> : vector<1x128xf32>
    %112 = tpu.matmul %110, %111, %cst_22 {dimension_numbers = #tpu.dot_dimension_numbers<[1], [0], [0], [1], [0, 0, 1, 1], [], []>} : vector<1x2048xf32>, vector<2048x128xf32>, vector<1x128xf32> -> vector<1x128xf32>
    %c0_23 = arith.constant 0 : index
    %c0_24 = arith.constant 0 : index
    %113 = vector.load %arg8[%c0_23, %c0_24] : memref<1x128xf32, #tpu.memory_space<vmem>>, vector<1x128xf32>
    %114 = arith.addf %112, %113 : vector<1x128xf32>
    %cst_25 = arith.constant 0.000000e+00 : f32
    %115 = vector.broadcast %cst_25 : f32 to vector<1x128xf32>
    %116 = arith.maximumf %114, %115 : vector<1x128xf32>
    %c0_26 = arith.constant 0 : index
    %c0_27 = arith.constant 0 : index
    %117 = vector.load %arg9[%c0_26, %c0_27] : memref<128x128xf32, #tpu.memory_space<vmem>>, vector<128x128xf32>
    %cst_28 = arith.constant dense<0.000000e+00> : vector<1x128xf32>
    %118 = tpu.matmul %116, %117, %cst_28 {dimension_numbers = #tpu.dot_dimension_numbers<[1], [0], [0], [1], [0, 0, 1, 1], [], []>} : vector<1x128xf32>, vector<128x128xf32>, vector<1x128xf32> -> vector<1x128xf32>
    %c0_29 = arith.constant 0 : index
    %c0_30 = arith.constant 0 : index
    %119 = vector.load %arg10[%c0_29, %c0_30] : memref<1x128xf32, #tpu.memory_space<vmem>>, vector<1x128xf32>
    %120 = arith.addf %118, %119 : vector<1x128xf32>
    %cst_31 = arith.constant 0.000000e+00 : f32
    %121 = vector.broadcast %cst_31 : f32 to vector<1x128xf32>
    %122 = arith.maximumf %120, %121 : vector<1x128xf32>
    %c0_32 = arith.constant 0 : index
    %c0_33 = arith.constant 0 : index
    %123 = vector.load %arg11[%c0_32, %c0_33] : memref<128x128xf32, #tpu.memory_space<vmem>>, vector<128x128xf32>
    %cst_34 = arith.constant dense<0.000000e+00> : vector<1x128xf32>
    %124 = tpu.matmul %122, %123, %cst_34 {dimension_numbers = #tpu.dot_dimension_numbers<[1], [0], [0], [1], [0, 0, 1, 1], [], []>} : vector<1x128xf32>, vector<128x128xf32>, vector<1x128xf32> -> vector<1x128xf32>
    %c0_35 = arith.constant 0 : index
    %c0_36 = arith.constant 0 : index
    %125 = vector.load %arg12[%c0_35, %c0_36] : memref<1x128xf32, #tpu.memory_space<vmem>>, vector<1x128xf32>
    %126 = arith.addf %124, %125 : vector<1x128xf32>
    %c0_37 = arith.constant 0 : index
    %c0_38 = arith.constant 0 : index
    %c0_39 = arith.constant 0 : index
    %127 = vector.load %arg13[%c0_37, %c0_38, %c0_39] : memref<1x1x128xf32, #tpu.memory_space<vmem>>, vector<1x1x128xf32>
    %128 = vector.shape_cast %127 : vector<1x1x128xf32> to vector<1x128xf32>
    %129 = vector.shape_cast %126 : vector<1x128xf32> to vector<1x1x128xf32>
    tpu.vector_store %arg13[%c0_37, %c0_38, %c0_39], %129 {strides = array<i32>} : memref<1x1x128xf32, #tpu.memory_space<vmem>>, vector<1x1x128xf32>,
    return
  }
  func.func @transform_0(%arg0: i32) -> (i32, i32, i32) {
    %c0_i32 = arith.constant 0 : i32
    %c0_i32_0 = arith.constant 0 : i32
    %c0_i32_1 = arith.constant 0 : i32
    return %arg0, %c0_i32, %c0_i32_0 : i32, i32, i32
  }
  func.func @transform_1(%arg0: i32) -> (i32, i32) {
    %c0_i32 = arith.constant 0 : i32
    %c0_i32_0 = arith.constant 0 : i32
    %c0_i32_1 = arith.constant 0 : i32
    return %c0_i32, %c0_i32_0 : i32, i32
  }
  func.func @transform_2(%arg0: i32) -> (i32, i32) {
    %c0_i32 = arith.constant 0 : i32
    %c0_i32_0 = arith.constant 0 : i32
    %c0_i32_1 = arith.constant 0 : i32
    return %c0_i32, %c0_i32_0 : i32, i32
  }
  func.func @transform_3(%arg0: i32) -> (i32, i32) {
    %c0_i32 = arith.constant 0 : i32
    %c0_i32_0 = arith.constant 0 : i32
    %c0_i32_1 = arith.constant 0 : i32
    return %c0_i32, %c0_i32_0 : i32, i32
  }
  func.func @transform_4(%arg0: i32) -> (i32, i32) {
    %c0_i32 = arith.constant 0 : i32
    %c0_i32_0 = arith.constant 0 : i32
    %c0_i32_1 = arith.constant 0 : i32
    return %c0_i32, %c0_i32_0 : i32, i32
  }
  func.func @transform_5(%arg0: i32) -> (i32, i32) {
    %c0_i32 = arith.constant 0 : i32
    %c0_i32_0 = arith.constant 0 : i32
    %c0_i32_1 = arith.constant 0 : i32
    return %c0_i32, %c0_i32_0 : i32, i32
  }
  func.func @transform_6(%arg0: i32) -> (i32, i32) {
    %c0_i32 = arith.constant 0 : i32
    %c0_i32_0 = arith.constant 0 : i32
    %c0_i32_1 = arith.constant 0 : i32
    return %c0_i32, %c0_i32_0 : i32, i32
  }
  func.func @transform_7(%arg0: i32) -> (i32, i32) {
    %c0_i32 = arith.constant 0 : i32
    %c0_i32_0 = arith.constant 0 : i32
    %c0_i32_1 = arith.constant 0 : i32
    return %c0_i32, %c0_i32_0 : i32, i32
  }
  func.func @transform_8(%arg0: i32) -> (i32, i32) {
    %c0_i32 = arith.constant 0 : i32
    %c0_i32_0 = arith.constant 0 : i32
    %c0_i32_1 = arith.constant 0 : i32
    return %c0_i32, %c0_i32_0 : i32, i32
  }
  func.func @transform_9(%arg0: i32) -> (i32, i32) {
    %c0_i32 = arith.constant 0 : i32
    %c0_i32_0 = arith.constant 0 : i32
    %c0_i32_1 = arith.constant 0 : i32
    return %c0_i32, %c0_i32_0 : i32, i32
  }
  func.func @transform_10(%arg0: i32) -> (i32, i32) {
    %c0_i32 = arith.constant 0 : i32
    %c0_i32_0 = arith.constant 0 : i32
    %c0_i32_1 = arith.constant 0 : i32
    return %c0_i32, %c0_i32_0 : i32, i32
  }
  func.func @transform_11(%arg0: i32) -> (i32, i32) {
    %c0_i32 = arith.constant 0 : i32
    %c0_i32_0 = arith.constant 0 : i32
    %c0_i32_1 = arith.constant 0 : i32
    return %c0_i32, %c0_i32_0 : i32, i32
  }
  func.func @transform_12(%arg0: i32) -> (i32, i32, i32) {
    %c0_i32 = arith.constant 0 : i32
    %c0_i32_0 = arith.constant 0 : i32
    %c0_i32_1 = arith.constant 0 : i32
    return %arg0, %c0_i32, %c0_i32_0 : i32, i32, i32
  }
}

</mosaic_0001>

<bundles_post_ra>
// kernel: net_forward.1
= control target key start
LH: loop header
LB: loop body
LE: loop exit
PB: predicated region body
PF: predicated region fallthrough
CT: control target
= control target key end

     0   :  { %17 = vsyncpa [#allocation3], 0  ;;  %s8130_s0 = inlined_call_operand.vmem [shape: f32[2,8,1024], index: 0, kind: input, shape index: {}]   ;;  %s8131_s1 = inlined_call_operand.vmem [shape: f32[8,200], index: 1, kind: input, shape index: {}]   ;;  %s8132_s2 = inlined_call_operand.vmem [shape: f32[8,1], index: 2, kind: input, shape index: {}]   ;;  %s8133_s3 = inlined_call_operand.vmem [shape: f32[16,200], index: 3, kind: input, shape index: {}]   ;;  %s8134_s4 = inlined_call_operand.vmem [shape: f32[16,1], index: 4, kind: input, shape index: {}]   ;;  %s8135_s5 = inlined_call_operand.hbm [shape: f32[1024,128], index: 5, kind: input, shape index: {}]   ;;  %s8136_s6 = inlined_call_operand.hbm [shape: f32[2048,128], index: 6, kind: input, shape index: {}]   ;;  %s8137_s7 = inlined_call_operand.vmem [shape: f32[1,128], index: 7, kind: input, shape index: {}]   ;;  %s8138_s8 = inlined_call_operand.vmem [shape: f32[128,128], index: 8, kind: input, shape index: {}]   ;;  %s8139_s9 = inlined_call_operand.vmem [shape: f32[1,128], index: 9, kind: input, shape index: {}]   ;;  %s8140_s10 = inlined_call_operand.vmem [shape: f32[128,128], index: 10, kind: input, shape index: {}]   ;;  %s8141_s11 = inlined_call_operand.vmem [shape: f32[1,128], index: 11, kind: input, shape index: {}]   ;;  %s8142_s12 = inlined_call_operand.hbm [shape: f32[2,1,128], index: 12, kind: output, shape index: {}]  }
   0x1   :  { %18 = vsyncpa [#allocation6], 0 }
   0x2   :  { %19 = vsyncpa [#allocation4], 0 }
   0x3   :  { %21 = vsyncpa [#allocation4 + $0x1], 0  ;;  %s5357_s21 = smov 0   ;;  %s5359_s22 = smov 0  }
   0x4   :  { %s5361_s23 = smov 0   ;;  %s5363_s24 = smov 0  }
   0x5 LB: > { %8195 = sst [smem:[#allocation11_spill]] %s5256_s23  ;;  %s5378_s25 = sadd.s32 4294967295, %s5260_s24   ;;  %s5260_s24 = sphi %s5363_s24, %s8287_s24   ;;  %s5256_s23 = sphi %s5361_s23, %s8284_s23   ;;  %s5252_s22 = sphi %s5359_s22, %s8286_s22   ;;  %s5248_s21 = sphi %s5357_s21, %s8285_s21  }
   0x6   : > { %s4390_s26 = sadd.s32 4294967294, %s5260_s24   ;;  %s5382_s27 = sadd.s32 1, %s5260_s24  }
   0x7   : > { %s291_s28 = sadd.s32 1, %s5256_s23  ;;  %s288_s29 = ssub.s32 %s5260_s24, %s5382_s27 }
   0x8   : > { %p301_p0 = scmp.ne.s32.totalorder %s5256_s23, %s5252_s22  ;;  %p289_p1 = scmp.eq.s32.totalorder %s288_s29, 0 }
   0x9   : > { %p302_p2 = scmp.eq.s32.totalorder %s5378_s25, 1  ;;  %p307_p3 = scmp.ne.s32.totalorder %s5252_s22, %s5248_s21 }
   0xa   : > { %p308_p4 = scmp.eq.s32.totalorder %s4390_s26, 1  ;;  %p4391_p7 = scmp.ge.s32.totalorder %s5260_s24, 1 }
   0xb   : > { %s5393_s30 = scalar_select %p289_p1, %s5256_s23, %s291_s28  }
   0xc   : > { %p5395_p5 = por %p302_p2, %p301_p0  ;;  %p5399_p6 = por %p308_p4, %p307_p3 }
   0xd   : > { %8196 = sst [smem:[#allocation12_spill]] %s5393_s30  ;;  %p315_p8 = scmp.lt.s32.totalorder %s5260_s24, 3 }
   0xe   : > { %s8198_s14 = scalar_select %p5399_p6, 1, 0 }
   0xf   : > { %p8143_p9 = scmp.eq.s32.totalorder %s5378_s25, 0  ;;  %p5406_p10 = pnand %p4391_p7, %p315_p8 }
  0x10   : > { %s5262_s16 = smov [#allocation2]   ;;  %s5263_s19 = smov [#allocation5]  }
  0x11   : > { %s339_s17 = sshll.u32 %s5262_s16, 4  ;;  %p4962_p11 = pneg %p5406_p10  ;;  %s340_s17 = int_to_ptr.vmem [resolvable:$true] %s339_s17 }
  0x12   : > { %s352_s20 = sshll.u32 %s5263_s19, 4  ;;  %s5151_s26 = scalar_lea.vmem %s340_s17, 16384  ;;  %s353_s20 = int_to_ptr.vmem [resolvable:$true] %s352_s20 }
  0x13   : > { %p5414_p12 = pnand %p8143_p9, %p4962_p11  ;;  %p5152_p0 = scmp.ne.s32.totalorder %s340_s17, %s5151_s26 }
  0x14   : > { %p5159_p3 = scmp.lt.s32.totalorder %s340_s17, %s340_s17  ;;  %p5160_p4 = scmp.lt.s32.totalorder %s5151_s26, %s5151_s26 }
  0x15   : > { %p5142_p13 = pneg %p5414_p12 }
  0x16   : > { %p5161_p7 = por %p5160_p4, %p5159_p3 }
  0x17   : > { %p5154_p1 = pnand %p5152_p0, %p5142_p13 }
  0x19   : > { %p5155_p2 = pneg %p5154_p1 }
  0x1b   : > { %p5162_p8 = pnand %p5161_p7, %p5155_p2 }
  0x1d   : > { %5165 = shalt.err (!%p5162_p8)
}
  0x1e   : > { %s5264_s28 = smov 128   ;;  %s5265_s29 = smov 8  }
  0x1f   : > { %4965 = dma.hbm_to_vmem [thread:$0]  (!%p5414_p12), %s8135_s5, 16384, %s340_s17, [#allocation3], %s5264_s28, %s5264_s28, %s5265_s29  }
  0x20   : > { %s5177_s30 = scalar_lea.vmem %s353_s20, 32768  ;;  %p5185_p9 = scmp.lt.s32.totalorder %s353_s20, %s353_s20 }
  0x21   : > { %p5178_p11 = scmp.ne.s32.totalorder %s353_s20, %s5177_s30  ;;  %p5186_p6 = scmp.lt.s32.totalorder %s5177_s30, %s5177_s30 }
  0x23   : > { %p5180_p0 = pnand %p5178_p11, %p5142_p13  ;;  %p5187_p3 = por %p5186_p6, %p5185_p9 }
  0x25   : > { %p5181_p1 = pneg %p5180_p0 }
  0x27   : > { %p5188_p2 = pnand %p5187_p3, %p5181_p1 }
  0x29   : > { %5191 = shalt.err (!%p5188_p2)
}
  0x2a   : > { %4968 = dma.hbm_to_vmem [thread:$0]  (!%p5414_p12), %s8136_s6, 32768, %s353_s20, [#allocation6], %s5264_s28, %s5264_s28, %s5265_s29  }
  0x2b   : > { %391 = sbr.rel (%p5406_p10) target bundleno = 2836 (0xb14), region = 68 }
  0x30   : > { %p8201_p4 = scmp.eq.s32.totalorder %s5378_s25, 0 }
  0x32   : > { %5235 = dma.done.wait (%p8201_p4), [#allocation3], 16384   ;;  %p8202_p13 = pmov %p8201_p4 }
  0x33   : > { %p8203_p7 = pmov %p8201_p4 }
  0x34   : > { %5237 = vsyncadd (%p8202_p13), [#allocation3], 4294950912 }
  0x35   : > { %5239 = dma.done.wait (%p8203_p7), [#allocation6], 32768   ;;  %p8204_p6 = pmov %p8201_p4 }
  0x36   : > { %p436_p9 = scmp.lt.s32.totalorder %s5378_s25, 1  ;;  %s5266_s20 = smov 93   ;;  %v8157_v42 = vmov 0.0   ;;  %vm723_vm0 = vcmask 760832   ;;  %vm968_vm1 = vcmask 261120   ;;  %vm933_vm2 = vcmask 490496  }
  0x37   : > { %5241 = vsyncadd (%p8204_p6), [#allocation6], 4294934528  ;;  %s5267_s28 = smov 94   ;;  %s5268_s29 = smov 95   ;;  %vm688_vm3 = vcmask 769024   ;;  %vm898_vm4 = vcmask 498688  }
  0x38   : > { %s437_s23 = scalar_select %p436_p9, %s5378_s25, 1  ;;  %vm653_vm5 = vcmask 777216   ;;  %vm863_vm6 = vcmask 506880   ;;  %vm828_vm7 = vcmask 515072   ;;  %vm618_vm8 = vcmask 785408  }
  0x39   : > { %s5269_s16 = smov 96   ;;  %s5270_s19 = smov 97   ;;  %vm793_vm9 = vcmask 523264   ;;  %vm1001_vm10 = vcmask 793600   ;;  %vm8168_vm11 = vcmask 752640   ;;  %vm548_vm12 = vcmask 1022976  }
  0x3a   : > { %s4415_s30 = sshll.u32 %s437_s23, 6  ;;  %s5271_s26 = smov 125   ;;  %vm513_vm13 = vcmask 1031168   ;;  %vm8167_vm14 = vcmask 1014784   ;;  %vm478_vm15 = vcmask 1039360  }
  0x3b   : > { %s5451_s18 = scalar_lea.vmem %s8130_s0, %s4415_s30  ;;  %s5272_s23 = smov 126  }
  0x3c   : > { %v5454_v0 = vld [vmem:[%s5451_s18 + $0x18] sm:$0xff]  ;;  %v5457_v1 = vld [vmem:[%s5451_s18 + $0x8] sm:$0xff]  ;;  %v5464_v2 = vld [vmem:[%s5451_s18 + $0x10] sm:$0xff]  ;;  %s8145_s30 = smov 127   ;;  %s8147_s17 = smov 32  }
  0x3d   : > { %711 = vrot.lane.b32.xlu1 %v5454_v0, %s5266_s20  ;;  %707 = vrot.lane.b32.xlu0 %v5457_v1, %s5266_s20  ;;  %v5475_v3 = vld [vmem:[%s5451_s18 + $0x28] sm:$0xff]  ;;  %v5478_v4 = vld [vmem:[%s5451_s18 + $0x20] sm:$0xff]  ;;  %s8149_s15 = smov 60  }
  0x3e   : > { %v5525_v5 = vld [vmem:[%s5451_s18] sm:$0xff]  ;;  %v5692_v32 = vld [vmem:[%s5451_s18 + $0x30] sm:$0xff]  ;;  %v5703_v35 = vld [vmem:[%s5451_s18 + $0x38] sm:$0xff] }
  0x41   : > { %672 = vrot.lane.b32.xlu1 %v5457_v1, %s5267_s28  ;;  %709 = vrot.lane.b32.xlu0 %v5464_v2, %s5266_s20 }
  0x45   : > { %676 = vrot.lane.b32.xlu1 %v5454_v0, %s5267_s28  ;;  %674 = vrot.lane.b32.xlu0 %v5464_v2, %s5267_s28 }
  0x49   : > { %715 = vrot.lane.b32.xlu1 %v5475_v3, %s5266_s20  ;;  %713 = vrot.lane.b32.xlu0 %v5478_v4, %s5266_s20 }
  0x4d   : > { %639 = vrot.lane.b32.xlu1 %v5464_v2, %s5268_s29  ;;  %637 = vrot.lane.b32.xlu0 %v5457_v1, %s5268_s29 }
  0x51   : > { %678 = vrot.lane.b32.xlu1 %v5478_v4, %s5267_s28  ;;  %641 = vrot.lane.b32.xlu0 %v5454_v0, %s5268_s29 }
  0x55   : > { %602 = vrot.lane.b32.xlu1 %v5457_v1, %s5269_s16  ;;  %680 = vrot.lane.b32.xlu0 %v5475_v3, %s5267_s28 }
  0x59   : > { %606 = vrot.lane.b32.xlu1 %v5454_v0, %s5269_s16  ;;  %604 = vrot.lane.b32.xlu0 %v5464_v2, %s5269_s16 }
  0x5d   : > { %645 = vrot.lane.b32.xlu1 %v5475_v3, %s5268_s29  ;;  %643 = vrot.lane.b32.xlu0 %v5478_v4, %s5268_s29 }
  0x61   : > { %610 = vrot.lane.b32.xlu1 %v5475_v3, %s5269_s16  ;;  %608 = vrot.lane.b32.xlu0 %v5478_v4, %s5269_s16 }
  0x65   : > { %987 = vrot.lane.b32.xlu1 %v5464_v2, %s5270_s19  ;;  %985 = vrot.lane.b32.xlu0 %v5457_v1, %s5270_s19 }
  0x69   : > { %532 = vrot.lane.b32.xlu1 %v5457_v1, %s5271_s26  ;;  %989 = vrot.lane.b32.xlu0 %v5454_v0, %s5270_s19 }
  0x6d   : > { %536 = vrot.lane.b32.xlu1 %v5454_v0, %s5271_s26  ;;  %534 = vrot.lane.b32.xlu0 %v5464_v2, %s5271_s26 }
  0x71   : > { %993 = vrot.lane.b32.xlu1 %v5475_v3, %s5270_s19  ;;  %991 = vrot.lane.b32.xlu0 %v5478_v4, %s5270_s19 }
  0x75   : > { %497 = vrot.lane.b32.xlu1 %v5457_v1, %s5272_s23  ;;  %530 = vrot.lane.b32.xlu0 %v5525_v5, %s5271_s26 }
  0x79   : > { %501 = vrot.lane.b32.xlu1 %v5454_v0, %s5272_s23  ;;  %499 = vrot.lane.b32.xlu0 %v5464_v2, %s5272_s23 }
  0x7d   : > { %540 = vrot.lane.b32.xlu1 %v5475_v3, %s5271_s26  ;;  %538 = vrot.lane.b32.xlu0 %v5478_v4, %s5271_s26 }
  0x81   : > { %462 = vrot.lane.b32.xlu1 %v5457_v1, %s8145_s30  ;;  %495 = vrot.lane.b32.xlu0 %v5525_v5, %s5272_s23 }
  0x85   : > { %466 = vrot.lane.b32.xlu1 %v5454_v0, %s8145_s30  ;;  %464 = vrot.lane.b32.xlu0 %v5464_v2, %s8145_s30 }
  0x89   : > { %505 = vrot.lane.b32.xlu1 %v5475_v3, %s5272_s23  ;;  %503 = vrot.lane.b32.xlu0 %v5478_v4, %s5272_s23 }
  0x8d   : > { %468 = vrot.lane.b32.xlu1 %v5478_v4, %s8145_s30  ;;  %460 = vrot.lane.b32.xlu0 %v5525_v5, %s8145_s30 }
  0x91   : > { %952 = vrot.lane.b32.xlu1 %v5457_v1, %s8147_s17  ;;  %470 = vrot.lane.b32.xlu0 %v5475_v3, %s8145_s30  ;;  %s8151_s30 = smov 61  }
  0x95   : > { %950 = vrot.lane.b32.xlu1 %v5525_v5, %s8147_s17  ;;  %954 = vrot.lane.b32.xlu0 %v5464_v2, %s8147_s17 }
  0x99   : > { %919 = vrot.lane.b32.xlu1 %v5464_v2, %s8149_s15  ;;  %917 = vrot.lane.b32.xlu0 %v5457_v1, %s8149_s15 }
  0x9d   : > { %958 = vrot.lane.b32.xlu1 %v5478_v4, %s8147_s17  ;;  %956 = vrot.lane.b32.xlu0 %v5454_v0, %s8147_s17  ;;  %s8153_s17 = smov 62  }
  0xa1   : > { %882 = vrot.lane.b32.xlu1 %v5457_v1, %s8151_s30  ;;  %915 = vrot.lane.b32.xlu0 %v5525_v5, %s8149_s15 }
  0xa5   : > { %921 = vrot.lane.b32.xlu1 %v5454_v0, %s8149_s15  ;;  %884 = vrot.lane.b32.xlu0 %v5464_v2, %s8151_s30 }
  0xa9   : > { %880 = vrot.lane.b32.xlu1 %v5525_v5, %s8151_s30  ;;  %923 = vrot.lane.b32.xlu0 %v5478_v4, %s8149_s15  ;;  %s5278_s15 = smov 63  }
  0xad   : > { %849 = vrot.lane.b32.xlu1 %v5464_v2, %s8153_s17  ;;  %847 = vrot.lane.b32.xlu0 %v5457_v1, %s8153_s17 }
  0xaf   : > { %v5587_v6 = vpop.permute.xlu1 %711  ;;  %v5589_v7 = vpop.permute.xlu0 %707 }
  0xb1   : > { %888 = vrot.lane.b32.xlu1 %v5478_v4, %s8151_s30  ;;  %886 = vrot.lane.b32.xlu0 %v5454_v0, %s8151_s30  ;;  %s5279_s30 = smov 64  }
  0xb3   : > { %v5595_v8 = vpop.permute.xlu1 %672  ;;  %v5597_v9 = vpop.permute.xlu0 %709 }
  0xb4   : > { %v5766_v53 = vsel %vm723_vm0, %v5589_v7, %v5597_v9  ;;  %v5775_v56 = vsel %vm723_vm0, %v5597_v9, %v5587_v6 }
  0xb5   : > { %812 = vrot.lane.b32.xlu1 %v5457_v1, %s5278_s15  ;;  %845 = vrot.lane.b32.xlu0 %v5525_v5, %s8153_s17 }
  0xb7   : > { %v5603_v10 = vpop.permute.xlu1 %676  ;;  %v5605_v11 = vpop.permute.xlu0 %674 }
  0xb8   : > { %v5793_v9 = vsel %vm688_vm3, %v5595_v8, %v5605_v11 }
  0xb9   : > { %851 = vrot.lane.b32.xlu1 %v5454_v0, %s8153_s17  ;;  %814 = vrot.lane.b32.xlu0 %v5464_v2, %s5278_s15 }
  0xbb   : > { %v5611_v12 = vpop.permute.xlu1 %715  ;;  %v5613_v13 = vpop.permute.xlu0 %713 }
  0xbc   : > { %8205 = vst [vmem:[#allocation13_spill] sm:$0xff] %v5611_v12 }
  0xbd   : > { %810 = vrot.lane.b32.xlu1 %v5525_v5, %s5278_s15  ;;  %853 = vrot.lane.b32.xlu0 %v5478_v4, %s8153_s17  ;;  %s8155_s17 = smov 92  }
  0xbf   : > { %v5619_v14 = vpop.permute.xlu1 %639  ;;  %v5621_v15 = vpop.permute.xlu0 %637 }
  0xc1   : > { %779 = vrot.lane.b32.xlu1 %v5464_v2, %s5279_s30  ;;  %777 = vrot.lane.b32.xlu0 %v5457_v1, %s5279_s30 }
  0xc3   : > { %v5627_v16 = vpop.permute.xlu1 %678  ;;  %v5629_v17 = vpop.permute.xlu0 %641 }
  0xc5   : > { %818 = vrot.lane.b32.xlu1 %v5478_v4, %s5278_s15  ;;  %816 = vrot.lane.b32.xlu0 %v5454_v0, %s5278_s15 }
  0xc7   : > { %v5635_v18 = vpop.permute.xlu1 %602  ;;  %v5637_v19 = vpop.permute.xlu0 %680 }
  0xc9   : > { %742 = vrot.lane.b32.xlu1 %v5457_v1, %s8155_s17  ;;  %775 = vrot.lane.b32.xlu0 %v5525_v5, %s5279_s30 }
  0xcb   : > { %v5643_v20 = vpop.permute.xlu1 %606  ;;  %v5645_v21 = vpop.permute.xlu0 %604 }
  0xcd   : > { %781 = vrot.lane.b32.xlu1 %v5454_v0, %s5279_s30  ;;  %744 = vrot.lane.b32.xlu0 %v5464_v2, %s8155_s17 }
  0xcf   : > { %v5651_v22 = vpop.permute.xlu1 %645  ;;  %v5653_v23 = vpop.permute.xlu0 %643 }
  0xd1   : > { %740 = vrot.lane.b32.xlu1 %v5525_v5, %s8155_s17  ;;  %783 = vrot.lane.b32.xlu0 %v5478_v4, %s5279_s30 }
  0xd3   : > { %v5659_v24 = vpop.permute.xlu1 %610  ;;  %v5661_v25 = vpop.permute.xlu0 %608 }
  0xd5   : > { %748 = vrot.lane.b32.xlu1 %v5478_v4, %s8155_s17  ;;  %746 = vrot.lane.b32.xlu0 %v5454_v0, %s8155_s17  ;;  %s5281_s17 = smov 124  }
  0xd7   : > { %v5667_v26 = vpop.permute.xlu1 %987  ;;  %v5669_v27 = vpop.permute.xlu0 %985 }
  0xd9   : > { %670 = vrot.lane.b32.xlu1 %v5525_v5, %s5267_s28  ;;  %705 = vrot.lane.b32.xlu0 %v5525_v5, %s5266_s20 }
  0xdb   : > { %v5675_v28 = vpop.permute.xlu1 %532  ;;  %v5677_v29 = vpop.permute.xlu0 %989 }
  0xdd   : > { %600 = vrot.lane.b32.xlu1 %v5525_v5, %s5269_s16  ;;  %635 = vrot.lane.b32.xlu0 %v5525_v5, %s5268_s29 }
  0xdf   : > { %v5683_v30 = vpop.permute.xlu1 %536  ;;  %v5685_v31 = vpop.permute.xlu0 %534 }
  0xe1   : > { %569 = vrot.lane.b32.xlu1 %v5464_v2, %s5281_s17  ;;  %567 = vrot.lane.b32.xlu0 %v5457_v1, %s5281_s17 }
  0xe3   : > { %v5694_v33 = vpop.permute.xlu1 %993  ;;  %v5696_v34 = vpop.permute.xlu0 %991 }
  0xe5   : > { %717 = vrot.lane.b32.xlu1 %v5692_v32, %s5266_s20  ;;  %565 = vrot.lane.b32.xlu0 %v5525_v5, %s5281_s17 }
  0xe7   : > { %v5705_v36 = vpop.permute.xlu1 %497  ;;  %v5707_v37 = vpop.permute.xlu0 %530 }
  0xe9   : > { %571 = vrot.lane.b32.xlu1 %v5454_v0, %s5281_s17  ;;  %719 = vrot.lane.b32.xlu0 %v5703_v35, %s5266_s20 }
  0xeb   : > { %v5713_v38 = vpop.permute.xlu1 %501  ;;  %v5715_v39 = vpop.permute.xlu0 %499 }
  0xed   : > { %682 = vrot.lane.b32.xlu1 %v5692_v32, %s5267_s28  ;;  %573 = vrot.lane.b32.xlu0 %v5478_v4, %s5281_s17 }
  0xef   : > { %v5721_v40 = vpop.permute.xlu1 %540  ;;  %v5723_v41 = vpop.permute.xlu0 %538 }
  0xf1   : > { %721 = vrot.lane.b32.xlu1 %v8157_v42, %s5266_s20  ;;  %684 = vrot.lane.b32.xlu0 %v5703_v35, %s5267_s28  ;;  %s5283_s20 = smov 31  }
  0xf3   : > { %v5729_v43 = vpop.permute.xlu1 %462  ;;  %v5731_v44 = vpop.permute.xlu0 %495 }
  0xf5   : > { %649 = vrot.lane.b32.xlu1 %v5703_v35, %s5268_s29  ;;  %647 = vrot.lane.b32.xlu0 %v5692_v32, %s5268_s29 }
  0xf7   : > { %v5737_v45 = vpop.permute.xlu1 %466  ;;  %v5739_v46 = vpop.permute.xlu0 %464 }
  0xf9   : > { %612 = vrot.lane.b32.xlu1 %v5692_v32, %s5269_s16  ;;  %686 = vrot.lane.b32.xlu0 %v8157_v42, %s5267_s28  ;;  %s8212_s28 = smov 127  }
  0xfb   : > { %v5745_v47 = vpop.permute.xlu1 %505  ;;  %v5747_v48 = vpop.permute.xlu0 %503 }
  0xfd   : > { %651 = vrot.lane.b32.xlu1 %v8157_v42, %s5268_s29  ;;  %614 = vrot.lane.b32.xlu0 %v5703_v35, %s5269_s16  ;;  %s8216_s29 = smov 60  }
  0xff   : > { %v5753_v49 = vpop.permute.xlu1 %468  ;;  %v5755_v50 = vpop.permute.xlu0 %460 }
 0x101   : > { %995 = vrot.lane.b32.xlu1 %v5692_v32, %s5270_s19  ;;  %616 = vrot.lane.b32.xlu0 %v8157_v42, %s5269_s16 }
 0x103   : > { %v953_v51 = vpop.permute.xlu1 %952  ;;  %v5761_v52 = vpop.permute.xlu0 %470 }
 0x105   : > { %1155 = vrot.lane.b32.xlu1 %v5766_v53, %s5283_s20  ;;  %997 = vrot.lane.b32.xlu0 %v5703_v35, %s5270_s19 }
 0x107   : > { %v951_v54 = vpop.permute.xlu1 %950  ;;  %v955_v55 = vpop.permute.xlu0 %954 }
 0x108   : > { %v970_v57 = vsel %vm968_vm1, %v953_v51, %v955_v55  ;;  %v969_v58 = vsel %vm968_vm1, %v951_v54, %v953_v51 }
 0x109   : > { %542 = vrot.lane.b32.xlu1 %v5692_v32, %s5271_s26  ;;  %1157 = vrot.lane.b32.xlu0 %v5775_v56, %s5283_s20 }
 0x10a   : > { %1326 = vmatprep.subr.mxu0 %v970_v57 }
 0x10b   : > { %1327 = vmatpush1.msra.mxu0 %v969_v58  ;;  %v920_v59 = vpop.permute.xlu1 %919  ;;  %v918_v60 = vpop.permute.xlu0 %917 }
 0x10c   : > { %v935_v61 = vsel %vm933_vm2, %v918_v60, %v920_v59 }
 0x10d   : > { %999 = vrot.lane.b32.xlu1 %v8157_v42, %s5270_s19  ;;  %544 = vrot.lane.b32.xlu0 %v5703_v35, %s5271_s26  ;;  %v5810_v42 = vsel %vm688_vm3, %v5605_v11, %v5603_v10  ;;  %s8217_s19 = smov 61  }
 0x10e   : > { %1328 = vmatprep.subr.mxu0 %v935_v61  ;;  %v5805_v61 = vsel %vm723_vm0, %v5587_v6, %v5613_v13  ;;  %v5820_v6 = vsel %vm723_vm0, %v5613_v13, %v5611_v12  ;;  %v8209_v13 = vmov 0.0  }
 0x10f   : > { %v5788_v62 = vpop.permute.xlu1 %958  ;;  %v957_v63 = vpop.permute.xlu0 %956  ;;  %8207 = vst [vmem:[#allocation15_spill] sm:$0xff] %v5820_v6 }
 0x110   : > { %8206 = vst [vmem:[#allocation14_spill] sm:$0xff] %v5788_v62  ;;  %v972_v51 = vsel %vm968_vm1, %v957_v63, %v5788_v62  ;;  %v971_v54 = vsel %vm968_vm1, %v955_v55, %v957_v63 }
 0x111   : > { %1137 = vrot.lane.b32.xlu1 %v5793_v9, %s5283_s20  ;;  %1153 = vrot.lane.b32.xlu0 %v5589_v7, %s5283_s20 }
 0x112   : > { %1397 = vmatprep.subr.mxu1 %v972_v51 }
 0x113   : > { %1398 = vmatpush1.msra.mxu1 %v971_v54  ;;  %v883_v57 = vpop.permute.xlu1 %882  ;;  %v916_v58 = vpop.permute.xlu0 %915 }
 0x114   : > { %v934_v55 = vsel %vm933_vm2, %v916_v58, %v918_v60 }
 0x115   : > { %1159 = vrot.lane.b32.xlu1 %v5805_v61, %s5283_s20  ;;  %1139 = vrot.lane.b32.xlu0 %v5810_v42, %s5283_s20 }
 0x116   : > { %1329 = vmatpush1.msra.mxu0 %v934_v55 }
 0x117   : > { %v922_v63 = vpop.permute.xlu1 %921  ;;  %v885_v51 = vpop.permute.xlu0 %884 }
 0x118   : > { %v900_v11 = vsel %vm898_vm4, %v883_v57, %v885_v51 }
 0x119   : > { %507 = vrot.lane.b32.xlu1 %v5692_v32, %s5272_s23  ;;  %1161 = vrot.lane.b32.xlu0 %v5820_v6, %s5283_s20 }
 0x11a   : > { %1330 = vmatprep.subr.mxu0 %v900_v11  ;;  %v936_v11 = vsel %vm933_vm2, %v920_v59, %v922_v63 }
 0x11b   : > { %v881_v60 = vpop.permute.xlu1 %880  ;;  %v5827_v54 = vpop.permute.xlu0 %923 }
 0x11c   : > { %8208 = vst [vmem:[#allocation16_spill] sm:$0xff] %v5827_v54  ;;  %v899_v58 = vsel %vm898_vm4, %v881_v60, %v883_v57  ;;  %v937_v55 = vsel %vm933_vm2, %v922_v63, %v5827_v54  ;;  %v5840_v57 = vsel %vm653_vm5, %v5621_v15, %v5619_v14  ;;  %v5852_v63 = vsel %vm688_vm3, %v5603_v10, %v5627_v16 }
 0x11d   : > { %546 = vrot.lane.b32.xlu1 %v8209_v13, %s5271_s26  ;;  %509 = vrot.lane.b32.xlu0 %v5703_v35, %s5272_s23  ;;  %s8215_s26 = smov 32  }
 0x11e   : > { %1331 = vmatpush1.msra.mxu0 %v899_v58  ;;  %1399 = vmatprep.subr.mxu1 %v937_v55  ;;  %v5857_v55 = vsel %vm653_vm5, %v5619_v14, %v5629_v17  ;;  %v5869_v14 = vsel %vm688_vm3, %v5627_v16, %v5637_v19 }
 0x11f   : > { %1400 = vmatpush1.msra.mxu1 %v936_v11  ;;  %v850_v6 = vpop.permute.xlu1 %849  ;;  %v848_v62 = vpop.permute.xlu0 %847  ;;  %8211 = vst [vmem:[#allocation18_spill] sm:$0xff] %v5869_v14 }
 0x120   : > { %v865_v60 = vsel %vm863_vm6, %v848_v62, %v850_v6 }
 0x121   : > { %1119 = vrot.lane.b32.xlu1 %v5840_v57, %s5283_s20  ;;  %1135 = vrot.lane.b32.xlu0 %v5595_v8, %s5283_s20 }
 0x122   : > { %1332 = vmatprep.subr.mxu0 %v865_v60 }
 0x123   : > { %v5847_v58 = vpop.permute.xlu1 %888  ;;  %v887_v59 = vpop.permute.xlu0 %886 }
 0x124   : > { %8210 = vst [vmem:[#allocation17_spill] sm:$0xff] %v5847_v58  ;;  %v902_v11 = vsel %vm898_vm4, %v887_v59, %v5847_v58  ;;  %v901_v54 = vsel %vm898_vm4, %v885_v51, %v887_v59 }
 0x125   : > { %1141 = vrot.lane.b32.xlu1 %v5852_v63, %s5283_s20  ;;  %1121 = vrot.lane.b32.xlu0 %v5857_v55, %s5283_s20 }
 0x126   : > { %1401 = vmatprep.subr.mxu1 %v902_v11  ;;  %v5886_v11 = vsel %vm618_vm8, %v5635_v18, %v5645_v21 }
 0x127   : > { %1402 = vmatpush1.msra.mxu1 %v901_v54  ;;  %v813_v10 = vpop.permute.xlu1 %812  ;;  %v846_v60 = vpop.permute.xlu0 %845 }
 0x128   : > { %v864_v12 = vsel %vm863_vm6, %v846_v60, %v848_v62 }
 0x129   : > { %472 = vrot.lane.b32.xlu1 %v5692_v32, %s8212_s28  ;;  %1143 = vrot.lane.b32.xlu0 %v5869_v14, %s5283_s20 }
 0x12a   : > { %1333 = vmatpush1.msra.mxu0 %v864_v12 }
 0x12b   : > { %v852_v51 = vpop.permute.xlu1 %851  ;;  %v815_v59 = vpop.permute.xlu0 %814 }
 0x12c   : > { %v830_v54 = vsel %vm828_vm7, %v813_v10, %v815_v59 }
 0x12d   : > { %511 = vrot.lane.b32.xlu1 %v8209_v13, %s5272_s23  ;;  %474 = vrot.lane.b32.xlu0 %v5703_v35, %s8212_s28 }
 0x12e   : > { %1334 = vmatprep.subr.mxu0 %v830_v54  ;;  %v866_v54 = vsel %vm863_vm6, %v850_v6, %v852_v51 }
 0x12f   : > { %v811_v16 = vpop.permute.xlu1 %810  ;;  %v5881_v62 = vpop.permute.xlu0 %853 }
 0x130   : > { %8213 = vst [vmem:[#allocation19_spill] sm:$0xff] %v5881_v62  ;;  %v829_v12 = vsel %vm828_vm7, %v811_v16, %v813_v10  ;;  %v867_v60 = vsel %vm863_vm6, %v852_v51, %v5881_v62  ;;  %v5899_v10 = vsel %vm653_vm5, %v5629_v17, %v5653_v23  ;;  %v5904_v16 = vsel %vm618_vm8, %v5645_v21, %v5643_v20 }
 0x131   : > { %1101 = vrot.lane.b32.xlu1 %v5886_v11, %s5283_s20  ;;  %1117 = vrot.lane.b32.xlu0 %v5621_v15, %s5283_s20  ;;  %v5916_v17 = vsel %vm653_vm5, %v5653_v23, %v5651_v22  ;;  %v1002_v23 = vsel %vm1001_vm10, %v5669_v27, %v5667_v26 }
 0x132   : > { %1335 = vmatpush1.msra.mxu0 %v829_v12  ;;  %1403 = vmatprep.subr.mxu1 %v867_v60  ;;  %8214 = vst [vmem:[#allocation20_spill] sm:$0xff] %v5916_v17 }
 0x133   : > { %1404 = vmatpush1.msra.mxu1 %v866_v54  ;;  %v780_v14 = vpop.permute.xlu1 %779  ;;  %v778_v58 = vpop.permute.xlu0 %777 }
 0x134   : > { %v795_v62 = vsel %vm793_vm9, %v778_v58, %v780_v14 }
 0x135   : > { %1123 = vrot.lane.b32.xlu1 %v5899_v10, %s5283_s20  ;;  %1103 = vrot.lane.b32.xlu0 %v5904_v16, %s5283_s20 }
 0x136   : > { %1336 = vmatprep.subr.mxu0 %v795_v62 }
 0x137   : > { %v5911_v6 = vpop.permute.xlu1 %818  ;;  %v817_v51 = vpop.permute.xlu0 %816 }
 0x138   : > { %v832_v21 = vsel %vm828_vm7, %v817_v51, %v5911_v6  ;;  %v831_v12 = vsel %vm828_vm7, %v815_v59, %v817_v51 }
 0x139   : > { %476 = vrot.lane.b32.xlu1 %v8209_v13, %s8212_s28  ;;  %1125 = vrot.lane.b32.xlu0 %v5916_v17, %s5283_s20 }
 0x13a   : > { %1405 = vmatprep.subr.mxu1 %v832_v21  ;;  %v622_v21 = vsel %vm618_vm8, %v5643_v20, %v5661_v25 }
 0x13b   : > { %1406 = vmatpush1.msra.mxu1 %v831_v12  ;;  %v743_v62 = vpop.permute.xlu1 %742  ;;  %v776_v60 = vpop.permute.xlu0 %775  ;;  %v1003_v12 = vsel %vm1001_vm10, %v5667_v26, %v5677_v29 }
 0x13c   : > { %v794_v54 = vsel %vm793_vm9, %v776_v60, %v778_v58 }
 0x13d   : > { %1083 = vrot.lane.b32.xlu1 %v1002_v23, %s5283_s20  ;;  %1099 = vrot.lane.b32.xlu0 %v5635_v18, %s5283_s20  ;;  %v5946_v23 = vsel %vm618_vm8, %v5661_v25, %v5659_v24 }
 0x13e   : > { %1337 = vmatpush1.msra.mxu0 %v794_v54  ;;  %v5962_v54 = vsel %vm548_vm12, %v5685_v31, %v5683_v30 }
 0x13f   : > { %v782_v59 = vpop.permute.xlu1 %781  ;;  %v745_v51 = vpop.permute.xlu0 %744 }
 0x140   : > { %v760_v17 = vsel %vm8168_vm11, %v743_v62, %v745_v51 }
 0x141   : > { %1105 = vrot.lane.b32.xlu1 %v622_v21, %s5283_s20  ;;  %1085 = vrot.lane.b32.xlu0 %v1003_v12, %s5283_s20 }
 0x142   : > { %1338 = vmatprep.subr.mxu0 %v760_v17  ;;  %v796_v17 = vsel %vm793_vm9, %v780_v14, %v782_v59 }
 0x143   : > { %v741_v58 = vpop.permute.xlu1 %740  ;;  %v5941_v60 = vpop.permute.xlu0 %783 }
 0x144   : > { %v759_v20 = vsel %vm8168_vm11, %v741_v58, %v743_v62  ;;  %v797_v26 = vsel %vm793_vm9, %v782_v59, %v5941_v60 }
 0x145   : > { %1081 = vrot.lane.b32.xlu1 %v5669_v27, %s5283_s20  ;;  %1107 = vrot.lane.b32.xlu0 %v5946_v23, %s5283_s20  ;;  %v550_v27 = vsel %vm548_vm12, %v5675_v28, %v5685_v31  ;;  %v1005_v31 = vsel %vm1001_vm10, %v5696_v34, %v5694_v33 }
 0x146   : > { %1339 = vmatpush1.msra.mxu0 %v759_v20  ;;  %1407 = vmatprep.subr.mxu1 %v797_v26 }
 0x147   : > { %1340 = vmatprep.subr.mxu0 %v5766_v53  ;;  %1408 = vmatpush1.msra.mxu1 %v796_v17  ;;  %v5957_v25 = vpop.permute.xlu1 %748  ;;  %v747_v62 = vpop.permute.xlu0 %746 }
 0x148   : > { %v762_v12 = vsel %vm8168_vm11, %v747_v62, %v5957_v25  ;;  %v761_v14 = vsel %vm8168_vm11, %v745_v51, %v747_v62  ;;  %v1004_v51 = vsel %vm1001_vm10, %v5677_v29, %v5696_v34  ;;  %v515_v29 = vsel %vm513_vm13, %v5705_v36, %v5715_v39  ;;  %v6071_v62 = vld [vmem:[%s8131_s1 + $0x8] sm:$0xff] }
 0x149   : > { %1067 = vrot.lane.b32.xlu1 %v5962_v54, %s5283_s20  ;;  %1065 = vrot.lane.b32.xlu0 %v550_v27, %s5283_s20  ;;  %vm1171_vm11 = vcmask 252928  }
 0x14a   : > { %1409 = vmatprep.subr.mxu1 %v762_v12 }
 0x14b   : > { %1410 = vmatpush1.msra.mxu1 %v761_v14  ;;  %v671_v53 = vpop.permute.xlu1 %670  ;;  %v706_v59 = vpop.permute.xlu0 %705 }
 0x14c   : > { %1411 = vmatprep.subr.mxu1 %v5805_v61  ;;  %v724_v58 = vsel %vm723_vm0, %v706_v59, %v5589_v7  ;;  %v689_v7 = vsel %vm688_vm3, %v671_v53, %v5595_v8  ;;  %v549_v8 = vsel %vm548_vm12, %v5707_v37, %v5675_v28  ;;  %v552_v28 = vsel %vm548_vm12, %v5683_v30, %v5723_v41 }
 0x14d   : > { %1412 = vmatpush1.msra.mxu1 %v5775_v56  ;;  %1089 = vrot.lane.b32.xlu1 %v1005_v31, %s5283_s20  ;;  %v516_v37 = vsel %vm513_vm13, %v5715_v39, %v5713_v38  ;;  %v6026_v30 = vsel %vm548_vm12, %v5723_v41, %v5721_v40  ;;  %v479_v41 = vsel %vm478_vm15, %v5755_v50, %v5729_v43 }
 0x14e   : > { %1087 = vrot.lane.b32.xlu0 %v1004_v51, %s5283_s20  ;;  %1341 = vmatpush1.msra.mxu0 %v724_v58  ;;  %v517_v50 = vsel %vm513_vm13, %v5713_v38, %v5747_v48  ;;  %v482_v38 = vsel %vm478_vm15, %v5737_v45, %v5753_v49 }
 0x14f   : > { %1413 = vmatprep.subr.mxu1 %v5852_v63  ;;  %1342 = vmatprep.subr.mxu0 %v5793_v9  ;;  %v601_v61 = vpop.permute.xlu1 %600  ;;  %v636_v20 = vpop.permute.xlu0 %635 }
 0x150   : > { %1414 = vmatpush1.msra.mxu1 %v5810_v42  ;;  %1343 = vmatpush1.msra.mxu0 %v689_v7  ;;  %v654_v56 = vsel %vm653_vm5, %v636_v20, %v5621_v15  ;;  %v619_v42 = vsel %vm618_vm8, %v601_v61, %v5635_v18 }
 0x151   : > { %1415 = vmatprep.subr.mxu1 %v5899_v10  ;;  %1344 = vmatprep.subr.mxu0 %v5840_v57 }
 0x152   : > { %1416 = vmatpush1.msra.mxu1 %v5857_v55  ;;  %1047 = vrot.lane.b32.xlu1 %v515_v29, %s5283_s20  ;;  %v514_v55 = vsel %vm513_vm13, %v5731_v44, %v5705_v36  ;;  %v481_v36 = vsel %vm478_vm15, %v5739_v46, %v5737_v45  ;;  %v480_v44 = vsel %vm478_vm15, %v5729_v43, %v5739_v46 }
 0x153   : > { %1063 = vrot.lane.b32.xlu0 %v549_v8, %s5283_s20  ;;  %1345 = vmatpush1.msra.mxu0 %v654_v56  ;;  %v570_v15 = vpop.permute.xlu1 %569  ;;  %v568_v34 = vpop.permute.xlu0 %567  ;;  %v6053_v46 = vsel %vm513_vm13, %v5747_v48, %v5745_v47 }
 0x154   : > { %1417 = vmatprep.subr.mxu1 %v622_v21  ;;  %1346 = vmatprep.subr.mxu0 %v5886_v11  ;;  %v585_v9 = vsel %vm8167_vm14, %v568_v34, %v570_v15 }
 0x155   : > { %1418 = vmatpush1.msra.mxu1 %v5904_v16  ;;  %1347 = vmatpush1.msra.mxu0 %v619_v42 }
 0x156   : > { %1069 = vrot.lane.b32.xlu1 %v552_v28, %s5283_s20  ;;  %1348 = vmatprep.subr.mxu0 %v585_v9 }
 0x157   : > { %1049 = vrot.lane.b32.xlu0 %v516_v37, %s5283_s20  ;;  %v6016_v57 = vpop.permute.xlu1 %717  ;;  %v566_v18 = vpop.permute.xlu0 %565 }
 0x158   : > { %v584_v63 = vsel %vm8167_vm14, %v566_v18, %v568_v34 }
 0x159   : > { %1349 = vmatpush1.msra.mxu0 %v584_v63 }
 0x15a   : > { %1045 = vrot.lane.b32.xlu1 %v514_v55, %s5283_s20  ;;  %1350 = vmatprep.subr.mxu0 %v550_v27  ;;  %v6101_v27 = vsel %vm478_vm15, %v5753_v49, %v5761_v52  ;;  %v5284_v49 = vmov 0  }
 0x15b   : > { %1071 = vrot.lane.b32.xlu0 %v6026_v30, %s5283_s20  ;;  %v572_v39 = vpop.permute.xlu1 %571  ;;  %1351 = vmatpush1.msra.mxu0 %v549_v8  ;;  %v6030_v11 = vpop.permute.xlu0 %719 }
 0x15c   : > { %1352 = vmatprep.subr.mxu0 %v515_v29  ;;  %v586_v43 = vsel %vm8167_vm14, %v570_v15, %v572_v39  ;;  %5059 = vset.pattern.permute.xlu0 %v5284_v49 }
 0x15d   : > { %1353 = vmatpush1.msra.mxu0 %v514_v55  ;;  %5060 = vset.pattern.permute.xlu1 %v5284_v49 }
 0x15e   : > { %1031 = vrot.lane.b32.xlu1 %v481_v36, %s5283_s20  ;;  %1354 = vmatprep.subr.mxu0 %v480_v44 }
 0x15f   : > { %1029 = vrot.lane.b32.xlu0 %v480_v44, %s5283_s20  ;;  %v6043_v10 = vpop.permute.xlu1 %682  ;;  %1355 = vmatpush1.msra.mxu0 %v479_v41  ;;  %v6045_v16 = vpop.permute.xlu0 %573 }
 0x160   : > { %v587_v21 = vsel %vm8167_vm14, %v572_v39, %v6045_v16  ;;  %1356 = vmatprep.subr.mxu0 %v5457_v1  ;;  %vm1322_vm14 = vcmask 588800  }
 0x161   : > { %1419 = vmatprep.subr.mxu1 %v587_v21  ;;  %1357 = vmatpush1.msra.mxu0 %v5525_v5 }
 0x162   : > { %1053 = vrot.lane.b32.xlu1 %v6053_v46, %s5283_s20  ;;  %1420 = vmatpush1.msra.mxu1 %v586_v43 }
 0x163   : > { %1051 = vrot.lane.b32.xlu0 %v517_v50, %s5283_s20  ;;  %v6063_v26 = vpop.permute.xlu1 %721  ;;  %1421 = vmatprep.subr.mxu1 %v552_v28  ;;  %v6065_v17 = vpop.permute.xlu0 %684 }
 0x164   : > { %1422 = vmatpush1.msra.mxu1 %v5962_v54  ;;  %4400 = vmatprep.mubr.msk.f32.mxu0 %vm1322_vm14, %v6071_v62 }
 0x165   : > { %1423 = vmatprep.subr.mxu1 %v517_v50  ;;  %4401 = vmatprep.mubr.msk.f32.mxu1 %vm1322_vm14, %v6071_v62 }
 0x166   : > { %1011 = vrot.lane.b32.xlu1 %v5457_v1, %s5283_s20  ;;  %1424 = vmatpush1.msra.mxu1 %v516_v37 }
 0x167   : > { %1027 = vrot.lane.b32.xlu0 %v479_v41, %s5283_s20  ;;  %v6079_v48 = vpop.permute.xlu1 %649  ;;  %1425 = vmatprep.subr.mxu1 %v482_v38  ;;  %v6081_v54 = vpop.permute.xlu0 %647 }
 0x168   : > { %1426 = vmatpush1.msra.mxu1 %v481_v36 }
 0x169   : > { %1427 = vmatprep.subr.mxu1 %v5454_v0 }
 0x16a   : > { %1033 = vrot.lane.b32.xlu1 %v482_v38, %s5283_s20  ;;  %1428 = vmatpush1.msra.mxu1 %v5464_v2 }
 0x16b   : > { %1013 = vrot.lane.b32.xlu0 %v5464_v2, %s5283_s20  ;;  %v6092_v1 = vpop.permute.xlu1 %612  ;;  %v6094_v45 = vpop.permute.xlu0 %686 }
 0x16e   : > { %1009 = vrot.lane.b32.xlu1 %v5525_v5, %s5283_s20 }
 0x16f   : > { %1035 = vrot.lane.b32.xlu0 %v6101_v27, %s5283_s20  ;;  %v6105_v12 = vpop.permute.xlu1 %651  ;;  %v6107_v14 = vpop.permute.xlu0 %614 }
 0x172   : > { %962 = vrot.lane.b32.xlu1 %v5692_v32, %s8215_s26 }
 0x173   : > { %960 = vrot.lane.b32.xlu0 %v5475_v3, %s8215_s26  ;;  %v6113_v2 = vpop.permute.xlu1 %995  ;;  %v6115_v5 = vpop.permute.xlu0 %616 }
 0x176   : > { %1017 = vrot.lane.b32.xlu1 %v5478_v4, %s5283_s20 }
 0x177   : > { %1015 = vrot.lane.b32.xlu0 %v5454_v0, %s5283_s20  ;;  %v1156_v53 = vpop.permute.xlu1 %1155  ;;  %v6121_v59 = vpop.permute.xlu0 %997 }
 0x17a   : > { %927 = vrot.lane.b32.xlu1 %v5692_v32, %s8216_s29 }
 0x17b   : > { %925 = vrot.lane.b32.xlu0 %v5475_v3, %s8216_s29  ;;  %v6127_v31 = vpop.permute.xlu1 %542  ;;  %v1158_v58 = vpop.permute.xlu0 %1157 }
 0x17c   : > { %v1237_v4 = vsel %vm1171_vm11, %v1156_v53, %v1158_v58 }
 0x17d   : > { %1372 = vmatprep.subr.mxu0 %v1237_v4 }
 0x17e   : > { %966 = vrot.lane.b32.xlu1 %v8209_v13, %s8215_s26 }
 0x17f   : > { %964 = vrot.lane.b32.xlu0 %v5703_v35, %s8215_s26  ;;  %v6134_v0 = vpop.permute.xlu1 %999  ;;  %v6136_v51 = vpop.permute.xlu0 %544  ;;  %s8218_s26 = smov 62  }
 0x182   : > { %892 = vrot.lane.b32.xlu1 %v5692_v32, %s8217_s19 }
 0x183   : > { %890 = vrot.lane.b32.xlu0 %v5475_v3, %s8217_s19  ;;  %v1138_v61 = vpop.permute.xlu1 %1137  ;;  %v1154_v7 = vpop.permute.xlu0 %1153 }
 0x184   : > { %v1236_v20 = vsel %vm1171_vm11, %v1154_v7, %v1156_v53 }
 0x185   : > { %1373 = vmatpush2.msra.mxu0 %v1236_v20 }
 0x186   : > { %931 = vrot.lane.b32.xlu1 %v8209_v13, %s8216_s29 }
 0x187   : > { %929 = vrot.lane.b32.xlu0 %v5703_v35, %s8216_s29  ;;  %v1160_v56 = vpop.permute.xlu1 %1159  ;;  %v1140_v29 = vpop.permute.xlu0 %1139 }
 0x188   : > { %v1229_v8 = vsel %vm1171_vm11, %v1138_v61, %v1140_v29  ;;  %v1238_v9 = vsel %vm1171_vm11, %v1158_v58, %v1160_v56 }
 0x189   : > { %1374 = vmatprep.subr.mxu0 %v1229_v8 }
 0x18a   : > { %857 = vrot.lane.b32.xlu1 %v5692_v32, %s8218_s26 }
 0x18b   : > { %855 = vrot.lane.b32.xlu0 %v5475_v3, %s8218_s26  ;;  %v6152_v15 = vpop.permute.xlu1 %507  ;;  %v6154_v34 = vpop.permute.xlu0 %1161 }
 0x18c   : > { %v1239_v42 = vsel %vm1171_vm11, %v1160_v56, %v6154_v34 }
 0x18d   : > { %1443 = vmatprep.subr.mxu1 %v1239_v42  ;;  %v6220_v42 = vld [vmem:[%s5451_s18 + $0x28] sm:$0xff] }
 0x18e   : > { %896 = vrot.lane.b32.xlu1 %v8209_v13, %s8217_s19  ;;  %1444 = vmatpush2.msra.mxu1 %v1238_v9 }
 0x18f   : > { %894 = vrot.lane.b32.xlu0 %v5703_v35, %s8217_s19  ;;  %v6163_v28 = vpop.permute.xlu1 %546  ;;  %v6165_v37 = vpop.permute.xlu0 %509  ;;  %s8219_s19 = smov 92  }
 0x192   : > { %822 = vrot.lane.b32.xlu1 %v5692_v32, %s5278_s15 }
 0x193   : > { %820 = vrot.lane.b32.xlu0 %v5475_v3, %s5278_s15  ;;  %v1120_v18 = vpop.permute.xlu1 %1119  ;;  %v1136_v63 = vpop.permute.xlu0 %1135 }
 0x194   : > { %v1228_v55 = vsel %vm1171_vm11, %v1136_v63, %v1138_v61 }
 0x195   : > { %1375 = vmatpush2.msra.mxu0 %v1228_v55 }
 0x196   : > { %861 = vrot.lane.b32.xlu1 %v8209_v13, %s8218_s26 }
 0x197   : > { %859 = vrot.lane.b32.xlu0 %v5703_v35, %s8218_s26  ;;  %v1142_v39 = vpop.permute.xlu1 %1141  ;;  %v1122_v36 = vpop.permute.xlu0 %1121 }
 0x198   : > { %v1221_v44 = vsel %vm1171_vm11, %v1120_v18, %v1122_v36  ;;  %v1230_v50 = vsel %vm1171_vm11, %v1140_v29, %v1142_v39 }
 0x199   : > { %1376 = vmatprep.subr.mxu0 %v1221_v44  ;;  %v8220_v44 = vld [vmem:[#allocation13_spill] sm:$0xff] }
 0x19a   : > { %787 = vrot.lane.b32.xlu1 %v5692_v32, %s5279_s30 }
 0x19b   : > { %785 = vrot.lane.b32.xlu0 %v5475_v3, %s5279_s30  ;;  %v6181_v41 = vpop.permute.xlu1 %472  ;;  %v6183_v21 = vpop.permute.xlu0 %1143 }
 0x19c   : > { %v1231_v43 = vsel %vm1171_vm11, %v1142_v39, %v6183_v21 }
 0x19d   : > { %1445 = vmatprep.subr.mxu1 %v1231_v43  ;;  %v6240_v43 = vsel %vm723_vm0, %v8220_v44, %v6016_v57  ;;  %v6297_v44 = vsel %vm618_vm8, %v5659_v24, %v6092_v1  ;;  %v6312_v24 = vsel %vm653_vm5, %v6079_v48, %v6105_v12 }
 0x19e   : > { %826 = vrot.lane.b32.xlu1 %v8209_v13, %s5278_s15  ;;  %1446 = vmatpush2.msra.mxu1 %v1230_v50 }
 0x19f   : > { %824 = vrot.lane.b32.xlu0 %v5703_v35, %s5278_s15  ;;  %v6192_v38 = vpop.permute.xlu1 %511  ;;  %v6194_v49 = vpop.permute.xlu0 %474  ;;  %s8169_s15 = smov 66  }
 0x1a2   : > { %752 = vrot.lane.b32.xlu1 %v5692_v32, %s8219_s19 }
 0x1a3   : > { %750 = vrot.lane.b32.xlu0 %v5475_v3, %s8219_s19  ;;  %v1102_v53 = vpop.permute.xlu1 %1101  ;;  %v1118_v58 = vpop.permute.xlu0 %1117 }
 0x1a4   : > { %v1220_v4 = vsel %vm1171_vm11, %v1118_v58, %v1120_v18 }
 0x1a5   : > { %1377 = vmatpush2.msra.mxu0 %v1220_v4  ;;  %v6252_v4 = vsel %vm688_vm3, %v6043_v10, %v6065_v17 }
 0x1a6   : > { %791 = vrot.lane.b32.xlu1 %v8209_v13, %s5279_s30 }
 0x1a7   : > { %789 = vrot.lane.b32.xlu0 %v5703_v35, %s5279_s30  ;;  %v1124_v61 = vpop.permute.xlu1 %1123  ;;  %v1104_v7 = vpop.permute.xlu0 %1103 }
 0x1a8   : > { %v1213_v20 = vsel %vm1171_vm11, %v1102_v53, %v1104_v7  ;;  %v1222_v8 = vsel %vm1171_vm11, %v1122_v36, %v1124_v61  ;;  %v6233_v36 = vsel %vm723_vm0, %v6016_v57, %v6030_v11 }
 0x1a9   : > { %1378 = vmatprep.subr.mxu0 %v1213_v20 }
 0x1aa   : > { %756 = vrot.lane.b32.xlu1 %v8209_v13, %s8219_s19 }
 0x1ab   : > { %754 = vrot.lane.b32.xlu0 %v5703_v35, %s8219_s19  ;;  %v6210_v3 = vpop.permute.xlu1 %476  ;;  %v6212_v56 = vpop.permute.xlu0 %1125  ;;  %s5288_s19 = smov 122  }
 0x1ac   : > { %v1223_v29 = vsel %vm1171_vm11, %v1124_v61, %v6212_v56  ;;  %v6260_v61 = vsel %vm688_vm3, %v5637_v19, %v6043_v10 }
 0x1ad   : > { %1447 = vmatprep.subr.mxu1 %v1223_v29 }
 0x1ae   : > { %577 = vrot.lane.b32.xlu1 %v5692_v32, %s5281_s17  ;;  %1448 = vmatpush2.msra.mxu1 %v1222_v8  ;;  %v5039_v8 = vpack.i.bf16 %v6094_v45, %v6063_v26 }
 0x1af   : > { %575 = vrot.lane.b32.xlu0 %v6220_v42, %s5281_s17  ;;  %v1084_v9 = vpop.permute.xlu1 %1083  ;;  %v1100_v18 = vpop.permute.xlu0 %1099 }
 0x1b0   : > { %v1212_v63 = vsel %vm1171_vm11, %v1100_v18, %v1102_v53  ;;  %v6280_v18 = vsel %vm653_vm5, %v6081_v54, %v6079_v48 }
 0x1b1   : > { %1379 = vmatpush2.msra.mxu0 %v1212_v63 }
 0x1b2   : > { %581 = vrot.lane.b32.xlu1 %v8209_v13, %s5281_s17 }
 0x1b3   : > { %579 = vrot.lane.b32.xlu0 %v5703_v35, %s5281_s17  ;;  %v1106_v55 = vpop.permute.xlu1 %1105  ;;  %v1086_v39 = vpop.permute.xlu0 %1085 }
 0x1b4   : > { %v1205_v32 = vsel %vm1171_vm11, %v1084_v9, %v1086_v39  ;;  %v1214_v57 = vsel %vm1171_vm11, %v1104_v7, %v1106_v55  ;;  %v6271_v7 = vsel %vm723_vm0, %v6030_v11, %v6063_v26  ;;  %v6290_v11 = vsel %vm653_vm5, %v5651_v22, %v6081_v54 }
 0x1b5   : > { %1380 = vmatprep.subr.mxu0 %v1205_v32  ;;  %v6304_v22 = vsel %vm688_vm3, %v6065_v17, %v6094_v45  ;;  %v6319_v17 = vsel %vm618_vm8, %v6092_v1, %v6107_v14  ;;  %vm8225_vm0 = vcmask 752640   ;;  %vm8232_vm5 = vcmask 1014784  }
 0x1b6   : > { %1165 = vrot.lane.b32.xlu1 %v6233_v36, %s5283_s20  ;;  %vm8230_vm3 = vmmov %vm8225_vm0 }
 0x1b7   : > { %1163 = vrot.lane.b32.xlu0 %v6240_v43, %s5283_s20  ;;  %v1082_v35 = vpop.permute.xlu1 %1081  ;;  %v6244_v50 = vpop.permute.xlu0 %1107 }
 0x1b8   : > { %v1204_v53 = vsel %vm1171_vm11, %v1082_v35, %v1084_v9  ;;  %v1215_v58 = vsel %vm1171_vm11, %v1106_v55, %v6244_v50 }
 0x1b9   : > { %1381 = vmatpush2.msra.mxu0 %v1204_v53  ;;  %1449 = vmatprep.subr.mxu1 %v1215_v58  ;;  %v5044_v58 = vpack.i.bf16 %v6115_v5, %v6105_v12 }
 0x1ba   : > { %1147 = vrot.lane.b32.xlu1 %v6252_v4, %s5283_s20  ;;  %1450 = vmatpush2.msra.mxu1 %v1214_v57  ;;  %v1006_v57 = vsel %vm1001_vm10, %v5694_v33, %v6113_v2  ;;  %v6340_v33 = vsel %vm618_vm8, %v6107_v14, %v6115_v5  ;;  %v6354_v14 = vsel %vm548_vm12, %v6127_v31, %v6136_v51 }
 0x1bb   : > { %1145 = vrot.lane.b32.xlu0 %v6260_v61, %s5283_s20  ;;  %v1068_v20 = vpop.permute.xlu1 %1067  ;;  %v1066_v29 = vpop.permute.xlu0 %1065 }
 0x1bc   : > { %v1197_v9 = vsel %vm1171_vm11, %v1066_v29, %v1068_v20 }
 0x1bd   : > { %1382 = vmatprep.subr.mxu0 %v1197_v9 }
 0x1be   : > { %5040 = vrot.lane.b32.xlu1 %v5039_v8, %s5283_s20 }
 0x1bf   : > { %1167 = vrot.lane.b32.xlu0 %v6271_v7, %s5283_s20  ;;  %v6275_v19 = vpop.permute.xlu1 %1089 }
 0x1c0   : > { %v1088_v10 = vpop.permute.xlu0 %1087 }
 0x1c1   : > { %v1207_v63 = vsel %vm1171_vm11, %v1088_v10, %v6275_v19  ;;  %v1206_v55 = vsel %vm1171_vm11, %v1086_v39, %v1088_v10  ;;  %v1007_v10 = vsel %vm1001_vm10, %v6113_v2, %v6121_v59  ;;  %v6361_v2 = vsel %vm548_vm12, %v5721_v40, %v6127_v31 }
 0x1c2   : > { %1129 = vrot.lane.b32.xlu1 %v6280_v18, %s5283_s20  ;;  %1451 = vmatprep.subr.mxu1 %v1207_v63  ;;  %v1008_v40 = vsel %vm1001_vm10, %v6121_v59, %v6134_v0  ;;  %vm8234_vm10 = vmmov %vm8232_vm5 }
 0x1c3   : > { %1127 = vrot.lane.b32.xlu0 %v6290_v11, %s5283_s20  ;;  %1452 = vmatpush2.msra.mxu1 %v1206_v55 }
 0x1c4   : > { %v1048_v26 = vpop.permute.xlu1 %1047 }
 0x1c5   : > { %v1064_v32 = vpop.permute.xlu0 %1063 }
 0x1c6   : > { %1109 = vrot.lane.b32.xlu1 %v6297_v44, %s5283_s20  ;;  %v1196_v54 = vsel %vm1171_vm11, %v1064_v32, %v1066_v29  ;;  %v5049_v32 = vpack.i.bf16 %v6163_v28, %v6134_v0 }
 0x1c7   : > { %1149 = vrot.lane.b32.xlu0 %v6304_v22, %s5283_s20  ;;  %1383 = vmatpush2.msra.mxu0 %v1196_v54 }
 0x1c8   : > { %v1070_v39 = vpop.permute.xlu1 %1069 }
 0x1c9   : > { %v1050_v35 = vpop.permute.xlu0 %1049  ;;  %v1198_v8 = vsel %vm1171_vm11, %v1068_v20, %v1070_v39 }
 0x1ca   : > { %1131 = vrot.lane.b32.xlu1 %v6312_v24, %s5283_s20  ;;  %v1189_v45 = vsel %vm1171_vm11, %v1048_v26, %v1050_v35 }
 0x1cb   : > { %1111 = vrot.lane.b32.xlu0 %v6319_v17, %s5283_s20  ;;  %1384 = vmatprep.subr.mxu0 %v1189_v45 }
 0x1cc   : > { %v1046_v53 = vpop.permute.xlu1 %1045 }
 0x1cd   : > { %v6326_v48 = vpop.permute.xlu0 %1071  ;;  %v1188_v29 = vsel %vm1171_vm11, %v1046_v53, %v1048_v26  ;;  %v6379_v53 = vsel %vm513_vm13, %v6152_v15, %v6165_v37 }
 0x1ce   : > { %1091 = vrot.lane.b32.xlu1 %v1006_v57, %s5283_s20  ;;  %1385 = vmatpush2.msra.mxu0 %v1188_v29  ;;  %v1199_v1 = vsel %vm1171_vm11, %v1070_v39, %v6326_v48  ;;  %v6396_v29 = vsel %vm478_vm15, %v5761_v52, %v6181_v41 }
 0x1cf   : > { %5045 = vrot.lane.b32.xlu0 %v5044_v58, %s5283_s20  ;;  %1453 = vmatprep.subr.mxu1 %v1199_v1  ;;  %v6384_v58 = vsel %vm513_vm13, %v5745_v47, %v6152_v15  ;;  %v6402_v15 = vld [vmem:[%s8131_s1] sm:$0xff]  ;;  %v6409_v1 = vsel %vm548_vm12, %v6136_v51, %v6163_v28  ;;  %v6420_v51 = vsel %vm513_vm13, %v6165_v37, %v6192_v38  ;;  %vm8235_vm12 = vmmov %vm8232_vm5 }
 0x1d0   : > { %1454 = vmatpush2.msra.mxu1 %v1198_v8  ;;  %v1032_v12 = vpop.permute.xlu1 %1031  ;;  %v6429_v28 = vsel %vm478_vm15, %v6181_v41, %v6194_v49 }
 0x1d1   : > { %v1030_v9 = vpop.permute.xlu0 %1029 }
 0x1d2   : > { %1113 = vrot.lane.b32.xlu1 %v6340_v33, %s5283_s20  ;;  %v1181_v63 = vsel %vm1171_vm11, %v1030_v9, %v1032_v12 }
 0x1d3   : > { %1093 = vrot.lane.b32.xlu0 %v1007_v10, %s5283_s20  ;;  %1386 = vmatprep.subr.mxu0 %v1181_v63  ;;  %v8221_v63 = vld [vmem:[#allocation14_spill] sm:$0xff] }
 0x1d4   : > { %v6349_v20 = vpop.permute.xlu1 %1053 }
 0x1d5   : > { %v1052_v55 = vpop.permute.xlu0 %1051 }
 0x1d6   : > { %1075 = vrot.lane.b32.xlu1 %v6354_v14, %s5283_s20  ;;  %v1191_v5 = vsel %vm1171_vm11, %v1052_v55, %v6349_v20  ;;  %v1190_v26 = vsel %vm1171_vm11, %v1050_v35, %v1052_v55 }
 0x1d7   : > { %1073 = vrot.lane.b32.xlu0 %v6361_v2, %s5283_s20  ;;  %1455 = vmatprep.subr.mxu1 %v1191_v5 }
 0x1d8   : > { %1456 = vmatpush2.msra.mxu1 %v1190_v26  ;;  %v1012_v54 = vpop.permute.xlu1 %1011  ;;  %v5054_v26 = vpack.i.bf16 %v6210_v3, %v6192_v38 }
 0x1d9   : > { %v1028_v39 = vpop.permute.xlu0 %1027 }
 0x1da   : > { %5050 = vrot.lane.b32.xlu1 %v5049_v32, %s5283_s20  ;;  %v1180_v31 = vsel %vm1171_vm11, %v1028_v39, %v1030_v9 }
 0x1db   : > { %1095 = vrot.lane.b32.xlu0 %v1008_v40, %s5283_s20  ;;  %1387 = vmatpush2.msra.mxu0 %v1180_v31  ;;  %v6450_v40 = vsel %vm478_vm15, %v6194_v49, %v6210_v3 }
 0x1dc   : > { %v1034_v35 = vpop.permute.xlu1 %1033 }
 0x1dd   : > { %v1014_v45 = vpop.permute.xlu0 %1013  ;;  %v1182_v8 = vsel %vm1171_vm11, %v1032_v12, %v1034_v35 }
 0x1de   : > { %1057 = vrot.lane.b32.xlu1 %v6379_v53, %s5283_s20  ;;  %v1173_v59 = vsel %vm1171_vm11, %v1012_v54, %v1014_v45 }
 0x1df   : > { %1055 = vrot.lane.b32.xlu0 %v6384_v58, %s5283_s20  ;;  %1388 = vmatprep.subr.mxu0 %v1173_v59  ;;  %v6460_v59 = vld [vmem:[%s5451_s18 + $0x30] sm:$0xff] }
 0x1e0   : > { %v1010_v0 = vpop.permute.xlu1 %1009 }
 0x1e1   : > { %v6391_v57 = vpop.permute.xlu0 %1035  ;;  %v1172_v47 = vsel %vm1171_vm11, %v1010_v0, %v1012_v54 }
 0x1e2   : > { %1037 = vrot.lane.b32.xlu1 %v6396_v29, %s5283_s20  ;;  %1389 = vmatpush2.msra.mxu0 %v1172_v47  ;;  %v1183_v52 = vsel %vm1171_vm11, %v1034_v35, %v6391_v57  ;;  %v8222_v35 = vld [vmem:[#allocation16_spill] sm:$0xff] }
 0x1e3   : > { %1077 = vrot.lane.b32.xlu0 %v6409_v1, %s5283_s20  ;;  %1457 = vmatprep.subr.mxu1 %v1183_v52 }
 0x1e4   : > { %1458 = vmatpush2.msra.mxu1 %v1182_v8  ;;  %v963_v9 = vpop.permute.xlu1 %962  ;;  %1391 = vmatmul.mubr.f32.vlgmr.msra.gmra.mxu0 %v6402_v15  ;;  %v6469_v8 = vld [vmem:[%s5451_s18 + $0x38] sm:$0xff] }
 0x1e5   : > { %v961_v10 = vpop.permute.xlu0 %960  ;;  %4402 = vmatprep.mubr.msk.f32.mxu0 %vm1322_vm14, %v6071_v62 }
 0x1e6   : > { %1059 = vrot.lane.b32.xlu1 %v6420_v51, %s5283_s20  ;;  %v974_v12 = vsel %vm968_vm1, %v961_v10, %v963_v9  ;;  %v973_v55 = vsel %vm968_vm1, %v8221_v63, %v961_v10  ;;  %v1316_v10 = vld [vmem:[%s8132_s2] sm:$0xff] }
 0x1e7   : > { %1039 = vrot.lane.b32.xlu0 %v6429_v28, %s5283_s20  ;;  %1468 = vmatprep.subr.mxu0 %v974_v12 }
 0x1e8   : > { %1469 = vmatpush1.msra.mxu0 %v973_v55  ;;  %v6436_v37 = vpop.permute.xlu1 %1017  ;;  %v8223_v55 = vld [vmem:[#allocation17_spill] sm:$0xff] }
 0x1e9   : > { %v1016_v5 = vpop.permute.xlu0 %1015 }
 0x1ea   : > { %1019 = vrot.lane.b32.xlu1 %v6220_v42, %s5283_s20  ;;  %v1175_v41 = vsel %vm1171_vm11, %v1016_v5, %v6436_v37  ;;  %v1174_v32 = vsel %vm1171_vm11, %v1014_v45, %v1016_v5 }
 0x1eb   : > { %5055 = vrot.lane.b32.xlu0 %v5054_v26, %s5283_s20  ;;  %1459 = vmatprep.subr.mxu1 %v1175_v41  ;;  %v1667_v41 = vmax.f32 %v6210_v3, 0.0 }
 0x1ec   : > { %1460 = vmatpush2.msra.mxu1 %v1174_v32  ;;  %v928_v54 = vpop.permute.xlu1 %927 }
 0x1ed   : > { %1462 = vmatmul.mubr.f32.vlgmr.msra.gmra.mxu1 %v6402_v15  ;;  %v926_v39 = vpop.permute.xlu0 %925 }
 0x1ee   : > { %1041 = vrot.lane.b32.xlu1 %v6450_v40, %s5283_s20  ;;  %v939_v31 = vsel %vm933_vm2, %v926_v39, %v928_v54  ;;  %v938_v45 = vsel %vm933_vm2, %v8222_v35, %v926_v39  ;;  %4403 = vmatprep.mubr.msk.f32.mxu1 %vm1322_vm14, %v6071_v62 }
 0x1ef   : > { %1021 = vrot.lane.b32.xlu0 %v6460_v59, %s5283_s20  ;;  %1470 = vmatprep.subr.mxu0 %v939_v31 }
 0x1f0   : > { %1471 = vmatpush1.msra.mxu0 %v938_v45  ;;  %v967_v49 = vpop.permute.xlu1 %966 }
 0x1f1   : > { %v965_v0 = vpop.permute.xlu0 %964 }
 0x1f2   : > { %1025 = vrot.lane.b32.xlu1 %v8209_v13, %s5283_s20  ;;  %v976_v47 = vsel %vm968_vm1, %v965_v0, %v967_v49  ;;  %v975_v52 = vsel %vm968_vm1, %v963_v9, %v965_v0  ;;  %v8224_v49 = vld [vmem:[#allocation19_spill] sm:$0xff]  ;;  %vm8226_vm1 = vmmov %vm8225_vm0 }
 0x1f3   : > { %1023 = vrot.lane.b32.xlu0 %v6469_v8, %s5283_s20  ;;  %1539 = vmatprep.subr.mxu1 %v976_v47  ;;  %s5286_s20 = smov 58  }
 0x1f4   : > { %1540 = vmatpush1.msra.mxu1 %v975_v52  ;;  %v893_v62 = vpop.permute.xlu1 %892 }
 0x1f5   : > { %v891_v12 = vpop.permute.xlu0 %890 }
 0x1f6   : > { %v904_v63 = vsel %vm898_vm4, %v891_v12, %v893_v62  ;;  %v903_v5 = vsel %vm898_vm4, %v8223_v55, %v891_v12 }
 0x1f7   : > { %1319 = vperm.xlu0 %5059, %v1316_v10   ;;  %1472 = vmatprep.subr.mxu0 %v904_v63 }
 0x1f8   : > { %1473 = vmatpush1.msra.mxu0 %v903_v5  ;;  %v6479_v9 = vpop.permute.xlu1 %931 }
 0x1f9   : > { %v930_v26 = vpop.permute.xlu0 %929 }
 0x1fa   : > { %v941_v32 = vsel %vm933_vm2, %v930_v26, %v6479_v9  ;;  %v940_v39 = vsel %vm933_vm2, %v928_v54, %v930_v26 }
 0x1fb   : > { %1693 = vrot.lane.b32.xlu0 %v1667_v41, %s5269_s16  ;;  %1541 = vmatprep.subr.mxu1 %v941_v32 }
 0x1fc   : > { %1542 = vmatpush1.msra.mxu1 %v940_v39  ;;  %v858_v31 = vpop.permute.xlu1 %857 }
 0x1fd   : > { %v856_v35 = vpop.permute.xlu0 %855 }
 0x1fe   : > { %v869_v45 = vsel %vm863_vm6, %v856_v35, %v858_v31  ;;  %v868_v0 = vsel %vm863_vm6, %v8224_v49, %v856_v35 }
 0x1ff   : > { %1474 = vmatprep.subr.mxu0 %v869_v45  ;;  %1977 = vrot.lane.b32.xlu0 %v8209_v13, %s5286_s20 }
 0x200   : > { %1475 = vmatpush1.msra.mxu0 %v868_v0  ;;  %v897_v47 = vpop.permute.xlu1 %896 }
 0x201   : > { %v895_v52 = vpop.permute.xlu0 %894 }
 0x202   : > { %v906_v10 = vsel %vm898_vm4, %v895_v52, %v897_v47  ;;  %v905_v12 = vsel %vm898_vm4, %v893_v62, %v895_v52  ;;  %vm8231_vm4 = vmmov %vm8225_vm0 }
 0x203   : > { %1543 = vmatprep.subr.mxu1 %v906_v10  ;;  %2048 = vrot.lane.b32.xlu0 %v8209_v13, %s8169_s15  ;;  %s5289_s15 = smov 56  }
 0x204   : > { %1544 = vmatpush1.msra.mxu1 %v905_v12  ;;  %v823_v54 = vpop.permute.xlu1 %822 }
 0x205   : > { %v821_v63 = vpop.permute.xlu0 %820 }
 0x206   : > { %v834_v55 = vsel %vm828_vm7, %v821_v63, %v823_v54  ;;  %v833_v5 = vsel %vm828_vm7, %v5911_v6, %v821_v63 }
 0x207   : > { %1476 = vmatprep.subr.mxu0 %v834_v55  ;;  %1811 = vrot.lane.b32.xlu0 %v8209_v13, %s5288_s19 }
 0x208   : > { %1477 = vmatpush1.msra.mxu0 %v833_v5  ;;  %v6494_v26 = vpop.permute.xlu1 %861  ;;  %v8227_v5 = vld [vmem:[#allocation15_spill] sm:$0xff] }
 0x209   : > { %v860_v41 = vpop.permute.xlu0 %859 }
 0x20a   : > { %v871_v32 = vsel %vm863_vm6, %v860_v41, %v6494_v26  ;;  %v870_v39 = vsel %vm863_vm6, %v858_v31, %v860_v41 }
 0x20b   : > { %1545 = vmatprep.subr.mxu1 %v871_v32  ;;  %v8228_v32 = vld [vmem:[#allocation18_spill] sm:$0xff] }
 0x20c   : > { %1546 = vmatpush1.msra.mxu1 %v870_v39  ;;  %v788_v62 = vpop.permute.xlu1 %787 }
 0x20d   : > { %v786_v35 = vpop.permute.xlu0 %785 }
 0x20e   : > { %v799_v45 = vsel %vm793_vm9, %v786_v35, %v788_v62  ;;  %v798_v49 = vsel %vm793_vm9, %v5941_v60, %v786_v35  ;;  %v8229_v35 = vld [vmem:[#allocation20_spill] sm:$0xff] }
 0x20f   : > { %1478 = vmatprep.subr.mxu0 %v799_v45 }
 0x210   : > { %1479 = vmatpush1.msra.mxu0 %v798_v49  ;;  %v827_v6 = vpop.permute.xlu1 %826 }
 0x211   : > { %v825_v0 = vpop.permute.xlu0 %824 }
 0x212   : > { %v836_v47 = vsel %vm828_vm7, %v825_v0, %v827_v6  ;;  %v835_v52 = vsel %vm828_vm7, %v823_v54, %v825_v0  ;;  %vm8233_vm7 = vmmov %vm8232_vm5 }
 0x213   : > { %1547 = vmatprep.subr.mxu1 %v836_v47 }
 0x214   : > { %1548 = vmatpush1.msra.mxu1 %v835_v52  ;;  %v753_v31 = vpop.permute.xlu1 %752 }
 0x215   : > { %v751_v10 = vpop.permute.xlu0 %750 }
 0x216   : > { %v764_v12 = vsel %vm8225_vm0, %v751_v10, %v753_v31  ;;  %v763_v63 = vsel %vm8226_vm1, %v5957_v25, %v751_v10  ;;  %vm2050_vm0 = vcmask 539648   ;;  %vm8250_vm1 = vmmov %vm8232_vm5 }
 0x217   : > { %1480 = vmatprep.subr.mxu0 %v764_v12 }
 0x218   : > { %1481 = vmatpush1.msra.mxu0 %v763_v63  ;;  %v6507_v60 = vpop.permute.xlu1 %791 }
 0x219   : > { %1482 = vmatprep.subr.mxu0 %v6240_v43  ;;  %v790_v55 = vpop.permute.xlu0 %789 }
 0x21a   : > { %1483 = vmatpush1.msra.mxu0 %v8227_v5  ;;  %v801_v54 = vsel %vm793_vm9, %v790_v55, %v6507_v60  ;;  %v800_v41 = vsel %vm793_vm9, %v788_v62, %v790_v55 }
 0x21b   : > { %1484 = vmatprep.subr.mxu0 %v6260_v61  ;;  %1549 = vmatprep.subr.mxu1 %v801_v54 }
 0x21c   : > { %1485 = vmatpush1.msra.mxu0 %v8228_v32  ;;  %1550 = vmatpush1.msra.mxu1 %v800_v41  ;;  %v757_v25 = vpop.permute.xlu1 %756 }
 0x21d   : > { %1486 = vmatprep.subr.mxu0 %v6290_v11  ;;  %v755_v39 = vpop.permute.xlu0 %754 }
 0x21e   : > { %1487 = vmatpush1.msra.mxu0 %v8229_v35  ;;  %v766_v43 = vsel %vm8230_vm3, %v755_v39, %v757_v25  ;;  %v765_v45 = vsel %vm8231_vm4, %v753_v31, %v755_v39  ;;  %vm8252_vm3 = vmmov %vm8250_vm1  ;;  %vm1848_vm4 = vcmask 982016  }
 0x21f   : > { %1488 = vmatprep.subr.mxu0 %v6297_v44  ;;  %1551 = vmatprep.subr.mxu1 %v766_v43 }
 0x220   : > { %1489 = vmatpush1.msra.mxu0 %v5946_v23  ;;  %1552 = vmatpush1.msra.mxu1 %v765_v45  ;;  %v578_v61 = vpop.permute.xlu1 %577 }
 0x221   : > { %1553 = vmatprep.subr.mxu1 %v6271_v7  ;;  %v576_v62 = vpop.permute.xlu0 %575 }
 0x222   : > { %1554 = vmatpush1.msra.mxu1 %v6233_v36  ;;  %v589_v11 = vsel %vm8232_vm5, %v576_v62, %v578_v61  ;;  %v588_v49 = vsel %vm8233_vm7, %v6045_v16, %v576_v62  ;;  %vm8258_vm7 = vmmov %vm8250_vm1 }
 0x223   : > { %1490 = vmatprep.subr.mxu0 %v589_v11  ;;  %1555 = vmatprep.subr.mxu1 %v6304_v22 }
 0x224   : > { %1491 = vmatpush1.msra.mxu0 %v588_v49  ;;  %1556 = vmatpush1.msra.mxu1 %v6252_v4  ;;  %v6529_v44 = vpop.permute.xlu1 %581 }
 0x225   : > { %1492 = vmatprep.subr.mxu0 %v6361_v2  ;;  %1557 = vmatprep.subr.mxu1 %v6312_v24  ;;  %v580_v23 = vpop.permute.xlu0 %579 }
 0x226   : > { %1493 = vmatpush1.msra.mxu0 %v6026_v30  ;;  %1558 = vmatpush1.msra.mxu1 %v6280_v18  ;;  %v591_v36 = vsel %vm8234_vm10, %v580_v23, %v6529_v44  ;;  %v590_v30 = vsel %vm8235_vm12, %v578_v61, %v580_v23  ;;  %vm8259_vm10 = vmmov %vm8250_vm1 }
 0x227   : > { %1494 = vmatprep.subr.mxu0 %v6384_v58  ;;  %1559 = vmatprep.subr.mxu1 %v6340_v33  ;;  %vm8260_vm12 = vmmov %vm8250_vm1 }
 0x228   : > { %1495 = vmatpush1.msra.mxu0 %v6053_v46  ;;  %1560 = vmatpush1.msra.mxu1 %v6319_v17  ;;  %v1166_v16 = vpop.permute.xlu1 %1165  ;;  %v5139_v46 = vld [vmem:[%s5451_s18 + $0x20] sm:$0xff]  ;;  %s5285_s18 = smov 120  }
 0x229   : > { %1496 = vmatprep.subr.mxu0 %v6396_v29  ;;  %1561 = vmatprep.subr.mxu1 %v591_v36  ;;  %v1164_v4 = vpop.permute.xlu0 %1163 }
 0x22a   : > { %1497 = vmatpush1.msra.mxu0 %v6101_v27  ;;  %1562 = vmatpush1.msra.mxu1 %v590_v30  ;;  %v1241_v18 = vsel %vm1171_vm11, %v1164_v4, %v1166_v16  ;;  %v1240_v24 = vsel %vm1171_vm11, %v6154_v34, %v1164_v4 }
 0x22b   : > { %1498 = vmatprep.subr.mxu0 %v6220_v42  ;;  %1563 = vmatprep.subr.mxu1 %v6409_v1 }
 0x22c   : > { %1499 = vmatpush1.msra.mxu0 %v5139_v46  ;;  %1564 = vmatpush1.msra.mxu1 %v6354_v14  ;;  %v1148_v7 = vpop.permute.xlu1 %1147 }
 0x22d   : > { %1514 = vmatprep.subr.mxu0 %v1241_v18  ;;  %1565 = vmatprep.subr.mxu1 %v6420_v51  ;;  %v1146_v22 = vpop.permute.xlu0 %1145 }
 0x22e   : > { %1515 = vmatpush2.msra.mxu0 %v1240_v24  ;;  %1566 = vmatpush1.msra.mxu1 %v6379_v53  ;;  %v1233_v27 = vsel %vm1171_vm11, %v1146_v22, %v1148_v7  ;;  %v1232_v42 = vsel %vm1171_vm11, %v6183_v21, %v1146_v22 }
 0x22f   : > { %1516 = vmatprep.subr.mxu0 %v1233_v27  ;;  %1567 = vmatprep.subr.mxu1 %v6450_v40 }
 0x230   : > { %1517 = vmatpush2.msra.mxu0 %v1232_v42  ;;  %1568 = vmatpush1.msra.mxu1 %v6429_v28  ;;  %v5041_v17 = vpop.permute.xlu1 %5040 }
 0x231   : > { %v5042_v33 = vunpack.i.l.bf16 %v5041_v17  ;;  %v1168_v14 = vpop.permute.xlu0 %1167  ;;  %1569 = vmatprep.subr.mxu1 %v6469_v8  ;;  %1846 = vrot.lane.b32.xlu1 %v8209_v13, %s5285_s18  ;;  %v5043_v1 = vunpack.i.h.bf16 %v5041_v17 }
 0x232   : > { %1570 = vmatpush1.msra.mxu1 %v6460_v59  ;;  %v1242_v2 = vsel %vm1171_vm11, %v1166_v16, %v1168_v14 }
 0x233   : > { %v1243_v34 = vsel %vm1171_vm11, %v1168_v14, %v5042_v33 }
 0x234   : > { %v1130_v21 = vpop.permute.xlu1 %1129  ;;  %1585 = vmatprep.subr.mxu1 %v1243_v34 }
 0x235   : > { %v1128_v53 = vpop.permute.xlu0 %1127  ;;  %1586 = vmatpush2.msra.mxu1 %v1242_v2 }
 0x236   : > { %v1225_v58 = vsel %vm1171_vm11, %v1128_v53, %v1130_v21  ;;  %v1224_v29 = vsel %vm1171_vm11, %v6212_v56, %v1128_v53 }
 0x237   : > { %1518 = vmatprep.subr.mxu0 %v1225_v58 }
 0x238   : > { %1519 = vmatpush2.msra.mxu0 %v1224_v29  ;;  %v1110_v51 = vpop.permute.xlu1 %1109 }
 0x239   : > { %v1150_v28 = vpop.permute.xlu0 %1149  ;;  %v1216_v47 = vsel %vm1171_vm11, %v6244_v50, %v1110_v51 }
 0x23a   : > { %v1235_v40 = vsel %vm1171_vm11, %v1150_v28, %v5043_v1  ;;  %v1234_v59 = vsel %vm1171_vm11, %v1148_v7, %v1150_v28 }
 0x23b   : > { %1587 = vmatprep.subr.mxu1 %v1235_v40 }
 0x23c   : > { %1588 = vmatpush2.msra.mxu1 %v1234_v59  ;;  %v1132_v8 = vpop.permute.xlu1 %1131 }
 0x23d   : > { %v1112_v6 = vpop.permute.xlu0 %1111  ;;  %v1226_v50 = vsel %vm1171_vm11, %v1130_v21, %v1132_v8 }
 0x23e   : > { %v1217_v0 = vsel %vm1171_vm11, %v1110_v51, %v1112_v6 }
 0x23f   : > { %1520 = vmatprep.subr.mxu0 %v1217_v0 }
 0x240   : > { %1521 = vmatpush2.msra.mxu0 %v1216_v47  ;;  %v1092_v56 = vpop.permute.xlu1 %1091 }
 0x241   : > { %v5046_v52 = vpop.permute.xlu0 %5045  ;;  %v1208_v32 = vsel %vm1171_vm11, %v6275_v19, %v1092_v56 }
 0x242   : > { %v5047_v31 = vunpack.i.l.bf16 %v5046_v52  ;;  %v5048_v10 = vunpack.i.h.bf16 %v5046_v52 }
 0x244   : > { %v1114_v12 = vpop.permute.xlu1 %1113  ;;  %v1227_v63 = vsel %vm1171_vm11, %v1132_v8, %v5047_v31 }
 0x245   : > { %v1094_v55 = vpop.permute.xlu0 %1093  ;;  %1589 = vmatprep.subr.mxu1 %v1227_v63  ;;  %v1219_v5 = vsel %vm1171_vm11, %v1114_v12, %v5048_v10  ;;  %v1218_v54 = vsel %vm1171_vm11, %v1112_v6, %v1114_v12 }
 0x246   : > { %1590 = vmatpush2.msra.mxu1 %v1226_v50  ;;  %v1209_v41 = vsel %vm1171_vm11, %v1092_v56, %v1094_v55 }
 0x247   : > { %1522 = vmatprep.subr.mxu0 %v1209_v41  ;;  %1591 = vmatprep.subr.mxu1 %v1219_v5 }
 0x248   : > { %1523 = vmatpush2.msra.mxu0 %v1208_v32  ;;  %1592 = vmatpush2.msra.mxu1 %v1218_v54  ;;  %v1076_v25 = vpop.permute.xlu1 %1075 }
 0x249   : > { %v1074_v39 = vpop.permute.xlu0 %1073 }
 0x24a   : > { %v1201_v35 = vsel %vm1171_vm11, %v1074_v39, %v1076_v25  ;;  %v1200_v43 = vsel %vm1171_vm11, %v6326_v48, %v1074_v39 }
 0x24b   : > { %1524 = vmatprep.subr.mxu0 %v1201_v35 }
 0x24c   : > { %1525 = vmatpush2.msra.mxu0 %v1200_v43  ;;  %v5051_v45 = vpop.permute.xlu1 %5050 }
 0x24d   : > { %v5052_v61 = vunpack.i.l.bf16 %v5051_v45  ;;  %v1096_v62 = vpop.permute.xlu0 %1095  ;;  %v5053_v48 = vunpack.i.h.bf16 %v5051_v45 }
 0x24e   : > { %v1210_v19 = vsel %vm1171_vm11, %v1094_v55, %v1096_v62 }
 0x24f   : > { %v1211_v11 = vsel %vm1171_vm11, %v1096_v62, %v5052_v61 }
 0x250   : > { %v1058_v49 = vpop.permute.xlu1 %1057  ;;  %1593 = vmatprep.subr.mxu1 %v1211_v11 }
 0x251   : > { %v1056_v23 = vpop.permute.xlu0 %1055  ;;  %1594 = vmatpush2.msra.mxu1 %v1210_v19 }
 0x252   : > { %v1193_v16 = vsel %vm1171_vm11, %v1056_v23, %v1058_v49  ;;  %v1192_v36 = vsel %vm1171_vm11, %v6349_v20, %v1056_v23 }
 0x253   : > { %1526 = vmatprep.subr.mxu0 %v1193_v16 }
 0x254   : > { %1527 = vmatpush2.msra.mxu0 %v1192_v36  ;;  %v1038_v4 = vpop.permute.xlu1 %1037 }
 0x255   : > { %v1078_v30 = vpop.permute.xlu0 %1077  ;;  %v1184_v27 = vsel %vm1171_vm11, %v6391_v57, %v1038_v4 }
 0x256   : > { %v1203_v46 = vsel %vm1171_vm11, %v1078_v30, %v5053_v48  ;;  %v1202_v7 = vsel %vm1171_vm11, %v1076_v25, %v1078_v30 }
 0x257   : > { %1595 = vmatprep.subr.mxu1 %v1203_v46 }
 0x258   : > { %1596 = vmatpush2.msra.mxu1 %v1202_v7  ;;  %v1060_v18 = vpop.permute.xlu1 %1059 }
 0x259   : > { %v1040_v22 = vpop.permute.xlu0 %1039  ;;  %v1194_v2 = vsel %vm1171_vm11, %v1058_v49, %v1060_v18 }
 0x25a   : > { %v1185_v24 = vsel %vm1171_vm11, %v1038_v4, %v1040_v22 }
 0x25b   : > { %1528 = vmatprep.subr.mxu0 %v1185_v24 }
 0x25c   : > { %1529 = vmatpush2.msra.mxu0 %v1184_v27  ;;  %v1020_v20 = vpop.permute.xlu1 %1019 }
 0x25d   : > { %v5056_v42 = vpop.permute.xlu0 %5055  ;;  %v1176_v57 = vsel %vm1171_vm11, %v6436_v37, %v1020_v20 }
 0x25e   : > { %v5057_v17 = vunpack.i.l.bf16 %v5056_v42  ;;  %v5058_v33 = vunpack.i.h.bf16 %v5056_v42 }
 0x260   : > { %v1042_v14 = vpop.permute.xlu1 %1041  ;;  %v1195_v34 = vsel %vm1171_vm11, %v1060_v18, %v5057_v17 }
 0x261   : > { %v1022_v21 = vpop.permute.xlu0 %1021  ;;  %1597 = vmatprep.subr.mxu1 %v1195_v34  ;;  %v1187_v53 = vsel %vm1171_vm11, %v1042_v14, %v5058_v33  ;;  %v1186_v58 = vsel %vm1171_vm11, %v1040_v22, %v1042_v14 }
 0x262   : > { %1598 = vmatpush2.msra.mxu1 %v1194_v2  ;;  %v1177_v29 = vsel %vm1171_vm11, %v1020_v20, %v1022_v21 }
 0x263   : > { %1530 = vmatprep.subr.mxu0 %v1177_v29  ;;  %1599 = vmatprep.subr.mxu1 %v1187_v53 }
 0x264   : > { %1531 = vmatpush2.msra.mxu0 %v1176_v57  ;;  %1600 = vmatpush2.msra.mxu1 %v1186_v58  ;;  %v1026_v1 = vpop.permute.xlu1 %1025 }
 0x265   : > { %1533 = vmatmul.mubr.f32.vlgmr.msra.gmra.mxu0 %v6402_v15  ;;  %v1024_v51 = vpop.permute.xlu0 %1023 }
 0x266   : > { %v1179_v28 = vsel %vm1171_vm11, %v1024_v51, %v1026_v1  ;;  %v1178_v40 = vsel %vm1171_vm11, %v1022_v21, %v1024_v51  ;;  %vm8243_vm11 = vmmov %vm8232_vm5  ;;  %vm2014_vm5 = vcmask 457728  }
 0x267   : > { %1601 = vmatprep.subr.mxu1 %v1179_v28 }
 0x268   : > { %1602 = vmatpush2.msra.mxu1 %v1178_v40 }
 0x269   : > { %1604 = vmatmul.mubr.f32.vlgmr.msra.gmra.mxu1 %v6402_v15 }
 0x272   : > { %v1320_v37 = vpop.permute.xlu0 %1319 }
 0x276   : > { %v6627_v7 = vpop.permute.xlu0 %1693 }
 0x27a   : > { %v6629_v18 = vpop.permute.xlu0 %1977 }
 0x27e   : > { %v6631_v22 = vpop.permute.xlu0 %2048 }
 0x282   : > { %v6633_v24 = vpop.permute.xlu0 %1811 }
 0x2a3   : > { %v6615_v55 = vpop.permute.xlu1 %1846 }
 0x2a4   : > { %v1392_v59 = vpop.f32.mrf.mxu0  ;;  %8236 = vst [vmem:[#allocation13_spill] sm:$0xff] %v6615_v55 }
 0x2a5   : > { %v1393_v0 = vadd.f32 %v1392_v59, %v1320_v37 }
 0x2a6   : > { %v1394_v10 = vpop.f32.mrf.mxu0 }
 0x2a7   : > { %v1610_v52 = vmax.f32 %v1393_v0, 0.0  ;;  %v1395_v15 = vadd.f32 %v1394_v10, %v1320_v37 }
 0x2a9   : > { %v1611_v63 = vmax.f32 %v1395_v15, 0.0 }
 0x2ad   : > { %v1463_v8 = vpop.f32.mrf.mxu1 }
 0x2ae   : > { %v1464_v6 = vadd.f32 %v1463_v8, %v1320_v37 }
 0x2af   : > { %v1465_v47 = vpop.f32.mrf.mxu1 }
 0x2b0   : > { %v1612_v56 = vmax.f32 %v1464_v6, 0.0  ;;  %v1466_v31 = vadd.f32 %v1465_v47, %v1320_v37 }
 0x2b2   : > { %1630 = vrot.lane.b32.xlu1 %v1612_v56, %s8212_s28  ;;  %v1613_v12 = vmax.f32 %v1466_v31, 0.0 }
 0x2b6   : > { %1626 = vrot.lane.b32.xlu1 %v1610_v52, %s8212_s28 }
 0x2ba   : > { %1632 = vrot.lane.b32.xlu1 %v1613_v12, %s8212_s28 }
 0x2be   : > { %1628 = vrot.lane.b32.xlu1 %v1611_v63, %s8212_s28 }
 0x2c2   : > { %2012 = vrot.lane.b32.xlu1 %v8209_v13, %s5289_s15 }
 0x324   : > { %v1631_v50 = vpop.permute.xlu1 %1630 }
 0x325   : > { %v1534_v5 = vpop.f32.mrf.mxu0 }
 0x326   : > { %v1535_v54 = vadd.f32 %v1534_v5, %v1320_v37 }
 0x327   : > { %v1536_v41 = vpop.f32.mrf.mxu0 }
 0x328   : > { %v1614_v32 = vmax.f32 %v1535_v54, 0.0  ;;  %v1537_v25 = vadd.f32 %v1536_v41, %v1320_v37  ;;  %v1627_v39 = vpop.permute.xlu1 %1626 }
 0x329   : > { %v1605_v35 = vpop.f32.mrf.mxu1 }
 0x32a   : > { %v1615_v43 = vmax.f32 %v1537_v25, 0.0  ;;  %v1606_v45 = vadd.f32 %v1605_v35, %v1320_v37  ;;  %1634 = vrot.lane.b32.xlu0 %v1614_v32, %s8212_s28 }
 0x32b   : > { %v1607_v61 = vpop.f32.mrf.mxu1 }
 0x32c   : > { %v1616_v62 = vmax.f32 %v1606_v45, 0.0  ;;  %v1608_v11 = vadd.f32 %v1607_v61, %v1320_v37  ;;  %1636 = vrot.lane.b32.xlu1 %v1615_v43, %s8212_s28  ;;  %v1633_v49 = vpop.permute.xlu1 %1632 }
 0x32d   : > { %v1644_v16 = vsel %vm478_vm15, %v1631_v50, %v1633_v49 }
 0x32e   : > { %1638 = vrot.lane.b32.xlu0 %v1616_v62, %s8212_s28  ;;  %v1617_v19 = vmax.f32 %v1608_v11, 0.0  ;;  %v1661_v4 = vmax.f32 %v1612_v56, %v1644_v16 }
 0x330   : > { %v1629_v23 = vpop.permute.xlu1 %1628 }
 0x331   : > { %v1642_v36 = vsel %vm478_vm15, %v1627_v39, %v1629_v23  ;;  %v1643_v30 = vsel %vm478_vm15, %v1629_v23, %v1631_v50 }
 0x332   : > { %v1659_v48 = vmax.f32 %v1610_v52, %v1642_v36  ;;  %1640 = vrot.lane.b32.xlu0 %v1617_v19, %s8212_s28  ;;  %v1660_v46 = vmax.f32 %v1611_v63, %v1643_v30 }
 0x334   : > { %1677 = vrot.lane.b32.xlu1 %v1659_v48, %s5269_s16  ;;  %v6635_v27 = vpop.permute.xlu1 %2012 }
 0x335   : > { %8237 = vst [vmem:[#allocation14_spill] sm:$0xff] %v6635_v27 }
 0x336   : > { %1681 = vrot.lane.b32.xlu0 %v1661_v4, %s5269_s16 }
 0x33a   : > { %1679 = vrot.lane.b32.xlu0 %v1660_v46, %s5269_s16 }
 0x39c   : > { %v1635_v20 = vpop.permute.xlu0 %1634 }
 0x39d   : > { %v1645_v42 = vsel %vm478_vm15, %v1633_v49, %v1635_v20 }
 0x39e   : > { %v1662_v17 = vmax.f32 %v1613_v12, %v1645_v42  ;;  %v1637_v33 = vpop.permute.xlu1 %1636 }
 0x39f   : > { %v1646_v14 = vsel %vm478_vm15, %v1635_v20, %v1637_v33 }
 0x3a0   : > { %v1663_v34 = vmax.f32 %v1614_v32, %v1646_v14  ;;  %1683 = vrot.lane.b32.xlu1 %v1662_v17, %s5269_s16  ;;  %v1639_v21 = vpop.permute.xlu0 %1638 }
 0x3a1   : > { %v1647_v2 = vsel %vm478_vm15, %v1637_v33, %v1639_v21 }
 0x3a2   : > { %v6641_v53 = vmax.f32 %v1615_v43, %v1647_v2  ;;  %1685 = vrot.lane.b32.xlu0 %v1663_v34, %s5269_s16 }
 0x3a4   : > { %1687 = vrot.lane.b32.xlu1 %v6641_v53, %s5269_s16  ;;  %v1641_v58 = vpop.permute.xlu0 %1640 }
 0x3a5   : > { %v1648_v29 = vsel %vm478_vm15, %v1639_v21, %v1641_v58  ;;  %v1649_v57 = vsel %vm478_vm15, %v1641_v58, %v6210_v3  ;;  %vm1979_vm15 = vcmask 474112  }
 0x3a6   : > { %v6649_v1 = vmax.f32 %v1616_v62, %v1648_v29  ;;  %v6651_v51 = vmax.f32 %v1617_v19, %v1649_v57  ;;  %v1678_v3 = vpop.permute.xlu1 %1677 }
 0x3a8   : > { %1691 = vrot.lane.b32.xlu0 %v6651_v51, %s5269_s16  ;;  %1689 = vrot.lane.b32.xlu1 %v6649_v1, %s5269_s16  ;;  %v1682_v28 = vpop.permute.xlu0 %1681  ;;  %s8239_s16 = smov 66  }
 0x3ac   : > { %v1680_v40 = vpop.permute.xlu0 %1679 }
 0x3ad   : > { %v1696_v59 = vsel %vm618_vm8, %v1680_v40, %v1682_v28  ;;  %v1695_v8 = vsel %vm618_vm8, %v1678_v3, %v1680_v40 }
 0x3ae   : > { %v6658_v37 = vmax.f32 %v1660_v46, %v1696_v59  ;;  %v6669_v6 = vmax.f32 %v1659_v48, %v1695_v8 }
 0x3b0   : > { %1867 = vrot.lane.b32.xlu0 %v6658_v37, %s5279_s30  ;;  %1797 = vrot.lane.b32.xlu1 %v6658_v37, %s5288_s19 }
 0x3b4   : > { %1998 = vrot.lane.b32.xlu0 %v6658_v37, %s5289_s15  ;;  %1765 = vrot.lane.b32.xlu1 %v6658_v37, %s5281_s17 }
 0x3b8   : > { %1733 = vrot.lane.b32.xlu1 %v6658_v37, %s5272_s23  ;;  %1996 = vrot.lane.b32.xlu0 %v6669_v6, %s5289_s15 }
 0x3bc   : > { %1832 = vrot.lane.b32.xlu1 %v6658_v37, %s5285_s18  ;;  %1961 = vrot.lane.b32.xlu0 %v6669_v6, %s5286_s20 }
 0x3c0   : > { %1963 = vrot.lane.b32.xlu1 %v6658_v37, %s5286_s20  ;;  %1929 = vrot.lane.b32.xlu0 %v6669_v6, %s8216_s29 }
 0x3c4   : > { %1931 = vrot.lane.b32.xlu1 %v6658_v37, %s8216_s29  ;;  %1897 = vrot.lane.b32.xlu0 %v6669_v6, %s8218_s26 }
 0x3c8   : > { %1899 = vrot.lane.b32.xlu1 %v6658_v37, %s8218_s26  ;;  %1830 = vrot.lane.b32.xlu0 %v6669_v6, %s5285_s18 }
 0x3cc   : > { %1865 = vrot.lane.b32.xlu1 %v6669_v6, %s5279_s30 }
 0x3d0   : > { %1795 = vrot.lane.b32.xlu1 %v6669_v6, %s5288_s19 }
 0x3d4   : > { %1763 = vrot.lane.b32.xlu1 %v6669_v6, %s5281_s17 }
 0x3d8   : > { %1731 = vrot.lane.b32.xlu1 %v6669_v6, %s5272_s23 }
 0x412   : > { %v1684_v0 = vpop.permute.xlu1 %1683 }
 0x413   : > { %v1697_v47 = vsel %vm618_vm8, %v1682_v28, %v1684_v0 }
 0x414   : > { %v6700_v56 = vmax.f32 %v1661_v4, %v1697_v47  ;;  %v1686_v52 = vpop.permute.xlu0 %1685 }
 0x415   : > { %v1698_v10 = vsel %vm618_vm8, %v1684_v0, %v1686_v52 }
 0x416   : > { %8238 = vst [vmem:[#allocation16_spill] sm:$0xff] %v6700_v56  ;;  %1965 = vrot.lane.b32.xlu1 %v6700_v56, %s5286_s20  ;;  %1933 = vrot.lane.b32.xlu0 %v6700_v56, %s8216_s29  ;;  %v1688_v31 = vpop.permute.xlu1 %1687  ;;  %v6724_v15 = vmax.f32 %v1662_v17, %v1698_v10 }
 0x417   : > { %v1699_v12 = vsel %vm618_vm8, %v1686_v52, %v1688_v31 }
 0x418   : > { %v6726_v63 = vmax.f32 %v1663_v34, %v1699_v12 }
 0x41a   : > { %1901 = vrot.lane.b32.xlu1 %v6700_v56, %s8218_s26  ;;  %1869 = vrot.lane.b32.xlu0 %v6700_v56, %s5279_s30  ;;  %v1690_v50 = vpop.permute.xlu1 %1689  ;;  %v1692_v54 = vpop.permute.xlu0 %1691 }
 0x41b   : > { %v1700_v5 = vsel %vm618_vm8, %v1688_v31, %v1690_v50  ;;  %v1701_v25 = vsel %vm618_vm8, %v1690_v50, %v1692_v54  ;;  %v1702_v11 = vsel %vm618_vm8, %v1692_v54, %v6627_v7  ;;  %vm1813_vm8 = vcmask 998400  }
 0x41c   : > { %v6762_v41 = vmax.f32 %v6641_v53, %v1700_v5  ;;  %v6772_v39 = vmax.f32 %v6649_v1, %v1701_v25  ;;  %v6819_v23 = vmax.f32 %v6651_v51, %v1702_v11 }
 0x41e   : > { %2036 = vrot.lane.b32.xlu1 %v6700_v56, %s8239_s16  ;;  %1799 = vrot.lane.b32.xlu0 %v6700_v56, %s5288_s19  ;;  %8240 = vst [vmem:[#allocation17_spill] sm:$0xff] %v6762_v41  ;;  %8241 = vst [vmem:[#allocation19_spill] sm:$0xff] %v6772_v39 }
 0x41f   : > { %8242 = vst [vmem:[#allocation15_spill] sm:$0xff] %v6819_v23 }
 0x422   : > { %1834 = vrot.lane.b32.xlu1 %v6700_v56, %s5285_s18  ;;  %1767 = vrot.lane.b32.xlu0 %v6700_v56, %s5281_s17  ;;  %v6764_v32 = vpop.permute.xlu1 %1797  ;;  %v6800_v61 = vpop.permute.xlu0 %1867 }
 0x426   : > { %2000 = vrot.lane.b32.xlu1 %v6700_v56, %s5289_s15  ;;  %1735 = vrot.lane.b32.xlu0 %v6700_v56, %s5272_s23  ;;  %v6774_v35 = vpop.permute.xlu1 %1765  ;;  %v6810_v49 = vpop.permute.xlu0 %1998 }
 0x42a   : > { %1969 = vrot.lane.b32.xlu1 %v6726_v63, %s5286_s20  ;;  %1967 = vrot.lane.b32.xlu0 %v6724_v15, %s5286_s20  ;;  %v6784_v43 = vpop.permute.xlu1 %1733  ;;  %v6825_v16 = vpop.permute.xlu0 %1996 }
 0x42e   : > { %1935 = vrot.lane.b32.xlu1 %v6724_v15, %s8216_s29  ;;  %1937 = vrot.lane.b32.xlu0 %v6726_v63, %s8216_s29  ;;  %v6790_v45 = vpop.permute.xlu1 %1832  ;;  %v6833_v48 = vpop.permute.xlu0 %1961 }
 0x432   : > { %1905 = vrot.lane.b32.xlu1 %v6726_v63, %s8218_s26  ;;  %1903 = vrot.lane.b32.xlu0 %v6724_v15, %s8218_s26  ;;  %v6802_v62 = vpop.permute.xlu1 %1963  ;;  %v6845_v30 = vpop.permute.xlu0 %1929 }
 0x436   : > { %1871 = vrot.lane.b32.xlu1 %v6724_v15, %s5279_s30  ;;  %1873 = vrot.lane.b32.xlu0 %v6726_v63, %s5279_s30  ;;  %v6812_v19 = vpop.permute.xlu1 %1931  ;;  %v6853_v7 = vpop.permute.xlu0 %1897 }
 0x43a   : > { %2040 = vrot.lane.b32.xlu1 %v6726_v63, %s8239_s16  ;;  %2038 = vrot.lane.b32.xlu0 %v6724_v15, %s8239_s16  ;;  %v6827_v36 = vpop.permute.xlu1 %1899  ;;  %v6865_v42 = vpop.permute.xlu0 %1830 }
 0x43e   : > { %1801 = vrot.lane.b32.xlu1 %v6724_v15, %s5288_s19  ;;  %1803 = vrot.lane.b32.xlu0 %v6726_v63, %s5288_s19  ;;  %v6835_v4 = vpop.permute.xlu1 %1865 }
 0x442   : > { %1769 = vrot.lane.b32.xlu1 %v6724_v15, %s5281_s17  ;;  %1771 = vrot.lane.b32.xlu0 %v6726_v63, %s5281_s17  ;;  %v6847_v46 = vpop.permute.xlu1 %1795 }
 0x446   : > { %1737 = vrot.lane.b32.xlu1 %v6724_v15, %s5272_s23  ;;  %1739 = vrot.lane.b32.xlu0 %v6726_v63, %s5272_s23  ;;  %v6855_v20 = vpop.permute.xlu1 %1763 }
 0x44a   : > { %1971 = vrot.lane.b32.xlu1 %v6762_v41, %s5286_s20  ;;  %1836 = vrot.lane.b32.xlu0 %v6724_v15, %s5285_s18  ;;  %v6867_v17 = vpop.permute.xlu1 %1731 }
 0x44e   : > { %1941 = vrot.lane.b32.xlu1 %v6772_v39, %s8216_s29  ;;  %1973 = vrot.lane.b32.xlu0 %v6772_v39, %s5286_s20 }
 0x452   : > { %1909 = vrot.lane.b32.xlu1 %v6772_v39, %s8218_s26  ;;  %1939 = vrot.lane.b32.xlu0 %v6762_v41, %s8216_s29 }
 0x456   : > { %1877 = vrot.lane.b32.xlu1 %v6772_v39, %s5279_s30  ;;  %1907 = vrot.lane.b32.xlu0 %v6762_v41, %s8218_s26 }
 0x45a   : > { %2044 = vrot.lane.b32.xlu1 %v6772_v39, %s8239_s16  ;;  %1875 = vrot.lane.b32.xlu0 %v6762_v41, %s5279_s30 }
 0x45e   : > { %1807 = vrot.lane.b32.xlu1 %v6772_v39, %s5288_s19  ;;  %2042 = vrot.lane.b32.xlu0 %v6762_v41, %s8239_s16 }
 0x462   : > { %1773 = vrot.lane.b32.xlu1 %v6762_v41, %s5281_s17  ;;  %1805 = vrot.lane.b32.xlu0 %v6762_v41, %s5288_s19 }
 0x466   : > { %1741 = vrot.lane.b32.xlu1 %v6762_v41, %s5272_s23  ;;  %1775 = vrot.lane.b32.xlu0 %v6772_v39, %s5281_s17 }
 0x46a   : > { %1975 = vrot.lane.b32.xlu1 %v6819_v23, %s5286_s20  ;;  %1743 = vrot.lane.b32.xlu0 %v6772_v39, %s5272_s23  ;;  %s5291_s20 = smov [#allocation7]  }
 0x46e   : > { %1838 = vrot.lane.b32.xlu1 %v6726_v63, %s5285_s18  ;;  %1943 = vrot.lane.b32.xlu0 %v6819_v23, %s8216_s29 }
 0x472   : > { %2046 = vrot.lane.b32.xlu1 %v6819_v23, %s8239_s16  ;;  %1911 = vrot.lane.b32.xlu0 %v6819_v23, %s8218_s26 }
 0x476   : > { %1809 = vrot.lane.b32.xlu1 %v6819_v23, %s5288_s19  ;;  %1879 = vrot.lane.b32.xlu0 %v6819_v23, %s5279_s30 }
 0x47a   : > { %2002 = vrot.lane.b32.xlu1 %v6724_v15, %s5289_s15  ;;  %1840 = vrot.lane.b32.xlu0 %v6762_v41, %s5285_s18 }
 0x47e   : > { %1842 = vrot.lane.b32.xlu1 %v6772_v39, %s5285_s18  ;;  %1777 = vrot.lane.b32.xlu0 %v6819_v23, %s5281_s17 }
 0x482   : > { %2006 = vrot.lane.b32.xlu1 %v6762_v41, %s5289_s15  ;;  %1745 = vrot.lane.b32.xlu0 %v6819_v23, %s5272_s23 }
 0x486   : > { %2004 = vrot.lane.b32.xlu0 %v6726_v63, %s5289_s15 }
 0x488   : > { %v6871_v33 = vpop.permute.xlu1 %1965  ;;  %v6873_v14 = vpop.permute.xlu0 %1933 }
 0x489   : > { %2169 = vrot.lane.b32.xlu1 %v6871_v33, %s8218_s26 }
 0x48a   : > { %1844 = vrot.lane.b32.xlu0 %v6819_v23, %s5285_s18  ;;  %s434_s18 = sand.u32 1, %s5252_s22  }
 0x48b   : > { %s435_s19 = scalar_lea.vmem [#allocation7], %s434_s18 }
 0x48c   : > { %v6879_v34 = vpop.permute.xlu1 %1901  ;;  %v1870_v21 = vpop.permute.xlu0 %1869  ;;  %s4313_s16 = sshll.u32 %s435_s19, 4  ;;  %s4314_s16 = int_to_ptr.vmem [resolvable:$true] %s4313_s16 }
 0x48d   : > { %2153 = vrot.lane.b32.xlu1 %v6873_v14, %s8218_s26  ;;  %v6967_v27 = vsel %vm793_vm9, %v6800_v61, %v1870_v21 }
 0x48e   : > { %2008 = vrot.lane.b32.xlu0 %v6772_v39, %s5289_s15 }
 0x490   : > { %v2037_v2 = vpop.permute.xlu1 %2036  ;;  %v1800_v53 = vpop.permute.xlu0 %1799 }
 0x491   : > { %2137 = vrot.lane.b32.xlu1 %v6879_v34, %s8218_s26  ;;  %v6905_v28 = vsel %vm1813_vm8, %v6764_v32, %v1800_v53 }
 0x492   : > { %2010 = vrot.lane.b32.xlu0 %v6819_v23, %s5289_s15 }
 0x494   : > { %v6889_v58 = vpop.permute.xlu1 %1834  ;;  %v1768_v29 = vpop.permute.xlu0 %1767 }
 0x495   : > { %2105 = vrot.lane.b32.xlu1 %v2037_v2, %s8218_s26  ;;  %v6899_v51 = vsel %vm8243_vm11, %v6774_v35, %v1768_v29 }
 0x496   : > { %2121 = vrot.lane.b32.xlu0 %v1870_v21, %s8218_s26 }
 0x498   : > { %v6893_v57 = vpop.permute.xlu1 %2000  ;;  %v6895_v1 = vpop.permute.xlu0 %1735 }
 0x499   : > { %2073 = vrot.lane.b32.xlu1 %v6899_v51, %s8218_s26  ;;  %v6912_v3 = vsel %vm513_vm13, %v6784_v43, %v6895_v1 }
 0x49a   : > { %2089 = vrot.lane.b32.xlu0 %v6905_v28, %s8218_s26 }
 0x49c   : > { %v1970_v40 = vpop.permute.xlu1 %1969  ;;  %v1968_v59 = vpop.permute.xlu0 %1967 }
 0x49d   : > { %v6916_v8 = vsel %vm1979_vm15, %v6871_v33, %v1968_v59  ;;  %v6925_v52 = vsel %vm1979_vm15, %v1968_v59, %v1970_v40 }
 0x49e   : > { %2057 = vrot.lane.b32.xlu0 %v6912_v3, %s8218_s26  ;;  %2171 = vrot.lane.b32.xlu1 %v6916_v8, %s8218_s26 }
 0x4a0   : > { %v1936_v0 = vpop.permute.xlu1 %1935  ;;  %v6922_v47 = vpop.permute.xlu0 %1937 }
 0x4a1   : > { %v6929_v31 = vsel %vm933_vm2, %v1936_v0, %v6922_v47  ;;  %v6939_v50 = vsel %vm933_vm2, %v6873_v14, %v1936_v0 }
 0x4a2   : > { %8244 = vst [vmem:[#allocation18_spill] sm:$0xff] %v6929_v31  ;;  %2173 = vrot.lane.b32.xlu0 %v6925_v52, %s8218_s26  ;;  %2157 = vrot.lane.b32.xlu1 %v6929_v31, %s8218_s26  ;;  %8245 = vst [vmem:[#allocation20_spill] sm:$0xff] %v6939_v50  ;;  %v1850_v31 = vsel %vm1848_vm4, %v6790_v45, %v6889_v58 }
 0x4a4   : > { %v6935_v10 = vpop.permute.xlu1 %1905  ;;  %v1904_v12 = vpop.permute.xlu0 %1903 }
 0x4a5   : > { %v6943_v5 = vsel %vm863_vm6, %v1904_v12, %v6935_v10  ;;  %v6956_v59 = vsel %vm863_vm6, %v6879_v34, %v1904_v12 }
 0x4a6   : > { %8246 = vst [vmem:[#allocation21_spill] sm:$0xff] %v6943_v5  ;;  %2155 = vrot.lane.b32.xlu0 %v6939_v50, %s8218_s26  ;;  %2141 = vrot.lane.b32.xlu1 %v6943_v5, %s8218_s26  ;;  %8248 = vst [vmem:[#allocation23_spill] sm:$0xff] %v6956_v59 }
 0x4a8   : > { %v1872_v54 = vpop.permute.xlu1 %1871  ;;  %v6949_v25 = vpop.permute.xlu0 %1873 }
 0x4a9   : > { %v6952_v11 = vsel %vm793_vm9, %v1870_v21, %v1872_v54  ;;  %v6960_v0 = vsel %vm793_vm9, %v1872_v54, %v6949_v25 }
 0x4aa   : > { %8247 = vst [vmem:[#allocation22_spill] sm:$0xff] %v6952_v11  ;;  %2328 = vmatprep.subr.mxu0 %v6952_v11  ;;  %2139 = vrot.lane.b32.xlu0 %v6956_v59, %s8218_s26 }
 0x4ab   : > { %2125 = vrot.lane.b32.xlu1 %v6960_v0, %s8218_s26  ;;  %2329 = vmatpush1.msra.mxu0 %v6967_v27 }
 0x4ac   : > { %v6972_v12 = vpop.permute.xlu1 %2040  ;;  %v2039_v23 = vpop.permute.xlu0 %2038 }
 0x4ad   : > { %v2051_v54 = vsel %vm2050_vm0, %v2037_v2, %v2039_v23  ;;  %v2052_v21 = vsel %vm2050_vm0, %v2039_v23, %v6972_v12  ;;  %v7000_v23 = vld [vmem:[%s8133_s3 + $0x8] sm:$0xff] }
 0x4ae   : > { %2123 = vrot.lane.b32.xlu0 %v6952_v11, %s8218_s26  ;;  %8251 = vst [vmem:[#allocation25_spill] sm:$0xff] %v7000_v23  ;;  %4404 = vmatprep.mubr.msk.f32.mxu0 %vm1322_vm14, %v7000_v23 }
 0x4af   : > { %2107 = vrot.lane.b32.xlu1 %v2051_v54, %s8218_s26  ;;  %4406 = vmatprep.mubr.msk.f32.mxu1 %vm1322_vm14, %v7000_v23 }
 0x4b0   : > { %v1802_v13 = vpop.permute.xlu1 %1801  ;;  %v6978_v55 = vpop.permute.xlu0 %1803 }
 0x4b1   : > { %v6984_v41 = vsel %vm1813_vm8, %v1802_v13, %v6978_v55  ;;  %v6992_v54 = vsel %vm1813_vm8, %v1800_v53, %v1802_v13 }
 0x4b2   : > { %2109 = vrot.lane.b32.xlu0 %v2052_v21, %s8218_s26  ;;  %8249 = vst [vmem:[#allocation24_spill] sm:$0xff] %v6992_v54 }
 0x4b3   : > { %2093 = vrot.lane.b32.xlu1 %v6984_v41, %s8218_s26 }
 0x4b4   : > { %v1770_v2 = vpop.permute.xlu1 %1769  ;;  %v6989_v39 = vpop.permute.xlu0 %1771 }
 0x4b5   : > { %v6995_v11 = vsel %vm8250_vm1, %v1768_v29, %v1770_v2  ;;  %v7014_v29 = vsel %vm8252_vm3, %v1770_v2, %v6989_v39 }
 0x4b6   : > { %2091 = vrot.lane.b32.xlu0 %v6992_v54, %s8218_s26 }
 0x4b7   : > { %2075 = vrot.lane.b32.xlu1 %v6995_v11, %s8218_s26 }
 0x4b8   : > { %v1738_v13 = vpop.permute.xlu1 %1737  ;;  %v7010_v53 = vpop.permute.xlu0 %1739 }
 0x4b9   : > { %v7018_v21 = vsel %vm513_vm13, %v1738_v13, %v7010_v53  ;;  %v7028_v5 = vsel %vm513_vm13, %v6895_v1, %v1738_v13 }
 0x4ba   : > { %2077 = vrot.lane.b32.xlu0 %v7014_v29, %s8218_s26  ;;  %8253 = vst [vmem:[#allocation26_spill] sm:$0xff] %v7028_v5 }
 0x4bb   : > { %2061 = vrot.lane.b32.xlu1 %v7018_v21, %s8218_s26 }
 0x4bc   : > { %v1972_v59 = vpop.permute.xlu1 %1971  ;;  %v7024_v23 = vpop.permute.xlu0 %1836 }
 0x4bd   : > { %v7031_v2 = vsel %vm1979_vm15, %v1970_v40, %v1972_v59  ;;  %v7036_v50 = vsel %vm1848_vm4, %v6889_v58, %v7024_v23 }
 0x4be   : > { %8254 = vst [vmem:[#allocation27_spill] sm:$0xff] %v7031_v2  ;;  %2059 = vrot.lane.b32.xlu0 %v7028_v5, %s8218_s26  ;;  %2330 = vmatprep.subr.mxu0 %v7036_v50 }
 0x4bf   : > { %2175 = vrot.lane.b32.xlu1 %v7031_v2, %s8218_s26  ;;  %2331 = vmatpush1.msra.mxu0 %v1850_v31 }
 0x4c0   : > { %v7046_v1 = vpop.permute.xlu1 %1941  ;;  %2332 = vmatprep.subr.mxu0 %v6992_v54  ;;  %v7049_v40 = vpop.permute.xlu0 %1973 }
 0x4c1   : > { %2333 = vmatpush1.msra.mxu0 %v6905_v28  ;;  %v7054_v13 = vsel %vm1979_vm15, %v1972_v59, %v7049_v40 }
 0x4c2   : > { %8255 = vst [vmem:[#allocation28_spill] sm:$0xff] %v7054_v13  ;;  %2334 = vmatprep.subr.mxu0 %v6995_v11  ;;  %2177 = vrot.lane.b32.xlu0 %v7054_v13, %s8218_s26  ;;  %v2016_v13 = vsel %vm2014_vm5, %v6810_v49, %v6893_v57 }
 0x4c3   : > { %2335 = vmatpush1.msra.mxu0 %v6899_v51 }
 0x4c4   : > { %v7060_v58 = vpop.permute.xlu1 %1909  ;;  %2336 = vmatprep.subr.mxu0 %v7028_v5  ;;  %v1940_v2 = vpop.permute.xlu0 %1939  ;;  %v2015_v5 = vsel %vm2014_vm5, %v6825_v16, %v6810_v49  ;;  %v1980_v49 = vsel %vm1979_vm15, %v6833_v48, %v6802_v62  ;;  %v1946_v16 = vsel %vm933_vm2, %v6812_v19, %v6873_v14 }
 0x4c5   : > { %2337 = vmatpush1.msra.mxu0 %v6912_v3  ;;  %v7066_v54 = vsel %vm933_vm2, %v1940_v2, %v7046_v1  ;;  %v7070_v59 = vsel %vm933_vm2, %v6922_v47, %v1940_v2 }
 0x4c6   : > { %8256 = vst [vmem:[#allocation29_spill] sm:$0xff] %v7066_v54  ;;  %8257 = vst [vmem:[#allocation30_spill] sm:$0xff] %v7070_v59  ;;  %2338 = vmatprep.subr.mxu0 %v6700_v56  ;;  %2161 = vrot.lane.b32.xlu0 %v7066_v54, %s8218_s26  ;;  %v1981_v54 = vsel %vm1979_vm15, %v6802_v62, %v6871_v33  ;;  %v7115_v62 = vsel %vm863_vm6, %v6827_v36, %v6879_v34 }
 0x4c7   : > { %2159 = vrot.lane.b32.xlu1 %v7070_v59, %s8218_s26  ;;  %2339 = vmatpush1.msra.mxu0 %v6658_v37 }
 0x4c8   : > { %v7084_v47 = vpop.permute.xlu1 %1877  ;;  %2340 = vmatprep.subr.mxu0 %v2016_v13  ;;  %v1908_v2 = vpop.permute.xlu0 %1907 }
 0x4c9   : > { %2341 = vmatpush1.msra.mxu0 %v2015_v5  ;;  %v7091_v59 = vsel %vm863_vm6, %v1908_v2, %v7060_v58  ;;  %v7095_v56 = vsel %vm863_vm6, %v6935_v10, %v1908_v2  ;;  %v1945_v5 = vsel %vm933_vm2, %v6845_v30, %v6812_v19  ;;  %v1913_v19 = vsel %vm863_vm6, %v6853_v7, %v6827_v36 }
 0x4ca   : > { %2342 = vmatprep.subr.mxu0 %v1981_v54  ;;  %2145 = vrot.lane.b32.xlu0 %v7091_v59, %s8218_s26  ;;  %v1849_v36 = vsel %vm1848_vm4, %v6865_v42, %v6790_v45  ;;  %v1779_v45 = vsel %vm8258_vm7, %v6855_v20, %v6774_v35 }
 0x4cb   : > { %2143 = vrot.lane.b32.xlu1 %v7095_v56, %s8218_s26  ;;  %2343 = vmatpush1.msra.mxu0 %v1980_v49 }
 0x4cc   : > { %v7107_v33 = vpop.permute.xlu1 %2044  ;;  %2344 = vmatprep.subr.mxu0 %v1946_v16  ;;  %v1876_v10 = vpop.permute.xlu0 %1875 }
 0x4cd   : > { %2345 = vmatpush1.msra.mxu0 %v1945_v5  ;;  %v7119_v48 = vsel %vm793_vm9, %v1876_v10, %v7084_v47  ;;  %v7123_v14 = vsel %vm793_vm9, %v6949_v25, %v1876_v10  ;;  %v1881_v25 = vsel %vm793_vm9, %v6835_v4, %v6800_v61 }
 0x4ce   : > { %2346 = vmatprep.subr.mxu0 %v7115_v62  ;;  %2129 = vrot.lane.b32.xlu0 %v7119_v48, %s8218_s26 }
 0x4cf   : > { %2127 = vrot.lane.b32.xlu1 %v7123_v14, %s8218_s26  ;;  %2405 = vmatprep.subr.mxu1 %v7123_v14 }
 0x4d0   : > { %2347 = vmatpush1.msra.mxu0 %v1913_v19  ;;  %2406 = vmatpush1.msra.mxu1 %v6960_v0  ;;  %v7135_v30 = vpop.permute.xlu1 %1807  ;;  %v2043_v34 = vpop.permute.xlu0 %2042 }
 0x4d1   : > { %2348 = vmatprep.subr.mxu0 %v6967_v27  ;;  %v2054_v54 = vsel %vm2050_vm0, %v2043_v34, %v7107_v33  ;;  %v2053_v13 = vsel %vm2050_vm0, %v6972_v12, %v2043_v34  ;;  %v1814_v27 = vsel %vm1813_vm8, %v6847_v46, %v6764_v32 }
 0x4d2   : > { %2349 = vmatpush1.msra.mxu0 %v1881_v25  ;;  %2113 = vrot.lane.b32.xlu0 %v2054_v54, %s8218_s26 }
 0x4d3   : > { %2350 = vmatprep.subr.mxu0 %v1850_v31  ;;  %2111 = vrot.lane.b32.xlu1 %v2053_v13, %s8218_s26 }
 0x4d4   : > { %2351 = vmatpush1.msra.mxu0 %v1849_v36  ;;  %v1774_v61 = vpop.permute.xlu1 %1773  ;;  %v1806_v4 = vpop.permute.xlu0 %1805 }
 0x4d5   : > { %2352 = vmatprep.subr.mxu0 %v6905_v28  ;;  %v7156_v7 = vsel %vm1813_vm8, %v1806_v4, %v7135_v30  ;;  %v7160_v12 = vsel %vm1813_vm8, %v6978_v55, %v1806_v4  ;;  %v1747_v55 = vsel %vm513_vm13, %v6867_v17, %v6784_v43  ;;  %v7182_v35 = vsel %vm8260_vm12, %v6989_v39, %v1774_v61 }
 0x4d6   : > { %2353 = vmatpush1.msra.mxu0 %v1814_v27  ;;  %2097 = vrot.lane.b32.xlu0 %v7156_v7, %s8218_s26 }
 0x4d7   : > { %2354 = vmatprep.subr.mxu0 %v6899_v51  ;;  %2095 = vrot.lane.b32.xlu1 %v7160_v12, %s8218_s26 }
 0x4d8   : > { %2355 = vmatpush1.msra.mxu0 %v1779_v45  ;;  %v1742_v32 = vpop.permute.xlu1 %1741  ;;  %v7170_v46 = vpop.permute.xlu0 %1775 }
 0x4d9   : > { %2356 = vmatprep.subr.mxu0 %v6912_v3  ;;  %v7178_v42 = vsel %vm8259_vm10, %v1774_v61, %v7170_v46  ;;  %v7198_v39 = vsel %vm513_vm13, %v7010_v53, %v1742_v32 }
 0x4da   : > { %2357 = vmatpush1.msra.mxu0 %v1747_v55  ;;  %2081 = vrot.lane.b32.xlu0 %v7178_v42, %s8218_s26 }
 0x4db   : > { %2358 = vmatprep.subr.mxu0 %v6658_v37  ;;  %2079 = vrot.lane.b32.xlu1 %v7182_v35, %s8218_s26 }
 0x4dc   : > { %2359 = vmatpush1.msra.mxu0 %v6669_v6  ;;  %v1976_v43 = vpop.permute.xlu1 %1975  ;;  %v7190_v20 = vpop.permute.xlu0 %1743 }
 0x4dd   : > { %v7194_v17 = vsel %vm513_vm13, %v1742_v32, %v7190_v20  ;;  %v7206_v6 = vsel %vm1979_vm15, %v7049_v40, %v1976_v43  ;;  %v7210_v28 = vsel %vm1979_vm15, %v1976_v43, %v6629_v18 }
 0x4de   : > { %2065 = vrot.lane.b32.xlu0 %v7194_v17, %s8218_s26 }
 0x4df   : > { %2063 = vrot.lane.b32.xlu1 %v7198_v39, %s8218_s26 }
 0x4e0   : > { %v1839_v37 = vpop.permute.xlu1 %1838  ;;  %v1944_v51 = vpop.permute.xlu0 %1943 }
 0x4e1   : > { %v7218_v53 = vsel %vm933_vm2, %v7046_v1, %v1944_v51  ;;  %v7222_v40 = vsel %vm933_vm2, %v1944_v51, %v6479_v9  ;;  %vm8261_vm2 = vmmov %vm8250_vm1 }
 0x4e2   : > { %2179 = vrot.lane.b32.xlu0 %v7206_v6, %s8218_s26 }
 0x4e3   : > { %2181 = vrot.lane.b32.xlu1 %v7210_v28, %s8218_s26 }
 0x4e4   : > { %v2047_v3 = vpop.permute.xlu1 %2046  ;;  %v1912_v31 = vpop.permute.xlu0 %1911 }
 0x4e5   : > { %v7230_v16 = vsel %vm863_vm6, %v7060_v58, %v1912_v31  ;;  %v7234_v1 = vsel %vm863_vm6, %v1912_v31, %v6494_v26  ;;  %v1852_v58 = vsel %vm1848_vm4, %v7024_v23, %v1839_v37  ;;  %v2055_v23 = vsel %vm2050_vm0, %v7107_v33, %v2047_v3  ;;  %v8263_v31 = vld [vmem:[#allocation18_spill] sm:$0xff] }
 0x4e6   : > { %2163 = vrot.lane.b32.xlu0 %v7218_v53, %s8218_s26  ;;  %v2056_v36 = vsel %vm2050_vm0, %v2047_v3, %v6631_v22 }
 0x4e7   : > { %2165 = vrot.lane.b32.xlu1 %v7222_v40, %s8218_s26 }
 0x4e8   : > { %v1810_v2 = vpop.permute.xlu1 %1809  ;;  %v1880_v49 = vpop.permute.xlu0 %1879 }
 0x4e9   : > { %v7242_v19 = vsel %vm793_vm9, %v7084_v47, %v1880_v49  ;;  %v7251_v25 = vsel %vm793_vm9, %v1880_v49, %v6507_v60  ;;  %v7277_v61 = vsel %vm1813_vm8, %v7135_v30, %v1810_v2  ;;  %v7282_v4 = vsel %vm1813_vm8, %v1810_v2, %v6633_v24  ;;  %vm8262_vm8 = vmmov %vm8250_vm1  ;;  %v8264_v2 = vld [vmem:[#allocation20_spill] sm:$0xff]  ;;  %v8265_v49 = vld [vmem:[#allocation21_spill] sm:$0xff] }
 0x4ea   : > { %2147 = vrot.lane.b32.xlu0 %v7230_v16, %s8218_s26 }
 0x4eb   : > { %2149 = vrot.lane.b32.xlu1 %v7234_v1, %s8218_s26 }
 0x4ec   : > { %v2003_v10 = vpop.permute.xlu1 %2002  ;;  %v1841_v5 = vpop.permute.xlu0 %1840 }
 0x4ed   : > { %v7245_v34 = vsel %vm1848_vm4, %v1839_v37, %v1841_v5  ;;  %v2017_v43 = vsel %vm2014_vm5, %v6893_v57, %v2003_v10 }
 0x4ee   : > { %2131 = vrot.lane.b32.xlu0 %v7242_v19, %s8218_s26  ;;  %2407 = vmatprep.subr.mxu1 %v7245_v34 }
 0x4ef   : > { %2133 = vrot.lane.b32.xlu1 %v7251_v25, %s8218_s26  ;;  %2408 = vmatpush1.msra.mxu1 %v1852_v58 }
 0x4f0   : > { %v7258_v47 = vpop.permute.xlu1 %1842  ;;  %2409 = vmatprep.subr.mxu1 %v7160_v12  ;;  %v1778_v54 = vpop.permute.xlu0 %1777 }
 0x4f1   : > { %v7265_v13 = vsel %vm1848_vm4, %v1841_v5, %v7258_v47  ;;  %2410 = vmatpush1.msra.mxu1 %v6984_v41  ;;  %v7292_v30 = vsel %vm8261_vm2, %v7170_v46, %v1778_v54  ;;  %v7302_v37 = vsel %vm8262_vm8, %v1778_v54, %v6529_v44  ;;  %v8267_v54 = vld [vmem:[#allocation22_spill] sm:$0xff] }
 0x4f2   : > { %2115 = vrot.lane.b32.xlu0 %v2055_v23, %s8218_s26  ;;  %2411 = vmatprep.subr.mxu1 %v7182_v35 }
 0x4f3   : > { %2117 = vrot.lane.b32.xlu1 %v2056_v36, %s8218_s26  ;;  %2412 = vmatpush1.msra.mxu1 %v7014_v29 }
 0x4f4   : > { %2413 = vmatprep.subr.mxu1 %v7198_v39  ;;  %v1746_v33 = vpop.permute.xlu0 %1745  ;;  %v2007_v27 = vpop.permute.xlu1 %2006 }
 0x4f5   : > { %2414 = vmatpush1.msra.mxu1 %v7018_v21  ;;  %v7313_v57 = vsel %vm513_vm13, %v7190_v20, %v1746_v33  ;;  %v7318_v3 = vsel %vm513_vm13, %v1746_v33, %v6192_v38  ;;  %v8270_v33 = vld [vmem:[#allocation16_spill] sm:$0xff] }
 0x4f6   : > { %2099 = vrot.lane.b32.xlu0 %v7277_v61, %s8218_s26  ;;  %2415 = vmatprep.subr.mxu1 %v6726_v63 }
 0x4f7   : > { %2101 = vrot.lane.b32.xlu1 %v7282_v4, %s8218_s26  ;;  %2416 = vmatpush1.msra.mxu1 %v6724_v15 }
 0x4f8   : > { %v2005_v45 = vpop.permute.xlu0 %2004 }
 0x4f9   : > { %v7295_v32 = vsel %vm2014_vm5, %v2005_v45, %v2007_v27  ;;  %v2018_v55 = vsel %vm2014_vm5, %v2003_v10, %v2005_v45  ;;  %v8266_v10 = vld [vmem:[#allocation23_spill] sm:$0xff] }
 0x4fa   : > { %2083 = vrot.lane.b32.xlu0 %v7292_v30, %s8218_s26  ;;  %2417 = vmatprep.subr.mxu1 %v2018_v55 }
 0x4fb   : > { %2085 = vrot.lane.b32.xlu1 %v7302_v37, %s8218_s26  ;;  %v2170_v46 = vpop.permute.xlu1 %2169  ;;  %2418 = vmatpush1.msra.mxu1 %v2017_v43 }
 0x4fc   : > { %2419 = vmatprep.subr.mxu1 %v6925_v52  ;;  %v7309_v51 = vpop.permute.xlu0 %1844 }
 0x4fd   : > { %2420 = vmatpush1.msra.mxu1 %v6916_v8 }
 0x4fe   : > { %2067 = vrot.lane.b32.xlu0 %v7313_v57, %s8218_s26  ;;  %2421 = vmatprep.subr.mxu1 %v8263_v31 }
 0x4ff   : > { %2069 = vrot.lane.b32.xlu1 %v7318_v3, %s8218_s26  ;;  %v2154_v52 = vpop.permute.xlu1 %2153  ;;  %2422 = vmatpush1.msra.mxu1 %v8264_v2 }
 0x500   : > { %2423 = vmatprep.subr.mxu1 %v8265_v49  ;;  %v2009_v20 = vpop.permute.xlu0 %2008 }
 0x501   : > { %2424 = vmatpush1.msra.mxu1 %v8266_v10  ;;  %v7329_v8 = vsel %vm2014_vm5, %v2007_v27, %v2009_v20 }
 0x502   : > { %2183 = vrot.lane.b32.xlu0 %v6629_v18, %s8218_s26  ;;  %2425 = vmatprep.subr.mxu1 %v6960_v0  ;;  %v8268_v18 = vld [vmem:[#allocation24_spill] sm:$0xff] }
 0x503   : > { %2167 = vrot.lane.b32.xlu1 %v6479_v9, %s8218_s26  ;;  %v2138_v5 = vpop.permute.xlu1 %2137  ;;  %2426 = vmatpush1.msra.mxu1 %v8267_v54 }
 0x504   : > { %2427 = vmatprep.subr.mxu1 %v1852_v58  ;;  %v7337_v23 = vpop.permute.xlu0 %2010 }
 0x505   : > { %v7341_v36 = vsel %vm2014_vm5, %v2009_v20, %v7337_v23  ;;  %2428 = vmatpush1.msra.mxu1 %v7036_v50  ;;  %v8269_v50 = vld [vmem:[#allocation26_spill] sm:$0xff] }
 0x506   : > { %2151 = vrot.lane.b32.xlu0 %v6494_v26, %s8218_s26  ;;  %2429 = vmatprep.subr.mxu1 %v6984_v41 }
 0x507   : > { %2135 = vrot.lane.b32.xlu1 %v6507_v60, %s8218_s26  ;;  %v2106_v9 = vpop.permute.xlu1 %2105  ;;  %2430 = vmatpush1.msra.mxu1 %v8268_v18 }
 0x508   : > { %2431 = vmatprep.subr.mxu1 %v7014_v29  ;;  %v2122_v0 = vpop.permute.xlu0 %2121 }
 0x509   : > { %2432 = vmatpush1.msra.mxu1 %v6995_v11 }
 0x50a   : > { %2119 = vrot.lane.b32.xlu0 %v6631_v22, %s8218_s26  ;;  %2433 = vmatprep.subr.mxu1 %v7018_v21  ;;  %v2310_v22 = vld [vmem:[%s8134_s4] sm:$0xff]  ;;  %v2311_v21 = vld [vmem:[%s8134_s4 + $0x8] sm:$0xff] }
 0x50b   : > { %2103 = vrot.lane.b32.xlu1 %v6633_v24, %s8218_s26  ;;  %v2074_v41 = vpop.permute.xlu1 %2073  ;;  %2434 = vmatpush1.msra.mxu1 %v8269_v50 }
 0x50c   : > { %2435 = vmatprep.subr.mxu1 %v6724_v15  ;;  %v2090_v58 = vpop.permute.xlu0 %2089 }
 0x50d   : > { %2436 = vmatpush1.msra.mxu1 %v8270_v33 }
 0x50e   : > { %2087 = vrot.lane.b32.xlu0 %v6529_v44, %s8218_s26 }
 0x50f   : > { %2071 = vrot.lane.b32.xlu1 %v6192_v38, %s8218_s26  ;;  %s4412_s26 = sshll.u32 %s5378_s25, 4  ;;  %s5196_s25 = sshll.u32 %s5291_s20, 4  ;;  %s5197_s25 = int_to_ptr.vmem [resolvable:$false] %s5196_s25 }
 0x510   : > { %v2172_v11 = vpop.permute.xlu1 %2171  ;;  %v2058_v29 = vpop.permute.xlu0 %2057  ;;  %s8095_s29 = scalar_lea.hbm %s8142_s12, %s4412_s26  ;;  %s5198_s15 = scalar_lea.vmem %s5197_s25, 32 }
 0x511   : > { %v2238_v55 = vsel %vm863_vm6, %v2170_v46, %v2172_v11  ;;  %p5199_p11 = scmp.lt.s32.totalorder %s4314_s16, %s5197_s25 }
 0x512   : > { %2314 = vperm.xlu0 %5059, %v2310_v22  }
 0x513   : > { %2319 = vperm.xlu1 %5060, %v2311_v21  }
 0x514   : > { %v7370_v15 = vpop.permute.xlu1 %2157  ;;  %v2174_v27 = vpop.permute.xlu0 %2173 }
 0x515   : > { %v2239_v45 = vsel %vm863_vm6, %v2172_v11, %v2174_v27 }
 0x516   : > { %2374 = vmatprep.subr.mxu0 %v2239_v45 }
 0x517   : > { %2375 = vmatpush2.msra.mxu0 %v2238_v55 }
 0x518   : > { %v7374_v43 = vpop.permute.xlu1 %2141  ;;  %v2156_v31 = vpop.permute.xlu0 %2155 }
 0x519   : > { %v2231_v2 = vsel %vm863_vm6, %v2154_v52, %v2156_v31  ;;  %v2232_v20 = vsel %vm863_vm6, %v2156_v31, %v7370_v15 }
 0x51a   : > { %2376 = vmatprep.subr.mxu0 %v2232_v20 }
 0x51b   : > { %2377 = vmatpush2.msra.mxu0 %v2231_v2 }
 0x51c   : > { %v2140_v54 = vpop.permute.xlu0 %2139 }
 0x51d   : > { %v7379_v18 = vpop.permute.xlu1 %2125  ;;  %v2224_v50 = vsel %vm863_vm6, %v2138_v5, %v2140_v54  ;;  %v2225_v46 = vsel %vm863_vm6, %v2140_v54, %v7374_v43 }
 0x51e   : > { %2378 = vmatprep.subr.mxu0 %v2225_v46 }
 0x51f   : > { %2379 = vmatpush2.msra.mxu0 %v2224_v50 }
 0x520   : > { %v2124_v33 = vpop.permute.xlu0 %2123 }
 0x521   : > { %v2108_v22 = vpop.permute.xlu1 %2107  ;;  %v2217_v11 = vsel %vm863_vm6, %v2122_v0, %v2124_v33  ;;  %v2218_v52 = vsel %vm863_vm6, %v2124_v33, %v7379_v18 }
 0x522   : > { %2380 = vmatprep.subr.mxu0 %v2218_v52  ;;  %v2209_v55 = vsel %vm863_vm6, %v2106_v9, %v2108_v22  ;;  %v7410_v52 = vld [vmem:[%s8133_s3] sm:$0xff] }
 0x523   : > { %2381 = vmatpush2.msra.mxu0 %v2217_v11 }
 0x524   : > { %v7387_v21 = vpop.permute.xlu0 %2109 }
 0x525   : > { %v7389_v45 = vpop.permute.xlu1 %2093  ;;  %v2210_v5 = vsel %vm863_vm6, %v2108_v22, %v7387_v21 }
 0x526   : > { %2382 = vmatprep.subr.mxu0 %v2210_v5 }
 0x527   : > { %2383 = vmatpush2.msra.mxu0 %v2209_v55 }
 0x528   : > { %v2092_v31 = vpop.permute.xlu0 %2091 }
 0x529   : > { %v2076_v2 = vpop.permute.xlu1 %2075  ;;  %v2201_v0 = vsel %vm863_vm6, %v2090_v58, %v2092_v31  ;;  %v2202_v20 = vsel %vm863_vm6, %v2092_v31, %v7389_v45 }
 0x52a   : > { %2384 = vmatprep.subr.mxu0 %v2202_v20  ;;  %v2193_v9 = vsel %vm863_vm6, %v2074_v41, %v2076_v2 }
 0x52b   : > { %2385 = vmatpush2.msra.mxu0 %v2201_v0 }
 0x52c   : > { %v7397_v54 = vpop.permute.xlu0 %2077 }
 0x52d   : > { %v7399_v50 = vpop.permute.xlu1 %2061  ;;  %v2194_v46 = vsel %vm863_vm6, %v2076_v2, %v7397_v54 }
 0x52e   : > { %2386 = vmatprep.subr.mxu0 %v2194_v46 }
 0x52f   : > { %2387 = vmatpush2.msra.mxu0 %v2193_v9  ;;  %v8271_v9 = vld [vmem:[#allocation25_spill] sm:$0xff] }
 0x530   : > { %v2060_v33 = vpop.permute.xlu0 %2059 }
 0x531   : > { %v2185_v22 = vsel %vm863_vm6, %v2058_v29, %v2060_v33  ;;  %v2186_v58 = vsel %vm863_vm6, %v2060_v33, %v7399_v50  ;;  %v2176_v11 = vpop.permute.xlu1 %2175  ;;  %v7421_v29 = vld [vmem:[%s8133_s3 + $0x18] sm:$0xff] }
 0x532   : > { %2388 = vmatprep.subr.mxu0 %v2186_v58  ;;  %v2240_v55 = vsel %vm863_vm6, %v2174_v27, %v2176_v11  ;;  %v8272_v58 = vld [vmem:[#allocation19_spill] sm:$0xff] }
 0x533   : > { %2389 = vmatpush2.msra.mxu0 %v2185_v22 }
 0x534   : > { %2390 = vmatprep.subr.mxu0 %v8266_v10  ;;  %v7413_v5 = vpop.permute.xlu0 %2177 }
 0x535   : > { %2391 = vmatpush2.msra.mxu0 %v7115_v62  ;;  %v2241_v41 = vsel %vm863_vm6, %v2176_v11, %v7413_v5  ;;  %v7430_v62 = vsel %vm1848_vm4, %v7258_v47, %v7309_v51  ;;  %v7445_v47 = vld [vmem:[%s8133_s3 + $0x10] sm:$0xff]  ;;  %v8273_v11 = vld [vmem:[#allocation17_spill] sm:$0xff] }
 0x536   : > { %2393 = vmatmul.mubr.f32.vlgmr.msra.gmra.mxu0 %v7410_v52  ;;  %2451 = vmatprep.subr.mxu1 %v2241_v41 }
 0x537   : > { %2482 = vmatprep.subr.mxu0 %v7242_v19  ;;  %2452 = vmatpush2.msra.mxu1 %v2240_v55 }
 0x538   : > { %2483 = vmatpush1.msra.mxu0 %v7119_v48  ;;  %v7432_v10 = vpop.permute.xlu0 %2161  ;;  %4405 = vmatprep.mubr.msk.f32.mxu0 %vm1322_vm14, %v7421_v29 }
 0x539   : > { %v2160_v31 = vpop.permute.xlu1 %2159  ;;  %2484 = vmatprep.subr.mxu0 %v7430_v62 }
 0x53a   : > { %v2233_v27 = vsel %vm863_vm6, %v7370_v15, %v2160_v31  ;;  %2485 = vmatpush1.msra.mxu0 %v7265_v13  ;;  %v2234_v2 = vsel %vm863_vm6, %v2160_v31, %v7432_v10 }
 0x53b   : > { %2453 = vmatprep.subr.mxu1 %v2234_v2  ;;  %2486 = vmatprep.subr.mxu0 %v7277_v61 }
 0x53c   : > { %2454 = vmatpush2.msra.mxu1 %v2233_v27  ;;  %2487 = vmatpush1.msra.mxu0 %v7156_v7  ;;  %v7449_v0 = vpop.permute.xlu0 %2145  ;;  %v8274_v27 = vld [vmem:[#allocation28_spill] sm:$0xff] }
 0x53d   : > { %v2144_v20 = vpop.permute.xlu1 %2143  ;;  %2488 = vmatprep.subr.mxu0 %v7292_v30  ;;  %2399 = vmatmul.mubr.f32.gmra.mxu0 %v7445_v47 }
 0x53e   : > { %v2226_v15 = vsel %vm863_vm6, %v7374_v43, %v2144_v20  ;;  %2489 = vmatpush1.msra.mxu0 %v7178_v42  ;;  %v2227_v46 = vsel %vm863_vm6, %v2144_v20, %v7449_v0  ;;  %4408 = vmatprep.mubr.msk.f32.mxu0 %vm1322_vm14, %v8271_v9 }
 0x53f   : > { %2455 = vmatprep.subr.mxu1 %v2227_v46  ;;  %2490 = vmatprep.subr.mxu0 %v7313_v57 }
 0x540   : > { %2456 = vmatpush2.msra.mxu1 %v2226_v15  ;;  %2491 = vmatpush1.msra.mxu0 %v7194_v17  ;;  %v7462_v33 = vpop.permute.xlu0 %2129  ;;  %v8276_v15 = vld [vmem:[#allocation29_spill] sm:$0xff] }
 0x541   : > { %v2128_v22 = vpop.permute.xlu1 %2127  ;;  %2492 = vmatprep.subr.mxu0 %v8272_v58 }
 0x542   : > { %v2219_v43 = vsel %vm863_vm6, %v7379_v18, %v2128_v22  ;;  %2493 = vmatpush1.msra.mxu0 %v8273_v11  ;;  %v2220_v41 = vsel %vm863_vm6, %v2128_v22, %v7462_v33  ;;  %v8275_v18 = vld [vmem:[#allocation27_spill] sm:$0xff] }
 0x543   : > { %2457 = vmatprep.subr.mxu1 %v2220_v41  ;;  %2494 = vmatprep.subr.mxu0 %v7329_v8  ;;  %v8277_v8 = vld [vmem:[#allocation30_spill] sm:$0xff] }
 0x544   : > { %2458 = vmatpush2.msra.mxu1 %v2219_v43  ;;  %2495 = vmatpush1.msra.mxu0 %v7295_v32  ;;  %v7472_v55 = vpop.permute.xlu0 %2113 }
 0x545   : > { %v2112_v31 = vpop.permute.xlu1 %2111  ;;  %2496 = vmatprep.subr.mxu0 %v8274_v27  ;;  %v8280_v27 = vld [vmem:[#allocation15_spill] sm:$0xff] }
 0x546   : > { %v2211_v2 = vsel %vm863_vm6, %v7387_v21, %v2112_v31  ;;  %2497 = vmatpush1.msra.mxu0 %v8275_v18  ;;  %v2212_v20 = vsel %vm863_vm6, %v2112_v31, %v7472_v55 }
 0x547   : > { %2459 = vmatprep.subr.mxu1 %v2212_v20  ;;  %2498 = vmatprep.subr.mxu0 %v8276_v15 }
 0x548   : > { %2460 = vmatpush2.msra.mxu1 %v2211_v2  ;;  %2499 = vmatpush1.msra.mxu0 %v8277_v8  ;;  %v7482_v32 = vpop.permute.xlu0 %2097  ;;  %v8281_v2 = vld [vmem:[#allocation14_spill] sm:$0xff] }
 0x549   : > { %v2096_v46 = vpop.permute.xlu1 %2095  ;;  %2500 = vmatprep.subr.mxu0 %v7091_v59  ;;  %v2022_v18 = vsel %vm2014_vm5, %v7337_v23, %v8281_v2 }
 0x54a   : > { %v2203_v22 = vsel %vm863_vm6, %v7389_v45, %v2096_v46  ;;  %2501 = vmatpush1.msra.mxu0 %v7095_v56  ;;  %v2204_v21 = vsel %vm863_vm6, %v2096_v46, %v7482_v32 }
 0x54b   : > { %2461 = vmatprep.subr.mxu1 %v2204_v21  ;;  %2502 = vmatprep.subr.mxu0 %v7119_v48 }
 0x54c   : > { %2462 = vmatpush2.msra.mxu1 %v2203_v22  ;;  %2503 = vmatpush1.msra.mxu0 %v7123_v14  ;;  %v7492_v43 = vpop.permute.xlu0 %2081 }
 0x54d   : > { %v2080_v41 = vpop.permute.xlu1 %2079  ;;  %2504 = vmatprep.subr.mxu0 %v7265_v13 }
 0x54e   : > { %v2195_v31 = vsel %vm863_vm6, %v7397_v54, %v2080_v41  ;;  %2505 = vmatpush1.msra.mxu0 %v7245_v34  ;;  %v2196_v45 = vsel %vm863_vm6, %v2080_v41, %v7492_v43 }
 0x54f   : > { %2463 = vmatprep.subr.mxu1 %v2196_v45  ;;  %2506 = vmatprep.subr.mxu0 %v7156_v7 }
 0x550   : > { %2464 = vmatpush2.msra.mxu1 %v2195_v31  ;;  %2507 = vmatpush1.msra.mxu0 %v7160_v12  ;;  %v7502_v48 = vpop.permute.xlu0 %2065 }
 0x551   : > { %v2064_v14 = vpop.permute.xlu1 %2063  ;;  %2508 = vmatprep.subr.mxu0 %v7178_v42 }
 0x552   : > { %v2187_v13 = vsel %vm863_vm6, %v7399_v50, %v2064_v14  ;;  %2509 = vmatpush1.msra.mxu0 %v7182_v35  ;;  %v2188_v34 = vsel %vm863_vm6, %v2064_v14, %v7502_v48 }
 0x553   : > { %2465 = vmatprep.subr.mxu1 %v2188_v34  ;;  %2510 = vmatprep.subr.mxu0 %v7194_v17 }
 0x554   : > { %2466 = vmatpush2.msra.mxu1 %v2187_v13  ;;  %2511 = vmatpush1.msra.mxu0 %v7198_v39  ;;  %v2180_v7 = vpop.permute.xlu0 %2179 }
 0x555   : > { %v7512_v12 = vpop.permute.xlu1 %2181  ;;  %2467 = vmatprep.subr.mxu1 %v7095_v56  ;;  %2512 = vmatprep.subr.mxu0 %v8273_v11  ;;  %v2242_v42 = vsel %vm863_vm6, %v7413_v5, %v2180_v7 }
 0x556   : > { %2468 = vmatpush2.msra.mxu1 %v8265_v49  ;;  %2513 = vmatpush1.msra.mxu0 %v6726_v63  ;;  %v2243_v35 = vsel %vm863_vm6, %v2180_v7, %v7512_v12  ;;  %v8278_v63 = vld [vmem:[#allocation13_spill] sm:$0xff] }
 0x557   : > { %2470 = vmatmul.mubr.f32.vlgmr.msra.gmra.mxu1 %v7410_v52  ;;  %2528 = vmatprep.subr.mxu0 %v2243_v35  ;;  %v1856_v49 = vsel %vm1848_vm4, %v7309_v51, %v8278_v63 }
 0x558   : > { %2559 = vmatprep.subr.mxu1 %v6507_v60  ;;  %2529 = vmatpush2.msra.mxu0 %v2242_v42  ;;  %v2164_v17 = vpop.permute.xlu0 %2163 }
 0x559   : > { %2560 = vmatpush1.msra.mxu1 %v7251_v25  ;;  %v7525_v56 = vpop.permute.xlu1 %2165  ;;  %v2235_v39 = vsel %vm863_vm6, %v7432_v10, %v2164_v17  ;;  %4407 = vmatprep.mubr.msk.f32.mxu1 %vm1322_vm14, %v7421_v29 }
 0x55a   : > { %2561 = vmatprep.subr.mxu1 %v8278_v63  ;;  %v2236_v60 = vsel %vm863_vm6, %v2164_v17, %v7525_v56 }
 0x55b   : > { %2562 = vmatpush1.msra.mxu1 %v1856_v49  ;;  %2530 = vmatprep.subr.mxu0 %v2236_v60 }
 0x55c   : > { %2563 = vmatprep.subr.mxu1 %v6633_v24  ;;  %2531 = vmatpush2.msra.mxu0 %v2235_v39  ;;  %v2148_v54 = vpop.permute.xlu0 %2147 }
 0x55d   : > { %2564 = vmatpush1.msra.mxu1 %v7282_v4  ;;  %v7539_v50 = vpop.permute.xlu1 %2149  ;;  %v2228_v5 = vsel %vm863_vm6, %v7449_v0, %v2148_v54 }
 0x55e   : > { %2476 = vmatmul.mubr.f32.gmra.mxu1 %v7445_v47  ;;  %2565 = vmatprep.subr.mxu1 %v6529_v44  ;;  %v2229_v51 = vsel %vm863_vm6, %v2148_v54, %v7539_v50  ;;  %v8279_v44 = vmov 0.0  }
 0x55f   : > { %2566 = vmatpush1.msra.mxu1 %v7302_v37  ;;  %2532 = vmatprep.subr.mxu0 %v2229_v51 }
 0x560   : > { %2567 = vmatprep.subr.mxu1 %v6192_v38  ;;  %2533 = vmatpush2.msra.mxu0 %v2228_v5  ;;  %v2132_v24 = vpop.permute.xlu0 %2131 }
 0x561   : > { %2568 = vmatpush1.msra.mxu1 %v7318_v3  ;;  %v7550_v10 = vpop.permute.xlu1 %2133  ;;  %v2221_v0 = vsel %vm863_vm6, %v7462_v33, %v2132_v24  ;;  %4410 = vmatprep.mubr.msk.f32.mxu1 %vm1322_vm14, %v8271_v9 }
 0x562   : > { %2569 = vmatprep.subr.mxu1 %v8279_v44  ;;  %v2222_v11 = vsel %vm863_vm6, %v2132_v24, %v7550_v10 }
 0x563   : > { %2570 = vmatpush1.msra.mxu1 %v8280_v27  ;;  %2534 = vmatprep.subr.mxu0 %v2222_v11 }
 0x564   : > { %2571 = vmatprep.subr.mxu1 %v2022_v18  ;;  %2535 = vmatpush2.msra.mxu0 %v2221_v0  ;;  %v2116_v20 = vpop.permute.xlu0 %2115 }
 0x565   : > { %2572 = vmatpush1.msra.mxu1 %v7341_v36  ;;  %v7564_v33 = vpop.permute.xlu1 %2117  ;;  %v2213_v9 = vsel %vm863_vm6, %v7472_v55, %v2116_v20 }
 0x566   : > { %2573 = vmatprep.subr.mxu1 %v7210_v28  ;;  %v2214_v15 = vsel %vm863_vm6, %v2116_v20, %v7564_v33 }
 0x567   : > { %2574 = vmatpush1.msra.mxu1 %v7206_v6  ;;  %2536 = vmatprep.subr.mxu0 %v2214_v15 }
 0x568   : > { %2575 = vmatprep.subr.mxu1 %v7222_v40  ;;  %2537 = vmatpush2.msra.mxu0 %v2213_v9  ;;  %v2100_v23 = vpop.permute.xlu0 %2099 }
 0x569   : > { %2576 = vmatpush1.msra.mxu1 %v7218_v53  ;;  %v2102_v36 = vpop.permute.xlu1 %2101  ;;  %v2205_v8 = vsel %vm863_vm6, %v7482_v32, %v2100_v23 }
 0x56a   : > { %2577 = vmatprep.subr.mxu1 %v7234_v1  ;;  %v2206_v28 = vsel %vm863_vm6, %v2100_v23, %v2102_v36 }
 0x56b   : > { %2578 = vmatpush1.msra.mxu1 %v7230_v16  ;;  %2538 = vmatprep.subr.mxu0 %v2206_v28 }
 0x56c   : > { %2579 = vmatprep.subr.mxu1 %v7251_v25  ;;  %2539 = vmatpush2.msra.mxu0 %v2205_v8  ;;  %v2084_v6 = vpop.permute.xlu0 %2083 }
 0x56d   : > { %2580 = vmatpush1.msra.mxu1 %v7242_v19  ;;  %v2086_v40 = vpop.permute.xlu1 %2085  ;;  %v2197_v53 = vsel %vm863_vm6, %v7492_v43, %v2084_v6 }
 0x56e   : > { %2581 = vmatprep.subr.mxu1 %v1856_v49  ;;  %v2198_v55 = vsel %vm863_vm6, %v2084_v6, %v2086_v40 }
 0x56f   : > { %2582 = vmatpush1.msra.mxu1 %v7430_v62  ;;  %2540 = vmatprep.subr.mxu0 %v2198_v55 }
 0x570   : > { %2583 = vmatprep.subr.mxu1 %v7282_v4  ;;  %2541 = vmatpush2.msra.mxu0 %v2197_v53  ;;  %v2068_v32 = vpop.permute.xlu0 %2067 }
 0x571   : > { %2584 = vmatpush1.msra.mxu1 %v7277_v61  ;;  %v2070_v25 = vpop.permute.xlu1 %2069  ;;  %v2189_v19 = vsel %vm863_vm6, %v7502_v48, %v2068_v32 }
 0x572   : > { %2585 = vmatprep.subr.mxu1 %v7302_v37  ;;  %v2190_v46 = vsel %vm863_vm6, %v2068_v32, %v2070_v25 }
 0x573   : > { %2586 = vmatpush1.msra.mxu1 %v7292_v30  ;;  %2542 = vmatprep.subr.mxu0 %v2190_v46 }
 0x574   : > { %2587 = vmatprep.subr.mxu1 %v7318_v3  ;;  %2543 = vmatpush2.msra.mxu0 %v2189_v19  ;;  %v2184_v62 = vpop.permute.xlu0 %2183 }
 0x575   : > { %2588 = vmatpush1.msra.mxu1 %v7313_v57  ;;  %v2168_v4 = vpop.permute.xlu1 %2167  ;;  %2544 = vmatprep.subr.mxu0 %v7230_v16  ;;  %v2244_v61 = vsel %vm863_vm6, %v7512_v12, %v2184_v62 }
 0x576   : > { %2589 = vmatprep.subr.mxu1 %v8280_v27  ;;  %2545 = vmatpush2.msra.mxu0 %v7091_v59  ;;  %v2237_v16 = vsel %vm863_vm6, %v7525_v56, %v2168_v4 }
 0x577   : > { %2590 = vmatpush1.msra.mxu1 %v8272_v58  ;;  %2547 = vmatmul.mubr.f32.vlgmr.msra.gmra.mxu0 %v7410_v52 }
 0x578   : > { %2605 = vmatprep.subr.mxu1 %v2184_v62  ;;  %v2152_v30 = vpop.permute.xlu0 %2151  ;;  %4409 = vmatprep.mubr.msk.f32.mxu0 %vm1322_vm14, %v7421_v29 }
 0x579   : > { %2606 = vmatpush2.msra.mxu1 %v2244_v61  ;;  %v2136_v37 = vpop.permute.xlu1 %2135  ;;  %v2230_v57 = vsel %vm863_vm6, %v7539_v50, %v2152_v30 }
 0x57a   : > { %2607 = vmatprep.subr.mxu1 %v2168_v4  ;;  %v2223_v58 = vsel %vm863_vm6, %v7550_v10, %v2136_v37 }
 0x57b   : > { %2608 = vmatpush2.msra.mxu1 %v2237_v16  ;;  %2553 = vmatmul.mubr.f32.gmra.mxu0 %v7445_v47  ;;  %v2879_v16 = vld [vmem:[#allocation2 + $0xf8] sm:$0xff] }
 0x57c   : > { %2609 = vmatprep.subr.mxu1 %v2152_v30  ;;  %v2120_v59 = vpop.permute.xlu0 %2119  ;;  %4416 = vmatprep.subr.mxu0 %v2879_v16  ;;  %v2872_v16 = vld [vmem:[#allocation2 + $0xc0] sm:$0xff] }
 0x57d   : > { %2610 = vmatpush2.msra.mxu1 %v2230_v57  ;;  %v2104_v3 = vpop.permute.xlu1 %2103  ;;  %v2215_v22 = vsel %vm863_vm6, %v7564_v33, %v2120_v59  ;;  %v2863_v57 = vld [vmem:[#allocation2 + $0x78] sm:$0xff] }
 0x57e   : > { %2611 = vmatprep.subr.mxu1 %v2136_v37  ;;  %v2207_v43 = vsel %vm863_vm6, %v2102_v36, %v2104_v3  ;;  %4417 = vmatpush3.msra.mxu0 %v2863_v57  ;;  %v2889_v57 = vld [vmem:[#allocation2 + $0x148] sm:$0xff] }
 0x57f   : > { %2612 = vmatpush2.msra.mxu1 %v2223_v58 }
 0x580   : > { %2613 = vmatprep.subr.mxu1 %v2120_v59  ;;  %v2088_v21 = vpop.permute.xlu0 %2087 }
 0x581   : > { %2614 = vmatpush2.msra.mxu1 %v2215_v22  ;;  %v2199_v41 = vsel %vm863_vm6, %v2086_v40, %v2088_v21  ;;  %v2072_v31 = vpop.permute.xlu1 %2071 }
 0x582   : > { %2615 = vmatprep.subr.mxu1 %v2104_v3  ;;  %v2191_v45 = vsel %vm863_vm6, %v2070_v25, %v2072_v31  ;;  %vm5290_vm6 = vmmov 0  }
 0x583   : > { %2616 = vmatpush2.msra.mxu1 %v2207_v43  ;;  %v2878_v43 = vld [vmem:[#allocation2 + $0xf0] sm:$0xff] }
 0x584   : > { %2617 = vmatprep.subr.mxu1 %v2088_v21  ;;  %v2911_v21 = vld [vmem:[#allocation2 + $0x1f8] sm:$0xff]  ;;  %4418 = vmatprep.subr.mxu0 %v2878_v43 }
 0x585   : > { %2618 = vmatpush2.msra.mxu1 %v2199_v41  ;;  %v2895_v41 = vld [vmem:[#allocation2 + $0x178] sm:$0xff] }
 0x586   : > { %2619 = vmatprep.subr.mxu1 %v2072_v31  ;;  %v2871_v43 = vld [vmem:[#allocation2 + $0xb8] sm:$0xff] }
 0x587   : > { %2620 = vmatpush2.msra.mxu1 %v2191_v45 }
 0x588   : > { %2621 = vmatprep.subr.mxu1 %v6494_v26 }
 0x589   : > { %2622 = vmatpush2.msra.mxu1 %v7234_v1 }
 0x58a   : > { %2624 = vmatmul.mubr.f32.vlgmr.msra.gmra.mxu1 %v7410_v52  ;;  %4454 = vmatprep.subr.mxu1 %v2911_v21  ;;  %v2904_v21 = vld [vmem:[#allocation2 + $0x1c0] sm:$0xff] }
 0x58b   : > { %4411 = vmatprep.mubr.msk.f32.mxu1 %vm1322_vm14, %v7421_v29  ;;  %4455 = vmatpush3.msra.mxu1 %v2895_v41  ;;  %v2888_v41 = vld [vmem:[#allocation2 + $0x140] sm:$0xff] }
 0x58d   : > { %v2315_v34 = vpop.permute.xlu0 %2314 }
 0x58e   : > { %2630 = vmatmul.mubr.f32.gmra.mxu1 %v7445_v47  ;;  %v7627_v26 = vpop.permute.xlu1 %2319 }
 0x5f6   : > { %v2394_v48 = vpop.f32.mrf.mxu0 }
 0x5f7   : > { %v7623_v42 = vadd.f32 %v2394_v48, %v2315_v34  ;;  %v2862_v48 = vld [vmem:[#allocation2 + $0x70] sm:$0xff] }
 0x5f8   : > { %v2396_v14 = vpop.f32.mrf.mxu0  ;;  %4419 = vmatpush3.msra.mxu0 %v2862_v48  ;;  %v2903_v48 = vld [vmem:[#allocation2 + $0x1b8] sm:$0xff] }
 0x5f9   : > { %v7621_v7 = vadd.f32 %v2396_v14, %v2315_v34  ;;  %v2636_v39 = vmax.f32 %v7623_v42, 0.0  ;;  %v2910_v14 = vld [vmem:[#allocation2 + $0x1f0] sm:$0xff] }
 0x5fa   : > { %4456 = vmatprep.subr.mxu1 %v2910_v14  ;;  %v2870_v14 = vld [vmem:[#allocation2 + $0xb0] sm:$0xff] }
 0x5fb   : > { %v2637_v17 = vmax.f32 %v7621_v7, 0.0  ;;  %v2907_v7 = vld [vmem:[#allocation2 + $0x1d8] sm:$0xff] }
 0x5fd   : > { %v2400_v13 = vpop.f32.mrf.mxu0 }
 0x5fe   : > { %v7659_v11 = vadd.f32 %v2400_v13, %v7627_v26  ;;  %v2877_v13 = vld [vmem:[#allocation2 + $0xe8] sm:$0xff] }
 0x5ff   : > { %v2402_v1 = vpop.f32.mrf.mxu0  ;;  %4420 = vmatprep.subr.mxu0 %v2877_v13  ;;  %v2887_v13 = vld [vmem:[#allocation2 + $0x138] sm:$0xff] }
 0x600   : > { %v7634_v56 = vadd.f32 %v2402_v1, %v7627_v26  ;;  %v2644_v9 = vmax.f32 %v7659_v11, 0.0  ;;  %v2909_v1 = vld [vmem:[#allocation2 + $0x1e8] sm:$0xff] }
 0x602   : > { %v2645_v50 = vmax.f32 %v7634_v56, 0.0 }
 0x617   : > { %v2471_v12 = vpop.f32.mrf.mxu1 }
 0x618   : > { %v7625_v35 = vadd.f32 %v2471_v12, %v2315_v34  ;;  %v2861_v12 = vld [vmem:[#allocation2 + $0x68] sm:$0xff] }
 0x619   : > { %v2473_v52 = vpop.f32.mrf.mxu1  ;;  %4421 = vmatpush3.msra.mxu0 %v2861_v12  ;;  %v2902_v12 = vld [vmem:[#allocation2 + $0x1b0] sm:$0xff] }
 0x61a   : > { %v2638_v29 = vmax.f32 %v7625_v35, 0.0  ;;  %v7631_v47 = vadd.f32 %v2473_v52, %v2315_v34  ;;  %v2891_v35 = vld [vmem:[#allocation2 + $0x158] sm:$0xff] }
 0x61c   : > { %v5061_v63 = vpack.i.bf16 %v2638_v29, %v2637_v17  ;;  %v2639_v49 = vmax.f32 %v7631_v47, 0.0 }
 0x61e   : > { %v5066_v60 = vpack.i.bf16 %v2636_v39, %v2639_v49  ;;  %v2477_v54 = vpop.f32.mrf.mxu1  ;;  %5062 = vrot.lane.b32.xlu0 %v5061_v63, %s5272_s23  ;;  %v2876_v63 = vld [vmem:[#allocation2 + $0xe0] sm:$0xff] }
 0x61f   : > { %v7649_v5 = vadd.f32 %v2477_v54, %v7627_v26  ;;  %v2860_v54 = vld [vmem:[#allocation2 + $0x60] sm:$0xff]  ;;  %4422 = vmatprep.subr.mxu0 %v2876_v63  ;;  %v2853_v63 = vld [vmem:[#allocation2 + $0x28] sm:$0xff] }
 0x620   : > { %5067 = vrot.lane.b32.xlu1 %v5066_v60, %s5272_s23  ;;  %v2479_v10 = vpop.f32.mrf.mxu1  ;;  %v2893_v60 = vld [vmem:[#allocation2 + $0x168] sm:$0xff]  ;;  %4423 = vmatpush3.msra.mxu0 %v2860_v54  ;;  %v2868_v54 = vld [vmem:[#allocation2 + $0xa0] sm:$0xff] }
 0x621   : > { %v2646_v51 = vmax.f32 %v7649_v5, 0.0  ;;  %v7664_v2 = vadd.f32 %v2479_v10, %v7627_v26 }
 0x623   : > { %v5076_v24 = vpack.i.bf16 %v2646_v51, %v2645_v50  ;;  %v2647_v8 = vmax.f32 %v7664_v2, 0.0 }
 0x625   : > { %5077 = vrot.lane.b32.xlu1 %v5076_v24, %s5272_s23  ;;  %v5081_v55 = vpack.i.bf16 %v2644_v9, %v2647_v8 }
 0x637   : > { %v2548_v0 = vpop.f32.mrf.mxu0 }
 0x638   : > { %v7661_v27 = vadd.f32 %v2548_v0, %v2315_v34  ;;  %v2908_v0 = vld [vmem:[#allocation2 + $0x1e0] sm:$0xff] }
 0x639   : > { %v2550_v18 = vpop.f32.mrf.mxu0 }
 0x63a   : > { %v7666_v20 = vadd.f32 %v2550_v18, %v2315_v34  ;;  %v2640_v15 = vmax.f32 %v7661_v27, 0.0  ;;  %v2875_v18 = vld [vmem:[#allocation2 + $0xd8] sm:$0xff] }
 0x63b   : > { %v2554_v33 = vpop.f32.mrf.mxu0  ;;  %4424 = vmatprep.subr.mxu0 %v2875_v18  ;;  %v2852_v18 = vld [vmem:[#allocation2 + $0x20] sm:$0xff] }
 0x63c   : > { %v2641_v23 = vmax.f32 %v7666_v20, 0.0  ;;  %v7672_v36 = vadd.f32 %v2554_v33, %v7627_v26  ;;  %v2892_v33 = vld [vmem:[#allocation2 + $0x160] sm:$0xff] }
 0x63d   : > { %v2556_v28 = vpop.f32.mrf.mxu0 }
 0x63e   : > { %v5071_v6 = vpack.i.bf16 %v2641_v23, %v2640_v15  ;;  %v2648_v40 = vmax.f32 %v7672_v36, 0.0  ;;  %v7681_v53 = vadd.f32 %v2556_v28, %v7627_v26 }
 0x640   : > { %v2649_v32 = vmax.f32 %v7681_v53, 0.0  ;;  %5072 = vrot.lane.b32.xlu0 %v5071_v6, %s5272_s23  ;;  %v2859_v6 = vld [vmem:[#allocation2 + $0x58] sm:$0xff]  ;;  %v2916_v53 = vld [vmem:[#allocation2 + $0x220] sm:$0xff] }
 0x641   : > { %4425 = vmatpush3.msra.mxu0 %v2859_v6  ;;  %v2884_v6 = vld [vmem:[#allocation2 + $0x120] sm:$0xff] }
 0x642   : > { %v5086_v25 = vpack.i.bf16 %v2649_v32, %v2648_v40 }
 0x644   : > { %5082 = vrot.lane.b32.xlu0 %v5081_v55, %s5272_s23  ;;  %5087 = vrot.lane.b32.xlu1 %v5086_v25, %s5272_s23  ;;  %v2906_v55 = vld [vmem:[#allocation2 + $0x1d0] sm:$0xff]  ;;  %v2873_v25 = vld [vmem:[#allocation2 + $0xc8] sm:$0xff] }
 0x64a   : > { %v2625_v19 = vpop.f32.mrf.mxu1 }
 0x64b   : > { %v7695_v46 = vadd.f32 %v2625_v19, %v2315_v34  ;;  %v2890_v19 = vld [vmem:[#allocation2 + $0x150] sm:$0xff] }
 0x64c   : > { %v2627_v62 = vpop.f32.mrf.mxu1 }
 0x64d   : > { %v7697_v4 = vadd.f32 %v2627_v62, %v2315_v34  ;;  %v2642_v61 = vmax.f32 %v7695_v46, 0.0  ;;  %v2894_v34 = vld [vmem:[#allocation2 + $0x170] sm:$0xff]  ;;  %v2857_v62 = vld [vmem:[#allocation2 + $0x48] sm:$0xff] }
 0x64e   : > { %4457 = vmatpush3.msra.mxu1 %v2894_v34  ;;  %v2854_v34 = vld [vmem:[#allocation2 + $0x30] sm:$0xff] }
 0x64f   : > { %v2643_v30 = vmax.f32 %v7697_v4, 0.0  ;;  %4458 = vmatprep.subr.mxu1 %v2909_v1  ;;  %v2869_v1 = vld [vmem:[#allocation2 + $0xa8] sm:$0xff] }
 0x650   : > { %4459 = vmatpush3.msra.mxu1 %v2893_v60  ;;  %v2901_v60 = vld [vmem:[#allocation2 + $0x1a8] sm:$0xff] }
 0x651   : > { %v5091_v37 = vpack.i.bf16 %v2643_v30, %v2642_v61  ;;  %4460 = vmatprep.subr.mxu1 %v2908_v0  ;;  %v2885_v0 = vld [vmem:[#allocation2 + $0x128] sm:$0xff] }
 0x652   : > { %4461 = vmatpush3.msra.mxu1 %v2892_v33  ;;  %v2900_v33 = vld [vmem:[#allocation2 + $0x1a0] sm:$0xff] }
 0x653   : > { %5092 = vrot.lane.b32.xlu0 %v5091_v37, %s5272_s23  ;;  %4462 = vmatprep.subr.mxu1 %v2907_v7  ;;  %v2905_v37 = vld [vmem:[#allocation2 + $0x1c8] sm:$0xff]  ;;  %v2851_v7 = vld [vmem:[#allocation2 + $0x18] sm:$0xff] }
 0x654   : > { %4463 = vmatpush3.msra.mxu1 %v2891_v35  ;;  %v2866_v35 = vld [vmem:[#allocation2 + $0x90] sm:$0xff] }
 0x655   : > { %4464 = vmatprep.subr.mxu1 %v2906_v55  ;;  %v2850_v55 = vld [vmem:[#allocation2 + $0x10] sm:$0xff] }
 0x656   : > { %4465 = vmatpush3.msra.mxu1 %v2890_v19  ;;  %v2865_v19 = vld [vmem:[#allocation2 + $0x88] sm:$0xff] }
 0x657   : > { %4466 = vmatprep.subr.mxu1 %v2905_v37 }
 0x658   : > { %4467 = vmatpush3.msra.mxu1 %v2889_v57  ;;  %v2897_v57 = vld [vmem:[#allocation2 + $0x188] sm:$0xff] }
 0x659   : > { %4468 = vmatprep.subr.mxu1 %v2904_v21  ;;  %v2881_v21 = vld [vmem:[#allocation2 + $0x108] sm:$0xff] }
 0x65a   : > { %4469 = vmatpush3.msra.mxu1 %v2888_v41  ;;  %v2848_v41 = vld [vmem:[#allocation2] sm:$0xff] }
 0x65b   : > { %4470 = vmatprep.subr.mxu1 %v2903_v48  ;;  %v2880_v48 = vld [vmem:[#allocation2 + $0x100] sm:$0xff] }
 0x65c   : > { %4471 = vmatpush3.msra.mxu1 %v2887_v13 }
 0x65d   : > { %4472 = vmatprep.subr.mxu1 %v2902_v12  ;;  %v2975_v12 = vld [vmem:[#allocation2 + $0x3f8] sm:$0xff] }
 0x690   : > { %v7706_v59 = vpop.permute.xlu0 %5062 }
 0x691   : > { %v5065_v3 = vunpack.i.h.bf16 %v7706_v59  ;;  %v5064_v58 = vunpack.i.l.bf16 %v7706_v59 }
 0x692   : > { %v7710_v22 = vpop.permute.xlu1 %5067 }
 0x693   : > { %v2701_v31 = vsel %vm513_vm13, %v5064_v58, %v5065_v3  ;;  %v5069_v45 = vunpack.i.l.bf16 %v7710_v22  ;;  %v5070_v37 = vunpack.i.h.bf16 %v7710_v22 }
 0x694   : > { %v7721_v24 = vmax.f32 %v2637_v17, %v2701_v31  ;;  %v2874_v17 = vld [vmem:[#allocation2 + $0xd0] sm:$0xff]  ;;  %v2855_v31 = vld [vmem:[#allocation2 + $0x38] sm:$0xff] }
 0x695   : > { %v2702_v52 = vsel %vm513_vm13, %v5065_v3, %v5069_v45  ;;  %4426 = vmatprep.subr.mxu0 %v2874_v17  ;;  %v2856_v3 = vld [vmem:[#allocation2 + $0x40] sm:$0xff]  ;;  %v2899_v17 = vld [vmem:[#allocation2 + $0x198] sm:$0xff]  ;;  %v2700_v13 = vsel %vm513_vm13, %v5070_v37, %v5064_v58 }
 0x696   : > { %v7725_v10 = vmax.f32 %v2638_v29, %v2702_v52  ;;  %v2858_v29 = vld [vmem:[#allocation2 + $0x50] sm:$0xff]  ;;  %v7740_v59 = vmax.f32 %v2636_v39, %v2700_v13 }
 0x697   : > { %4427 = vmatpush3.msra.mxu0 %v2858_v29  ;;  %v2886_v52 = vld [vmem:[#allocation2 + $0x130] sm:$0xff]  ;;  %v2883_v29 = vld [vmem:[#allocation2 + $0x118] sm:$0xff] }
 0x698   : > { %v5096_v28 = vpack.i.bf16 %v7725_v10, %v7721_v24  ;;  %4428 = vmatprep.subr.mxu0 %v2873_v25  ;;  %4473 = vmatpush3.msra.mxu1 %v2886_v52  ;;  %v2898_v25 = vld [vmem:[#allocation2 + $0x190] sm:$0xff] }
 0x699   : > { %4429 = vmatpush3.msra.mxu0 %v2857_v62  ;;  %4474 = vmatprep.subr.mxu1 %v2901_v60  ;;  %v2882_v62 = vld [vmem:[#allocation2 + $0x110] sm:$0xff] }
 0x69a   : > { %5097 = vrot.lane.b32.xlu1 %v5096_v28, %s5279_s30  ;;  %4430 = vmatprep.subr.mxu0 %v2872_v16  ;;  %v2867_v28 = vld [vmem:[#allocation2 + $0x98] sm:$0xff]  ;;  %v2849_v16 = vld [vmem:[#allocation2 + $0x8] sm:$0xff] }
 0x69b   : > { %4431 = vmatpush3.msra.mxu0 %v2856_v3  ;;  %4475 = vmatpush3.msra.mxu1 %v2885_v0  ;;  %v2864_v3 = vld [vmem:[#allocation2 + $0x80] sm:$0xff] }
 0x69c   : > { %4432 = vmatprep.subr.mxu0 %v2871_v43  ;;  %4476 = vmatprep.subr.mxu1 %v2900_v33  ;;  %v5078_v43 = vpop.permute.xlu1 %5077 }
 0x69d   : > { %4433 = vmatpush3.msra.mxu0 %v2855_v31  ;;  %4477 = vmatpush3.msra.mxu1 %v2884_v6  ;;  %v2896_v31 = vld [vmem:[#allocation2 + $0x180] sm:$0xff]  ;;  %v5079_v52 = vunpack.i.l.bf16 %v5078_v43 }
 0x69e   : > { %4434 = vmatprep.subr.mxu0 %v2870_v14  ;;  %4478 = vmatprep.subr.mxu1 %v2899_v17  ;;  %v2943_v14 = vld [vmem:[#allocation2 + $0x2f8] sm:$0xff] }
 0x69f   : > { %4435 = vmatpush3.msra.mxu0 %v2854_v34  ;;  %4479 = vmatpush3.msra.mxu1 %v2883_v29 }
 0x6a0   : > { %4436 = vmatprep.subr.mxu0 %v2869_v1  ;;  %4480 = vmatprep.subr.mxu1 %v2898_v25  ;;  %v5080_v1 = vunpack.i.h.bf16 %v5078_v43 }
 0x6a1   : > { %4437 = vmatpush3.msra.mxu0 %v2853_v63  ;;  %4481 = vmatpush3.msra.mxu1 %v2882_v62 }
 0x6a2   : > { %4438 = vmatprep.subr.mxu0 %v2868_v54  ;;  %4482 = vmatprep.subr.mxu1 %v2897_v57  ;;  %v2709_v22 = vsel %vm513_vm13, %v5079_v52, %v5080_v1 }
 0x6a3   : > { %4439 = vmatpush3.msra.mxu0 %v2852_v18  ;;  %4483 = vmatpush3.msra.mxu1 %v2881_v21  ;;  %v7763_v27 = vmax.f32 %v2645_v50, %v2709_v22  ;;  %v2631_v50 = vpop.f32.mrf.mxu1 }
 0x6a4   : > { %4440 = vmatprep.subr.mxu0 %v2867_v28  ;;  %4484 = vmatprep.subr.mxu1 %v2896_v31  ;;  %v7792_v25 = vadd.f32 %v2631_v50, %v7627_v26  ;;  %v2973_v50 = vld [vmem:[#allocation2 + $0x3e8] sm:$0xff] }
 0x6a5   : > { %4441 = vmatpush3.msra.mxu0 %v2851_v7  ;;  %4485 = vmatpush3.msra.mxu1 %v2880_v48 }
 0x6a6   : > { %4442 = vmatprep.subr.mxu0 %v2866_v35  ;;  %4530 = vmatprep.subr.mxu1 %v2975_v12 }
 0x6a7   : > { %4443 = vmatpush3.msra.mxu0 %v2850_v55 }
 0x6a8   : > { %4444 = vmatprep.subr.mxu0 %v2865_v19 }
 0x6a9   : > { %4445 = vmatpush3.msra.mxu0 %v2849_v16 }
 0x6aa   : > { %4446 = vmatprep.subr.mxu0 %v2864_v3 }
 0x6ab   : > { %4447 = vmatpush3.msra.mxu0 %v2848_v41 }
 0x6ac   : > { %4492 = vmatprep.subr.mxu0 %v2943_v14 }
 0x6b2   : > { %v5073_v34 = vpop.permute.xlu0 %5072 }
 0x6b3   : > { %v5075_v63 = vunpack.i.h.bf16 %v5073_v34  ;;  %v5074_v60 = vunpack.i.l.bf16 %v5073_v34 }
 0x6b5   : > { %v2703_v54 = vsel %vm513_vm13, %v5069_v45, %v5074_v60  ;;  %v2704_v0 = vsel %vm513_vm13, %v5074_v60, %v5075_v63 }
 0x6b6   : > { %v7744_v58 = vmax.f32 %v2639_v49, %v2703_v54  ;;  %v7748_v18 = vmax.f32 %v2640_v15, %v2704_v0  ;;  %v5083_v33 = vpop.permute.xlu0 %5082  ;;  %v7750_v28 = vpop.permute.xlu1 %5087  ;;  %v2927_v0 = vld [vmem:[#allocation2 + $0x278] sm:$0xff] }
 0x6b7   : > { %v5085_v45 = vunpack.i.h.bf16 %v5083_v33  ;;  %v5084_v6 = vunpack.i.l.bf16 %v5083_v33  ;;  %v5089_v7 = vunpack.i.l.bf16 %v7750_v28  ;;  %v5090_v5 = vunpack.i.h.bf16 %v7750_v28 }
 0x6b8   : > { %2774 = vrot.lane.b32.xlu1 %v7748_v18, %s5279_s30  ;;  %v5101_v42 = vpack.i.bf16 %v7744_v58, %v7740_v59 }
 0x6b9   : > { %v2708_v47 = vsel %vm513_vm13, %v5085_v45, %v5079_v52  ;;  %v2710_v39 = vsel %vm513_vm13, %v5080_v1, %v5084_v6  ;;  %v2711_v49 = vsel %vm513_vm13, %v5084_v6, %v5089_v7  ;;  %v2712_v2 = vsel %vm513_vm13, %v5089_v7, %v5090_v5  ;;  %v2942_v6 = vld [vmem:[#allocation2 + $0x2f0] sm:$0xff]  ;;  %v2959_v7 = vld [vmem:[#allocation2 + $0x378] sm:$0xff] }
 0x6ba   : > { %v7767_v15 = vmax.f32 %v2644_v9, %v2708_v47  ;;  %v7771_v17 = vmax.f32 %v2646_v51, %v2710_v39  ;;  %v7775_v35 = vmax.f32 %v2647_v8, %v2711_v49  ;;  %5102 = vrot.lane.b32.xlu0 %v5101_v42, %s5279_s30  ;;  %v2633_v51 = vpop.f32.mrf.mxu1  ;;  %v7800_v16 = vmax.f32 %v2648_v40, %v2712_v2  ;;  %v2974_v42 = vld [vmem:[#allocation2 + $0x3f0] sm:$0xff]  ;;  %v2924_v2 = vld [vmem:[#allocation2 + $0x260] sm:$0xff] }
 0x6bb   : > { %v7789_v55 = vadd.f32 %v2633_v51, %v7627_v26  ;;  %v2650_v40 = vmax.f32 %v7792_v25, 0.0  ;;  %v2958_v47 = vld [vmem:[#allocation2 + $0x370] sm:$0xff]  ;;  %v2940_v51 = vld [vmem:[#allocation2 + $0x2e0] sm:$0xff]  ;;  %v2931_v25 = vld [vmem:[#allocation2 + $0x298] sm:$0xff] }
 0x6bc   : > { %v5106_v29 = vpack.i.bf16 %v7771_v17, %v7763_v27  ;;  %v5111_v56 = vpack.i.bf16 %v7775_v35, %v7767_v15 }
 0x6bd   : > { %v2651_v21 = vmax.f32 %v7789_v55, 0.0  ;;  %v2915_v55 = vld [vmem:[#allocation2 + $0x218] sm:$0xff] }
 0x6be   : > { %5107 = vrot.lane.b32.xlu0 %v5106_v29, %s5279_s30  ;;  %5112 = vrot.lane.b32.xlu1 %v5111_v56, %s5279_s30  ;;  %v2925_v29 = vld [vmem:[#allocation2 + $0x268] sm:$0xff] }
 0x6bf   : > { %v5126_v20 = vpack.i.bf16 %v2651_v21, %v2650_v40 }
 0x6c5   : > { %v5093_v11 = vpop.permute.xlu0 %5092 }
 0x6c6   : > { %v5095_v9 = vunpack.i.h.bf16 %v5093_v11  ;;  %v5094_v8 = vunpack.i.l.bf16 %v5093_v11  ;;  %v2957_v11 = vld [vmem:[#allocation2 + $0x368] sm:$0xff] }
 0x6c8   : > { %v2707_v19 = vsel %vm513_vm13, %v5095_v9, %v6192_v38  ;;  %v2705_v62 = vsel %vm513_vm13, %v5075_v63, %v5094_v8  ;;  %v2706_v37 = vsel %vm513_vm13, %v5094_v8, %v5095_v9  ;;  %v2972_v9 = vld [vmem:[#allocation2 + $0x3e0] sm:$0xff]  ;;  %v2939_v8 = vld [vmem:[#allocation2 + $0x2d8] sm:$0xff] }
 0x6c9   : > { %v7804_v57 = vmax.f32 %v2643_v30, %v2707_v19  ;;  %v7808_v3 = vmax.f32 %v2641_v23, %v2705_v62  ;;  %v7812_v26 = vmax.f32 %v2642_v61, %v2706_v37  ;;  %v2740_v23 = vmax.f32 %v6192_v38, 0.0  ;;  %v2956_v19 = vld [vmem:[#allocation2 + $0x360] sm:$0xff]  ;;  %v2971_v62 = vld [vmem:[#allocation2 + $0x3d8] sm:$0xff] }
 0x6ca   : > { %v2955_v37 = vld [vmem:[#allocation2 + $0x358] sm:$0xff] }
 0x6cb   : > { %v5121_v43 = vpack.i.bf16 %v7808_v3, %v7800_v16  ;;  %v5116_v36 = vpack.i.bf16 %v7804_v57, %v7812_v26 }
 0x6cd   : > { %5122 = vrot.lane.b32.xlu0 %v5121_v43, %s5279_s30  ;;  %5117 = vrot.lane.b32.xlu1 %v5116_v36, %s5279_s30  ;;  %v2922_v43 = vld [vmem:[#allocation2 + $0x250] sm:$0xff] }
 0x6ce   : > { %v2970_v36 = vld [vmem:[#allocation2 + $0x3d0] sm:$0xff] }
 0x6d1   : > { %2782 = vrot.lane.b32.xlu0 %v2740_v23, %s5279_s30  ;;  %5127 = vrot.lane.b32.xlu1 %v5126_v20, %s5272_s23  ;;  %v2937_v20 = vld [vmem:[#allocation2 + $0x2c8] sm:$0xff]  ;;  %v2954_v23 = vld [vmem:[#allocation2 + $0x350] sm:$0xff]  ;;  %s4301_s23 = scalar_lea.sflag [#allocation4], %s434_s18 }
 0x70c   : > { %v5098_v46 = vpop.permute.xlu1 %5097 }
 0x70d   : > { %v5100_v4 = vunpack.i.h.bf16 %v5098_v46  ;;  %v5099_v61 = vunpack.i.l.bf16 %v5098_v46  ;;  %v2921_v46 = vld [vmem:[#allocation2 + $0x248] sm:$0xff] }
 0x70f   : > { %v2801_v30 = vsel %vm793_vm9, %v5099_v61, %v5100_v4 }
 0x710   : > { %v2833_v41 = vmax.f32 %v7721_v24, %v2801_v30  ;;  %v2936_v30 = vld [vmem:[#allocation2 + $0x2c0] sm:$0xff] }
 0x712   : > { %3040 = vmatprep.mubr.f32.mxu0 %v2833_v41  ;;  %v2953_v41 = vld [vmem:[#allocation2 + $0x348] sm:$0xff] }
 0x72a   : > { %v7831_v31 = vpop.permute.xlu1 %2774 }
 0x72c   : > { %v5103_v48 = vpop.permute.xlu0 %5102 }
 0x72d   : > { %v5105_v14 = vunpack.i.h.bf16 %v5103_v48  ;;  %v5104_v13 = vunpack.i.l.bf16 %v5103_v48 }
 0x72f   : > { %v2800_v34 = vsel %vm793_vm9, %v5104_v13, %v5099_v61  ;;  %v2802_v12 = vsel %vm793_vm9, %v5100_v4, %v5105_v14  ;;  %v2803_v1 = vsel %vm793_vm9, %v5105_v14, %v7831_v31  ;;  %v2969_v4 = vld [vmem:[#allocation2 + $0x3c8] sm:$0xff]  ;;  %v2920_v13 = vld [vmem:[#allocation2 + $0x240] sm:$0xff] }
 0x730   : > { %v2832_v52 = vmax.f32 %v7740_v59, %v2800_v34  ;;  %v2834_v63 = vmax.f32 %v7725_v10, %v2802_v12  ;;  %v7839_v60 = vpop.permute.xlu0 %5107  ;;  %v7841_v24 = vpop.permute.xlu1 %5112  ;;  %v2835_v54 = vmax.f32 %v7744_v58, %v2803_v1  ;;  %v2926_v59 = vld [vmem:[#allocation2 + $0x270] sm:$0xff]  ;;  %v2941_v10 = vld [vmem:[#allocation2 + $0x2e8] sm:$0xff]  ;;  %v2968_v34 = vld [vmem:[#allocation2 + $0x3c0] sm:$0xff] }
 0x731   : > { %v5110_v33 = vunpack.i.h.bf16 %v7839_v60  ;;  %v5109_v22 = vunpack.i.l.bf16 %v7839_v60  ;;  %v5114_v45 = vunpack.i.l.bf16 %v7841_v24  ;;  %v5115_v61 = vunpack.i.h.bf16 %v7841_v24  ;;  %v2952_v24 = vld [vmem:[#allocation2 + $0x340] sm:$0xff] }
 0x732   : > { %3041 = vmatmul.mubr.f32.vlgmr.msra.gmra.mxu0 %v2832_v52  ;;  %3115 = vmatprep.mubr.f32.mxu1 %v2835_v54  ;;  %v2919_v54 = vld [vmem:[#allocation2 + $0x238] sm:$0xff] }
 0x733   : > { %4493 = vmatpush3.msra.mxu0 %v2927_v0  ;;  %3116 = vmatmul.mubr.f32.vlgmr.msra.gmra.mxu1 %v2834_v63  ;;  %v2809_v58 = vsel %vm793_vm9, %v5109_v22, %v5110_v33  ;;  %v2808_v39 = vsel %vm793_vm9, %v5114_v45, %v5109_v22  ;;  %v2935_v63 = vld [vmem:[#allocation2 + $0x2b8] sm:$0xff]  ;;  %v2934_v45 = vld [vmem:[#allocation2 + $0x2b0] sm:$0xff] }
 0x734   : > { %4494 = vmatprep.subr.mxu0 %v2942_v6  ;;  %4531 = vmatpush3.msra.mxu1 %v2959_v7  ;;  %v2841_v49 = vmax.f32 %v7763_v27, %v2809_v58  ;;  %v2840_v56 = vmax.f32 %v7767_v15, %v2808_v39  ;;  %v2923_v27 = vld [vmem:[#allocation2 + $0x258] sm:$0xff]  ;;  %v2938_v15 = vld [vmem:[#allocation2 + $0x2d0] sm:$0xff] }
 0x735   : > { %4495 = vmatpush3.msra.mxu0 %v2926_v59  ;;  %4532 = vmatprep.subr.mxu1 %v2974_v42  ;;  %v2967_v0 = vld [vmem:[#allocation2 + $0x3b8] sm:$0xff]  ;;  %v2810_v59 = vsel %vm793_vm9, %v5110_v33, %v5115_v61  ;;  %v2918_v58 = vld [vmem:[#allocation2 + $0x230] sm:$0xff] }
 0x736   : > { %4496 = vmatprep.subr.mxu0 %v2941_v10  ;;  %4533 = vmatpush3.msra.mxu1 %v2958_v47  ;;  %v2951_v6 = vld [vmem:[#allocation2 + $0x338] sm:$0xff]  ;;  %v2966_v33 = vld [vmem:[#allocation2 + $0x3b0] sm:$0xff] }
 0x737   : > { %3045 = vmatprep.mubr.f32.mxu0 %v2841_v49  ;;  %4497 = vmatpush3.msra.mxu0 %v2925_v29 }
 0x738   : > { %4534 = vmatprep.subr.mxu1 %v2973_v50  ;;  %3046 = vmatmul.mubr.f32.gmra.mxu0 %v2840_v56  ;;  %v2842_v50 = vmax.f32 %v7771_v17, %v2810_v59  ;;  %v3351_v59 = vld [vmem:[#allocation5 + $0x168] sm:$0xff] }
 0x739   : > { %4498 = vmatprep.subr.mxu0 %v2940_v51  ;;  %4535 = vmatpush3.msra.mxu1 %v2957_v11  ;;  %v2933_v51 = vld [vmem:[#allocation2 + $0x2a8] sm:$0xff] }
 0x73a   : > { %4499 = vmatpush3.msra.mxu0 %v2924_v2  ;;  %4536 = vmatprep.subr.mxu1 %v2972_v9 }
 0x73b   : > { %4500 = vmatprep.subr.mxu0 %v2939_v8  ;;  %4537 = vmatpush3.msra.mxu1 %v2956_v19  ;;  %v2950_v8 = vld [vmem:[#allocation2 + $0x330] sm:$0xff] }
 0x73c   : > { %4501 = vmatpush3.msra.mxu0 %v2923_v27  ;;  %4538 = vmatprep.subr.mxu1 %v2971_v62  ;;  %v2948_v27 = vld [vmem:[#allocation2 + $0x320] sm:$0xff]  ;;  %v2930_v62 = vld [vmem:[#allocation2 + $0x290] sm:$0xff] }
 0x73d   : > { %4502 = vmatprep.subr.mxu0 %v2938_v15  ;;  %4539 = vmatpush3.msra.mxu1 %v2955_v37  ;;  %v2947_v15 = vld [vmem:[#allocation2 + $0x318] sm:$0xff]  ;;  %v2914_v37 = vld [vmem:[#allocation2 + $0x210] sm:$0xff] }
 0x73e   : > { %4503 = vmatpush3.msra.mxu0 %v2922_v43  ;;  %4540 = vmatprep.subr.mxu1 %v2970_v36  ;;  %v2962_v43 = vld [vmem:[#allocation2 + $0x390] sm:$0xff]  ;;  %v2929_v36 = vld [vmem:[#allocation2 + $0x288] sm:$0xff] }
 0x73f   : > { %4504 = vmatprep.subr.mxu0 %v2937_v20  ;;  %4541 = vmatpush3.msra.mxu1 %v2954_v23  ;;  %v7854_v48 = vpop.permute.xlu0 %5122  ;;  %v7856_v14 = vpop.permute.xlu1 %5117  ;;  %v2946_v20 = vld [vmem:[#allocation2 + $0x310] sm:$0xff]  ;;  %v2913_v23 = vld [vmem:[#allocation2 + $0x208] sm:$0xff] }
 0x740   : > { %v5125_v12 = vunpack.i.h.bf16 %v7854_v48  ;;  %v5124_v1 = vunpack.i.l.bf16 %v7854_v48  ;;  %v5119_v52 = vunpack.i.l.bf16 %v7856_v14  ;;  %4505 = vmatpush3.msra.mxu0 %v2921_v46  ;;  %4542 = vmatprep.subr.mxu1 %v2969_v4  ;;  %v5120_v22 = vunpack.i.h.bf16 %v7856_v14  ;;  %v2961_v46 = vld [vmem:[#allocation2 + $0x388] sm:$0xff]  ;;  %v3337_v14 = vld [vmem:[#allocation5 + $0xf8] sm:$0xff] }
 0x741   : > { %4506 = vmatprep.subr.mxu0 %v2936_v30  ;;  %4543 = vmatpush3.msra.mxu1 %v2953_v41  ;;  %v2945_v30 = vld [vmem:[#allocation2 + $0x308] sm:$0xff] }
 0x742   : > { %4507 = vmatpush3.msra.mxu0 %v2920_v13  ;;  %4544 = vmatprep.subr.mxu1 %v2968_v34  ;;  %v2811_v7 = vsel %vm793_vm9, %v5115_v61, %v5124_v1  ;;  %v2805_v60 = vsel %vm793_vm9, %v5125_v12, %v5119_v52  ;;  %v2804_v4 = vsel %vm793_vm9, %v7831_v31, %v5125_v12  ;;  %v2928_v61 = vld [vmem:[#allocation2 + $0x280] sm:$0xff]  ;;  %v3369_v12 = vld [vmem:[#allocation5 + $0x1f8] sm:$0xff] }
 0x743   : > { %4508 = vmatprep.subr.mxu0 %v2935_v63  ;;  %4545 = vmatpush3.msra.mxu1 %v2952_v24  ;;  %v7868_v42 = vpop.permute.xlu0 %2782  ;;  %v5128_v10 = vpop.permute.xlu1 %5127  ;;  %v2843_v47 = vmax.f32 %v7775_v35, %v2811_v7  ;;  %v2837_v35 = vmax.f32 %v7808_v3, %v2805_v60  ;;  %v2949_v3 = vld [vmem:[#allocation2 + $0x328] sm:$0xff]  ;;  %v2806_v41 = vsel %vm793_vm9, %v5119_v52, %v5120_v22  ;;  %v2912_v13 = vld [vmem:[#allocation2 + $0x200] sm:$0xff]  ;;  %v3321_v52 = vld [vmem:[#allocation5 + $0x78] sm:$0xff] }
 0x744   : > { %v2807_v39 = vsel %vm793_vm9, %v5120_v22, %v7868_v42  ;;  %v5130_v49 = vunpack.i.h.bf16 %v5128_v10  ;;  %v5129_v29 = vunpack.i.l.bf16 %v5128_v10  ;;  %4509 = vmatpush3.msra.mxu0 %v2919_v54  ;;  %4546 = vmatprep.subr.mxu1 %v2967_v0  ;;  %v2960_v34 = vld [vmem:[#allocation2 + $0x380] sm:$0xff]  ;;  %v2836_v24 = vmax.f32 %v7748_v18, %v2804_v4  ;;  %v3353_v54 = vld [vmem:[#allocation5 + $0x178] sm:$0xff]  ;;  %v3336_v0 = vld [vmem:[#allocation5 + $0xf0] sm:$0xff] }
 0x745   : > { %v2839_v56 = vmax.f32 %v7804_v57, %v2807_v39  ;;  %4510 = vmatprep.subr.mxu0 %v2934_v45  ;;  %4547 = vmatpush3.msra.mxu1 %v2951_v6  ;;  %v2917_v57 = vld [vmem:[#allocation2 + $0x228] sm:$0xff]  ;;  %v2944_v63 = vld [vmem:[#allocation2 + $0x300] sm:$0xff]  ;;  %v2838_v31 = vmax.f32 %v7812_v26, %v2806_v41  ;;  %v3368_v22 = vld [vmem:[#allocation5 + $0x1f0] sm:$0xff] }
 0x746   : > { %v2715_v11 = vsel %vm513_vm13, %v5130_v49, %v6192_v38  ;;  %v2713_v2 = vsel %vm513_vm13, %v5090_v5, %v5129_v29  ;;  %v2714_v9 = vsel %vm513_vm13, %v5129_v29, %v5130_v49  ;;  %3120 = vmatprep.mubr.f32.mxu1 %v2843_v47  ;;  %4511 = vmatpush3.msra.mxu0 %v2918_v58  ;;  %v2965_v38 = vld [vmem:[#allocation2 + $0x3a8] sm:$0xff]  ;;  %v2932_v5 = vld [vmem:[#allocation2 + $0x2a0] sm:$0xff]  ;;  %v3320_v18 = vld [vmem:[#allocation5 + $0x70] sm:$0xff] }
 0x747   : > { %v7891_v19 = vmax.f32 %v2649_v32, %v2713_v2  ;;  %v7895_v17 = vmax.f32 %v2650_v40, %v2714_v9  ;;  %3190 = vmatprep.mubr.f32.mxu0 %v2837_v35  ;;  %4548 = vmatprep.subr.mxu1 %v2966_v33  ;;  %v7899_v28 = vmax.f32 %v2651_v21, %v2715_v11  ;;  %v2964_v32 = vld [vmem:[#allocation2 + $0x3a0] sm:$0xff]  ;;  %v2963_v21 = vld [vmem:[#allocation2 + $0x398] sm:$0xff]  ;;  %v3352_v45 = vld [vmem:[#allocation5 + $0x170] sm:$0xff] }
 0x748   : > { %3121 = vmatmul.mubr.f32.gmra.mxu1 %v2842_v50  ;;  %4512 = vmatprep.subr.mxu0 %v2933_v51  ;;  %v3335_v6 = vld [vmem:[#allocation5 + $0xe8] sm:$0xff]  ;;  %v3334_v10 = vld [vmem:[#allocation5 + $0xe0] sm:$0xff]  ;;  %v3333_v49 = vld [vmem:[#allocation5 + $0xd8] sm:$0xff] }
 0x749   : > { %4549 = vmatpush3.msra.mxu1 %v2950_v8  ;;  %4513 = vmatpush3.msra.mxu0 %v2917_v57  ;;  %v5131_v40 = vpack.i.bf16 %v7895_v17, %v7891_v19  ;;  %v3367_v26 = vld [vmem:[#allocation5 + $0x1e8] sm:$0xff]  ;;  %v3366_v47 = vld [vmem:[#allocation5 + $0x1e0] sm:$0xff]  ;;  %v3365_v29 = vld [vmem:[#allocation5 + $0x1d8] sm:$0xff] }
 0x74a   : > { %4550 = vmatprep.subr.mxu1 %v2965_v38  ;;  %3265 = vmatprep.mubr.f32.mxu1 %v2839_v56  ;;  %v3319_v7 = vld [vmem:[#allocation5 + $0x68] sm:$0xff]  ;;  %v3318_v58 = vld [vmem:[#allocation5 + $0x60] sm:$0xff]  ;;  %v3317_v60 = vld [vmem:[#allocation5 + $0x58] sm:$0xff] }
 0x74b   : > { %4514 = vmatprep.subr.mxu0 %v2932_v5  ;;  %4551 = vmatpush3.msra.mxu1 %v2949_v3  ;;  %v3350_v39 = vld [vmem:[#allocation5 + $0x160] sm:$0xff]  ;;  %v3349_v33 = vld [vmem:[#allocation5 + $0x158] sm:$0xff]  ;;  %v3332_v56 = vld [vmem:[#allocation5 + $0xd0] sm:$0xff] }
 0x74c   : > { %2798 = vrot.lane.b32.xlu1 %v7899_v28, %s5279_s30  ;;  %4515 = vmatpush3.msra.mxu0 %v2916_v53  ;;  %v3364_v35 = vld [vmem:[#allocation5 + $0x1d0] sm:$0xff]  ;;  %v3331_v11 = vld [vmem:[#allocation5 + $0xc8] sm:$0xff]  ;;  %v3330_v57 = vld [vmem:[#allocation5 + $0xc0] sm:$0xff] }
 0x74d   : > { %4552 = vmatprep.subr.mxu1 %v2964_v32  ;;  %4516 = vmatprep.subr.mxu0 %v2931_v25  ;;  %v3316_v50 = vld [vmem:[#allocation5 + $0x50] sm:$0xff]  ;;  %v3363_v2 = vld [vmem:[#allocation5 + $0x1c8] sm:$0xff]  ;;  %v3362_v38 = vld [vmem:[#allocation5 + $0x1c0] sm:$0xff] }
 0x74e   : > { %4553 = vmatpush3.msra.mxu1 %v2948_v27  ;;  %5132 = vrot.lane.b32.xlu0 %v5131_v40, %s5279_s30  ;;  %v3348_v51 = vld [vmem:[#allocation5 + $0x150] sm:$0xff]  ;;  %v3315_v9 = vld [vmem:[#allocation5 + $0x48] sm:$0xff]  ;;  %v3314_v5 = vld [vmem:[#allocation5 + $0x40] sm:$0xff]  ;;  %s5192_s30 = scalar_lea.vmem %s4314_s16, 16 }
 0x74f   : > { %4517 = vmatpush3.msra.mxu0 %v2915_v55  ;;  %4554 = vmatprep.subr.mxu1 %v2963_v21  ;;  %v3347_v8 = vld [vmem:[#allocation5 + $0x148] sm:$0xff]  ;;  %v3346_v3 = vld [vmem:[#allocation5 + $0x140] sm:$0xff]  ;;  %v3329_v53 = vld [vmem:[#allocation5 + $0xb8] sm:$0xff]  ;;  %p5193_p10 = scmp.ne.s32.totalorder %s4314_s16, %s5192_s30  ;;  %p5200_p0 = scmp.lt.s32.totalorder %s5198_s15, %s5192_s30 }
 0x750   : > { %4518 = vmatprep.subr.mxu0 %v2930_v62  ;;  %4555 = vmatpush3.msra.mxu1 %v2947_v15  ;;  %v3361_v32 = vld [vmem:[#allocation5 + $0x1b8] sm:$0xff]  ;;  %v3328_v27 = vld [vmem:[#allocation5 + $0xb0] sm:$0xff]  ;;  %v3327_v15 = vld [vmem:[#allocation5 + $0xa8] sm:$0xff] }
 0x751   : > { %4519 = vmatpush3.msra.mxu0 %v2914_v37  ;;  %4556 = vmatprep.subr.mxu1 %v2962_v43  ;;  %v3313_v25 = vld [vmem:[#allocation5 + $0x38] sm:$0xff]  ;;  %v3360_v55 = vld [vmem:[#allocation5 + $0x1b0] sm:$0xff]  ;;  %v3359_v37 = vld [vmem:[#allocation5 + $0x1a8] sm:$0xff]  ;;  %p5194_p12 = pnand %p5193_p10, %p5395_p5  ;;  %p5201_p1 = por %p5200_p0, %p5199_p11 }
 0x752   : > { %4520 = vmatprep.subr.mxu0 %v2929_v36  ;;  %4557 = vmatpush3.msra.mxu1 %v2946_v20  ;;  %v3345_v40 = vld [vmem:[#allocation5 + $0x138] sm:$0xff]  ;;  %v3312_v21 = vld [vmem:[#allocation5 + $0x30] sm:$0xff]  ;;  %v3311_v43 = vld [vmem:[#allocation5 + $0x28] sm:$0xff] }
 0x753   : > { %4521 = vmatpush3.msra.mxu0 %v2913_v23  ;;  %4558 = vmatprep.subr.mxu1 %v2961_v46  ;;  %v3344_v62 = vld [vmem:[#allocation5 + $0x130] sm:$0xff]  ;;  %v3343_v36 = vld [vmem:[#allocation5 + $0x128] sm:$0xff]  ;;  %v3326_v20 = vld [vmem:[#allocation5 + $0xa0] sm:$0xff]  ;;  %p5195_p8 = pneg %p5194_p12 }
 0x754   : > { %4522 = vmatprep.subr.mxu0 %v2928_v61  ;;  %4559 = vmatpush3.msra.mxu1 %v2945_v30  ;;  %v3358_v23 = vld [vmem:[#allocation5 + $0x1a0] sm:$0xff]  ;;  %v3325_v61 = vld [vmem:[#allocation5 + $0x98] sm:$0xff] }
 0x755   : > { %4523 = vmatpush3.msra.mxu0 %v2912_v13  ;;  %4560 = vmatprep.subr.mxu1 %v2960_v34  ;;  %v3310_v46 = vld [vmem:[#allocation5 + $0x20] sm:$0xff]  ;;  %v3357_v30 = vld [vmem:[#allocation5 + $0x198] sm:$0xff]  ;;  %v3324_v34 = vld [vmem:[#allocation5 + $0x90] sm:$0xff]  ;;  %p5202_p3 = pnand %p5201_p1, %p5195_p8 }
 0x756   : > { %3191 = vmatmul.mubr.f32.vlgmr.msra.gmra.mxu0 %v2836_v24  ;;  %4561 = vmatpush3.msra.mxu1 %v2944_v63  ;;  %v3342_v4 = vld [vmem:[#allocation5 + $0x120] sm:$0xff]  ;;  %v3309_v41 = vld [vmem:[#allocation5 + $0x18] sm:$0xff]  ;;  %v3356_v63 = vld [vmem:[#allocation5 + $0x190] sm:$0xff] }
 0x757   : > { %3266 = vmatmul.mubr.f32.vlgmr.msra.gmra.mxu1 %v2838_v31  ;;  %4568 = vmatprep.subr.mxu0 %v3337_v14  ;;  %v3341_v13 = vld [vmem:[#allocation5 + $0x118] sm:$0xff]  ;;  %v3308_v24 = vld [vmem:[#allocation5 + $0x10] sm:$0xff]  ;;  %v3323_v14 = vld [vmem:[#allocation5 + $0x88] sm:$0xff] }
 0x758   : > { %4603 = vmatprep.subr.mxu1 %v3369_v12  ;;  %4569 = vmatpush3.msra.mxu0 %v3321_v52  ;;  %v3340_v31 = vld [vmem:[#allocation5 + $0x110] sm:$0xff]  ;;  %v3355_v12 = vld [vmem:[#allocation5 + $0x188] sm:$0xff] }
 0x759   : > { %4604 = vmatpush3.msra.mxu1 %v3353_v54  ;;  %4570 = vmatprep.subr.mxu0 %v3336_v0  ;;  %v3307_v52 = vld [vmem:[#allocation5 + $0x8] sm:$0xff]  ;;  %v3322_v0 = vld [vmem:[#allocation5 + $0x80] sm:$0xff] }
 0x75a   : > { %4605 = vmatprep.subr.mxu1 %v3368_v22  ;;  %4571 = vmatpush3.msra.mxu0 %v3320_v18  ;;  %v3339_v54 = vld [vmem:[#allocation5 + $0x108] sm:$0xff]  ;;  %v3354_v22 = vld [vmem:[#allocation5 + $0x180] sm:$0xff] }
 0x75b   : > { %4606 = vmatpush3.msra.mxu1 %v3352_v45  ;;  %4572 = vmatprep.subr.mxu0 %v3335_v6  ;;  %v3306_v18 = vld [vmem:[#allocation5] sm:$0xff]  ;;  %v3401_v6 = vld [vmem:[#allocation5 + $0x2f8] sm:$0xff] }
 0x75c   : > { %4607 = vmatprep.subr.mxu1 %v3367_v26  ;;  %4573 = vmatpush3.msra.mxu0 %v3319_v7  ;;  %v3338_v45 = vld [vmem:[#allocation5 + $0x100] sm:$0xff]  ;;  %v3433_v26 = vld [vmem:[#allocation5 + $0x3f8] sm:$0xff] }
 0x75d   : > { %4608 = vmatpush3.msra.mxu1 %v3351_v59  ;;  %4574 = vmatprep.subr.mxu0 %v3334_v10 }
 0x75e   : > { %4609 = vmatprep.subr.mxu1 %v3366_v47  ;;  %4575 = vmatpush3.msra.mxu0 %v3318_v58 }
 0x75f   : > { %4610 = vmatpush3.msra.mxu1 %v3350_v39  ;;  %4576 = vmatprep.subr.mxu0 %v3333_v49 }
 0x760   : > { %4611 = vmatprep.subr.mxu1 %v3365_v29  ;;  %4577 = vmatpush3.msra.mxu0 %v3317_v60 }
 0x761   : > { %4612 = vmatpush3.msra.mxu1 %v3349_v33  ;;  %4578 = vmatprep.subr.mxu0 %v3332_v56 }
 0x762   : > { %4613 = vmatprep.subr.mxu1 %v3364_v35  ;;  %4579 = vmatpush3.msra.mxu0 %v3316_v50 }
 0x763   : > { %4614 = vmatpush3.msra.mxu1 %v3348_v51  ;;  %4580 = vmatprep.subr.mxu0 %v3331_v11 }
 0x764   : > { %4615 = vmatprep.subr.mxu1 %v3363_v2  ;;  %4581 = vmatpush3.msra.mxu0 %v3315_v9 }
 0x765   : > { %4616 = vmatpush3.msra.mxu1 %v3347_v8  ;;  %4582 = vmatprep.subr.mxu0 %v3330_v57 }
 0x766   : > { %4617 = vmatprep.subr.mxu1 %v3362_v38  ;;  %4583 = vmatpush3.msra.mxu0 %v3314_v5 }
 0x767   : > { %4618 = vmatpush3.msra.mxu1 %v3346_v3  ;;  %4584 = vmatprep.subr.mxu0 %v3329_v53 }
 0x768   : > { %4619 = vmatprep.subr.mxu1 %v3361_v32  ;;  %4585 = vmatpush3.msra.mxu0 %v3313_v25 }
 0x769   : > { %4620 = vmatpush3.msra.mxu1 %v3345_v40  ;;  %4586 = vmatprep.subr.mxu0 %v3328_v27 }
 0x76a   : > { %4621 = vmatprep.subr.mxu1 %v3360_v55  ;;  %4587 = vmatpush3.msra.mxu0 %v3312_v21 }
 0x76b   : > { %4622 = vmatpush3.msra.mxu1 %v3344_v62  ;;  %4588 = vmatprep.subr.mxu0 %v3327_v15  ;;  %v3385_v15 = vld [vmem:[#allocation5 + $0x278] sm:$0xff] }
 0x76c   : > { %4623 = vmatprep.subr.mxu1 %v3359_v37  ;;  %4589 = vmatpush3.msra.mxu0 %v3311_v43  ;;  %v3417_v37 = vld [vmem:[#allocation5 + $0x378] sm:$0xff]  ;;  %v3400_v43 = vld [vmem:[#allocation5 + $0x2f0] sm:$0xff] }
 0x76d   : > { %4624 = vmatpush3.msra.mxu1 %v3343_v36  ;;  %4590 = vmatprep.subr.mxu0 %v3326_v20  ;;  %v3432_v20 = vld [vmem:[#allocation5 + $0x3f0] sm:$0xff] }
 0x76e   : > { %4625 = vmatprep.subr.mxu1 %v3358_v23  ;;  %4591 = vmatpush3.msra.mxu0 %v3310_v46  ;;  %v3384_v46 = vld [vmem:[#allocation5 + $0x270] sm:$0xff] }
 0x76f   : > { %4626 = vmatpush3.msra.mxu1 %v3342_v4  ;;  %4592 = vmatprep.subr.mxu0 %v3325_v61  ;;  %v3416_v4 = vld [vmem:[#allocation5 + $0x370] sm:$0xff]  ;;  %v3399_v61 = vld [vmem:[#allocation5 + $0x2e8] sm:$0xff] }
 0x770   : > { %4627 = vmatprep.subr.mxu1 %v3357_v30  ;;  %4593 = vmatpush3.msra.mxu0 %v3309_v41  ;;  %v3431_v30 = vld [vmem:[#allocation5 + $0x3e8] sm:$0xff] }
 0x771   : > { %4628 = vmatpush3.msra.mxu1 %v3341_v13  ;;  %4594 = vmatprep.subr.mxu0 %v3324_v34  ;;  %v3383_v41 = vld [vmem:[#allocation5 + $0x268] sm:$0xff]  ;;  %v3398_v34 = vld [vmem:[#allocation5 + $0x2e0] sm:$0xff] }
 0x772   : > { %4629 = vmatprep.subr.mxu1 %v3356_v63  ;;  %4595 = vmatpush3.msra.mxu0 %v3308_v24  ;;  %v3415_v13 = vld [vmem:[#allocation5 + $0x368] sm:$0xff]  ;;  %v3430_v63 = vld [vmem:[#allocation5 + $0x3e0] sm:$0xff] }
 0x773   : > { %4630 = vmatpush3.msra.mxu1 %v3340_v31  ;;  %4596 = vmatprep.subr.mxu0 %v3323_v14  ;;  %v3382_v24 = vld [vmem:[#allocation5 + $0x260] sm:$0xff]  ;;  %v3397_v14 = vld [vmem:[#allocation5 + $0x2d8] sm:$0xff] }
 0x774   : > { %4631 = vmatprep.subr.mxu1 %v3355_v12  ;;  %4597 = vmatpush3.msra.mxu0 %v3307_v52  ;;  %v3414_v31 = vld [vmem:[#allocation5 + $0x360] sm:$0xff]  ;;  %v3429_v12 = vld [vmem:[#allocation5 + $0x3d8] sm:$0xff] }
 0x775   : > { %4632 = vmatpush3.msra.mxu1 %v3339_v54  ;;  %4598 = vmatprep.subr.mxu0 %v3322_v0  ;;  %v3381_v52 = vld [vmem:[#allocation5 + $0x258] sm:$0xff]  ;;  %v3396_v0 = vld [vmem:[#allocation5 + $0x2d0] sm:$0xff] }
 0x776   : > { %4633 = vmatprep.subr.mxu1 %v3354_v22  ;;  %4599 = vmatpush3.msra.mxu0 %v3306_v18  ;;  %v3413_v54 = vld [vmem:[#allocation5 + $0x358] sm:$0xff]  ;;  %v3428_v22 = vld [vmem:[#allocation5 + $0x3d0] sm:$0xff] }
 0x777   : > { %4634 = vmatpush3.msra.mxu1 %v3338_v45  ;;  %4638 = vmatprep.subr.mxu0 %v3401_v6  ;;  %v3380_v18 = vld [vmem:[#allocation5 + $0x250] sm:$0xff]  ;;  %v3395_v6 = vld [vmem:[#allocation5 + $0x2c8] sm:$0xff] }
 0x778   : > { %4673 = vmatprep.subr.mxu1 %v3433_v26  ;;  %v3412_v45 = vld [vmem:[#allocation5 + $0x350] sm:$0xff]  ;;  %v3427_v26 = vld [vmem:[#allocation5 + $0x3c8] sm:$0xff] }
 0x7be   : > { %v2799_v7 = vpop.permute.xlu1 %2798 }
 0x7bf   : > { %v2815_v59 = vsel %vm793_vm9, %v2799_v7, %v7868_v42 }
 0x7c0   : > { %v2847_v10 = vmax.f32 %v7899_v28, %v2815_v59  ;;  %v5133_v47 = vpop.permute.xlu0 %5132  ;;  %v3411_v59 = vld [vmem:[#allocation5 + $0x348] sm:$0xff] }
 0x7c1   : > { %v5135_v58 = vunpack.i.h.bf16 %v5133_v47  ;;  %v5134_v39 = vunpack.i.l.bf16 %v5133_v47  ;;  %v3426_v47 = vld [vmem:[#allocation5 + $0x3c0] sm:$0xff] }
 0x7c2   : > { %3270 = vmatprep.mubr.f32.mxu1 %v2847_v10  ;;  %v3394_v10 = vld [vmem:[#allocation5 + $0x2c0] sm:$0xff] }
 0x7c3   : > { %v2813_v49 = vsel %vm793_vm9, %v5134_v39, %v5135_v58  ;;  %v2814_v29 = vsel %vm793_vm9, %v5135_v58, %v2799_v7  ;;  %v2812_v60 = vsel %vm793_vm9, %v5124_v1, %v5134_v39  ;;  %v3379_v7 = vld [vmem:[#allocation5 + $0x248] sm:$0xff]  ;;  %v3378_v58 = vld [vmem:[#allocation5 + $0x240] sm:$0xff] }
 0x7c4   : > { %v2845_v33 = vmax.f32 %v7891_v19, %v2813_v49  ;;  %v2846_v56 = vmax.f32 %v7895_v17, %v2814_v29  ;;  %v2844_v42 = vmax.f32 %v7800_v16, %v2812_v60  ;;  %v3410_v39 = vld [vmem:[#allocation5 + $0x340] sm:$0xff]  ;;  %v3393_v49 = vld [vmem:[#allocation5 + $0x2b8] sm:$0xff] }
 0x7c5   : > { %v3425_v29 = vld [vmem:[#allocation5 + $0x3b8] sm:$0xff] }
 0x7c6   : > { %3195 = vmatprep.mubr.f32.mxu0 %v2845_v33  ;;  %3271 = vmatmul.mubr.f32.gmra.mxu1 %v2846_v56  ;;  %v3377_v60 = vld [vmem:[#allocation5 + $0x238] sm:$0xff]  ;;  %v3392_v56 = vld [vmem:[#allocation5 + $0x2b0] sm:$0xff] }
 0x7c7   : > { %3196 = vmatmul.mubr.f32.gmra.mxu0 %v2844_v42  ;;  %v3409_v33 = vld [vmem:[#allocation5 + $0x338] sm:$0xff]  ;;  %v3424_v42 = vld [vmem:[#allocation5 + $0x3b0] sm:$0xff] }
 0x7f2   : > { %v4448_v28 = vpop.f32.mrf.mxu0 }
 0x7f3   : > { %v4486_v2 = vpop.f32.mrf.mxu1 }
 0x7f4   : > { %v4449_v35 = vpop.f32.mrf.mxu0 }
 0x7f5   : > { %v4487_v9 = vpop.f32.mrf.mxu1  ;;  %v4450_v19 = vadd.f32 %v4449_v35, %v4448_v28  ;;  %v3376_v28 = vld [vmem:[#allocation5 + $0x230] sm:$0xff] }
 0x7f6   : > { %v4488_v38 = vadd.f32 %v4487_v9, %v4486_v2  ;;  %v3408_v35 = vld [vmem:[#allocation5 + $0x330] sm:$0xff]  ;;  %v3407_v2 = vld [vmem:[#allocation5 + $0x328] sm:$0xff]  ;;  %v3390_v9 = vld [vmem:[#allocation5 + $0x2a0] sm:$0xff] }
 0x7f8   : > { %v4451_v50 = vpop.f32.mrf.mxu0  ;;  %v3118_v3 = vadd.f32 %v4488_v38, %v4450_v19  ;;  %v3389_v19 = vld [vmem:[#allocation5 + $0x298] sm:$0xff] }
 0x7f9   : > { %v3421_v38 = vld [vmem:[#allocation5 + $0x398] sm:$0xff] }
 0x7fa   : > { %v4452_v51 = vpop.f32.mrf.mxu0 }
 0x7fb   : > { %v4453_v11 = vadd.f32 %v4452_v51, %v4451_v50  ;;  %v3391_v50 = vld [vmem:[#allocation5 + $0x2a8] sm:$0xff] }
 0x7fc   : > { %v3423_v51 = vld [vmem:[#allocation5 + $0x3a8] sm:$0xff] }
 0x808   : > { %v4489_v8 = vpop.f32.mrf.mxu1 }
 0x80a   : > { %v4490_v48 = vpop.f32.mrf.mxu1 }
 0x80b   : > { %v4491_v57 = vadd.f32 %v4490_v48, %v4489_v8  ;;  %v3422_v8 = vld [vmem:[#allocation5 + $0x3a0] sm:$0xff] }
 0x80c   : > { %v3374_v48 = vld [vmem:[#allocation5 + $0x220] sm:$0xff] }
 0x80d   : > { %v7928_v1 = vadd.f32 %v4491_v57, %v4453_v11  ;;  %v3375_v11 = vld [vmem:[#allocation5 + $0x228] sm:$0xff]  ;;  %v3406_v57 = vld [vmem:[#allocation5 + $0x320] sm:$0xff] }
 0x816   : > { %v4524_v17 = vpop.f32.mrf.mxu0 }
 0x817   : > { %v4562_v5 = vpop.f32.mrf.mxu1 }
 0x818   : > { %v4525_v16 = vpop.f32.mrf.mxu0 }
 0x819   : > { %v4526_v53 = vadd.f32 %v4525_v16, %v4524_v17  ;;  %v4563_v32 = vpop.f32.mrf.mxu1  ;;  %v3373_v17 = vld [vmem:[#allocation5 + $0x218] sm:$0xff]  ;;  %v3388_v16 = vld [vmem:[#allocation5 + $0x290] sm:$0xff] }
 0x81a   : > { %v4564_v25 = vadd.f32 %v4563_v32, %v4562_v5  ;;  %v3405_v5 = vld [vmem:[#allocation5 + $0x318] sm:$0xff]  ;;  %v3404_v32 = vld [vmem:[#allocation5 + $0x310] sm:$0xff] }
 0x81b   : > { %v3193_v40 = vadd.f32 %v4526_v53, %v3118_v3  ;;  %v3420_v3 = vld [vmem:[#allocation5 + $0x390] sm:$0xff] }
 0x81c   : > { %v3372_v53 = vld [vmem:[#allocation5 + $0x210] sm:$0xff] }
 0x81d   : > { %v7930_v27 = vadd.f32 %v4564_v25, %v3193_v40  ;;  %v3387_v25 = vld [vmem:[#allocation5 + $0x288] sm:$0xff] }
 0x81e   : > { %v3419_v40 = vld [vmem:[#allocation5 + $0x388] sm:$0xff] }
 0x81f   : > { %v3277_v55 = vrot.slane %v7930_v27, 1  ;;  %v3281_v21 = vrot.slane %v7930_v27, 3  ;;  %v3279_v62 = vrot.slane %v7930_v27, 2  ;;  %v3285_v36 = vrot.slane %v7930_v27, 5 }
 0x820   : > { %v3289_v23 = vrot.slane %v7930_v27, 7 }
 0x821   : > { %3627 = vmatprep.mubr.f32.mxu0 %v3277_v55  ;;  %3697 = vmatprep.mubr.f32.mxu1 %v3281_v21  ;;  %v3371_v55 = vld [vmem:[#allocation5 + $0x208] sm:$0xff] }
 0x822   : > { %3628 = vmatmul.mubr.f32.vlgmr.msra.gmra.mxu0 %v7930_v27  ;;  %3698 = vmatmul.mubr.f32.vlgmr.msra.gmra.mxu1 %v3279_v62  ;;  %v3403_v21 = vld [vmem:[#allocation5 + $0x308] sm:$0xff]  ;;  %v3386_v62 = vld [vmem:[#allocation5 + $0x280] sm:$0xff] }
 0x823   : > { %4639 = vmatpush3.msra.mxu0 %v3385_v15  ;;  %4674 = vmatpush3.msra.mxu1 %v3417_v37  ;;  %v3418_v15 = vld [vmem:[#allocation5 + $0x380] sm:$0xff] }
 0x824   : > { %4640 = vmatprep.subr.mxu0 %v3400_v43  ;;  %3767 = vmatprep.mubr.f32.mxu0 %v3285_v36  ;;  %v3370_v37 = vld [vmem:[#allocation5 + $0x200] sm:$0xff]  ;;  %v3283_v36 = vrot.slane %v7930_v27, 4 }
 0x825   : > { %4675 = vmatprep.subr.mxu1 %v3432_v20  ;;  %3837 = vmatprep.mubr.f32.mxu1 %v3289_v23  ;;  %v3402_v43 = vld [vmem:[#allocation5 + $0x300] sm:$0xff]  ;;  %v3287_v20 = vrot.slane %v7930_v27, 6  ;;  %v3465_v23 = vld [vmem:[#allocation5 + $0x4f8] sm:$0xff]  ;;  %v3447_v27 = vld [vmem:[#allocation5 + $0x468] sm:$0xff] }
 0x826   : > { %4641 = vmatpush3.msra.mxu0 %v3384_v46  ;;  %4676 = vmatpush3.msra.mxu1 %v3416_v4  ;;  %v3497_v46 = vld [vmem:[#allocation5 + $0x5f8] sm:$0xff] }
 0x827   : > { %4642 = vmatprep.subr.mxu0 %v3399_v61  ;;  %4677 = vmatprep.subr.mxu1 %v3431_v30  ;;  %v3449_v4 = vld [vmem:[#allocation5 + $0x478] sm:$0xff]  ;;  %v3464_v30 = vld [vmem:[#allocation5 + $0x4f0] sm:$0xff] }
 0x828   : > { %4643 = vmatpush3.msra.mxu0 %v3383_v41  ;;  %4678 = vmatpush3.msra.mxu1 %v3415_v13  ;;  %v3481_v61 = vld [vmem:[#allocation5 + $0x578] sm:$0xff]  ;;  %v3496_v41 = vld [vmem:[#allocation5 + $0x5f0] sm:$0xff] }
 0x829   : > { %4644 = vmatprep.subr.mxu0 %v3398_v34  ;;  %4679 = vmatprep.subr.mxu1 %v3430_v63  ;;  %v3448_v13 = vld [vmem:[#allocation5 + $0x470] sm:$0xff]  ;;  %v3463_v63 = vld [vmem:[#allocation5 + $0x4e8] sm:$0xff] }
 0x82a   : > { %4645 = vmatpush3.msra.mxu0 %v3382_v24  ;;  %4680 = vmatpush3.msra.mxu1 %v3414_v31  ;;  %v3480_v34 = vld [vmem:[#allocation5 + $0x570] sm:$0xff]  ;;  %v3495_v24 = vld [vmem:[#allocation5 + $0x5e8] sm:$0xff] }
 0x82b   : > { %4646 = vmatprep.subr.mxu0 %v3397_v14  ;;  %4681 = vmatprep.subr.mxu1 %v3429_v12  ;;  %v3479_v31 = vld [vmem:[#allocation5 + $0x568] sm:$0xff]  ;;  %v3462_v14 = vld [vmem:[#allocation5 + $0x4e0] sm:$0xff] }
 0x82c   : > { %4647 = vmatpush3.msra.mxu0 %v3381_v52  ;;  %4682 = vmatpush3.msra.mxu1 %v3413_v54  ;;  %v3494_v12 = vld [vmem:[#allocation5 + $0x5e0] sm:$0xff] }
 0x82d   : > { %4648 = vmatprep.subr.mxu0 %v3396_v0  ;;  %4683 = vmatprep.subr.mxu1 %v3428_v22  ;;  %v3446_v52 = vld [vmem:[#allocation5 + $0x460] sm:$0xff]  ;;  %v3461_v0 = vld [vmem:[#allocation5 + $0x4d8] sm:$0xff] }
 0x82e   : > { %4649 = vmatpush3.msra.mxu0 %v3380_v18  ;;  %4684 = vmatpush3.msra.mxu1 %v3412_v45  ;;  %v3478_v54 = vld [vmem:[#allocation5 + $0x560] sm:$0xff]  ;;  %v3493_v22 = vld [vmem:[#allocation5 + $0x5d8] sm:$0xff] }
 0x82f   : > { %4650 = vmatprep.subr.mxu0 %v3395_v6  ;;  %4685 = vmatprep.subr.mxu1 %v3427_v26  ;;  %v3445_v18 = vld [vmem:[#allocation5 + $0x458] sm:$0xff]  ;;  %v3460_v6 = vld [vmem:[#allocation5 + $0x4d0] sm:$0xff] }
 0x830   : > { %4651 = vmatpush3.msra.mxu0 %v3379_v7  ;;  %4686 = vmatpush3.msra.mxu1 %v3411_v59  ;;  %v3477_v45 = vld [vmem:[#allocation5 + $0x558] sm:$0xff]  ;;  %v3492_v26 = vld [vmem:[#allocation5 + $0x5d0] sm:$0xff] }
 0x831   : > { %4652 = vmatprep.subr.mxu0 %v3394_v10  ;;  %4687 = vmatprep.subr.mxu1 %v3426_v47  ;;  %v3444_v7 = vld [vmem:[#allocation5 + $0x450] sm:$0xff]  ;;  %v3459_v10 = vld [vmem:[#allocation5 + $0x4c8] sm:$0xff] }
 0x832   : > { %4653 = vmatpush3.msra.mxu0 %v3378_v58  ;;  %4688 = vmatpush3.msra.mxu1 %v3410_v39  ;;  %v3476_v59 = vld [vmem:[#allocation5 + $0x550] sm:$0xff]  ;;  %v3491_v47 = vld [vmem:[#allocation5 + $0x5c8] sm:$0xff] }
 0x833   : > { %4654 = vmatprep.subr.mxu0 %v3393_v49  ;;  %4689 = vmatprep.subr.mxu1 %v3425_v29  ;;  %v3443_v58 = vld [vmem:[#allocation5 + $0x448] sm:$0xff]  ;;  %v3458_v49 = vld [vmem:[#allocation5 + $0x4c0] sm:$0xff] }
 0x834   : > { %4655 = vmatpush3.msra.mxu0 %v3377_v60  ;;  %4690 = vmatpush3.msra.mxu1 %v3409_v33  ;;  %v3475_v39 = vld [vmem:[#allocation5 + $0x548] sm:$0xff]  ;;  %v3490_v29 = vld [vmem:[#allocation5 + $0x5c0] sm:$0xff] }
 0x835   : > { %4656 = vmatprep.subr.mxu0 %v3392_v56  ;;  %4691 = vmatprep.subr.mxu1 %v3424_v42  ;;  %v3442_v60 = vld [vmem:[#allocation5 + $0x440] sm:$0xff]  ;;  %v3457_v56 = vld [vmem:[#allocation5 + $0x4b8] sm:$0xff] }
 0x836   : > { %4657 = vmatpush3.msra.mxu0 %v3376_v28  ;;  %4692 = vmatpush3.msra.mxu1 %v3408_v35  ;;  %v3474_v33 = vld [vmem:[#allocation5 + $0x540] sm:$0xff]  ;;  %v3489_v42 = vld [vmem:[#allocation5 + $0x5b8] sm:$0xff] }
 0x837   : > { %4658 = vmatprep.subr.mxu0 %v3391_v50  ;;  %4693 = vmatprep.subr.mxu1 %v3423_v51  ;;  %v3441_v28 = vld [vmem:[#allocation5 + $0x438] sm:$0xff]  ;;  %v3456_v50 = vld [vmem:[#allocation5 + $0x4b0] sm:$0xff] }
 0x838   : > { %4659 = vmatpush3.msra.mxu0 %v3375_v11  ;;  %4694 = vmatpush3.msra.mxu1 %v3407_v2  ;;  %v3473_v35 = vld [vmem:[#allocation5 + $0x538] sm:$0xff]  ;;  %v3488_v51 = vld [vmem:[#allocation5 + $0x5b0] sm:$0xff] }
 0x839   : > { %4660 = vmatprep.subr.mxu0 %v3390_v9  ;;  %4695 = vmatprep.subr.mxu1 %v3422_v8  ;;  %v3440_v11 = vld [vmem:[#allocation5 + $0x430] sm:$0xff]  ;;  %v3455_v9 = vld [vmem:[#allocation5 + $0x4a8] sm:$0xff] }
 0x83a   : > { %4661 = vmatpush3.msra.mxu0 %v3374_v48  ;;  %4696 = vmatpush3.msra.mxu1 %v3406_v57  ;;  %v3472_v2 = vld [vmem:[#allocation5 + $0x530] sm:$0xff]  ;;  %v3487_v8 = vld [vmem:[#allocation5 + $0x5a8] sm:$0xff] }
 0x83b   : > { %4662 = vmatprep.subr.mxu0 %v3389_v19  ;;  %4697 = vmatprep.subr.mxu1 %v3421_v38  ;;  %v3439_v48 = vld [vmem:[#allocation5 + $0x428] sm:$0xff]  ;;  %v3454_v19 = vld [vmem:[#allocation5 + $0x4a0] sm:$0xff] }
 0x83c   : > { %4663 = vmatpush3.msra.mxu0 %v3373_v17  ;;  %4698 = vmatpush3.msra.mxu1 %v3405_v5  ;;  %v3471_v57 = vld [vmem:[#allocation5 + $0x528] sm:$0xff]  ;;  %v3486_v38 = vld [vmem:[#allocation5 + $0x5a0] sm:$0xff] }
 0x83d   : > { %4664 = vmatprep.subr.mxu0 %v3388_v16  ;;  %4699 = vmatprep.subr.mxu1 %v3420_v3  ;;  %v3438_v17 = vld [vmem:[#allocation5 + $0x420] sm:$0xff]  ;;  %v3453_v16 = vld [vmem:[#allocation5 + $0x498] sm:$0xff] }
 0x83e   : > { %4665 = vmatpush3.msra.mxu0 %v3372_v53  ;;  %4700 = vmatpush3.msra.mxu1 %v3404_v32  ;;  %v3470_v5 = vld [vmem:[#allocation5 + $0x520] sm:$0xff]  ;;  %v3485_v3 = vld [vmem:[#allocation5 + $0x598] sm:$0xff] }
 0x83f   : > { %4666 = vmatprep.subr.mxu0 %v3387_v25  ;;  %4701 = vmatprep.subr.mxu1 %v3419_v40  ;;  %v3437_v53 = vld [vmem:[#allocation5 + $0x418] sm:$0xff]  ;;  %v3452_v25 = vld [vmem:[#allocation5 + $0x490] sm:$0xff] }
 0x840   : > { %4667 = vmatpush3.msra.mxu0 %v3371_v55  ;;  %4702 = vmatpush3.msra.mxu1 %v3403_v21  ;;  %v3469_v32 = vld [vmem:[#allocation5 + $0x518] sm:$0xff]  ;;  %v3484_v40 = vld [vmem:[#allocation5 + $0x590] sm:$0xff] }
 0x841   : > { %4668 = vmatprep.subr.mxu0 %v3386_v62  ;;  %4703 = vmatprep.subr.mxu1 %v3418_v15  ;;  %v3436_v55 = vld [vmem:[#allocation5 + $0x410] sm:$0xff]  ;;  %v3451_v62 = vld [vmem:[#allocation5 + $0x488] sm:$0xff] }
 0x842   : > { %4669 = vmatpush3.msra.mxu0 %v3370_v37  ;;  %4704 = vmatpush3.msra.mxu1 %v3402_v43  ;;  %v3468_v21 = vld [vmem:[#allocation5 + $0x510] sm:$0xff]  ;;  %v3483_v15 = vld [vmem:[#allocation5 + $0x588] sm:$0xff] }
 0x843   : > { %3768 = vmatmul.mubr.f32.vlgmr.msra.gmra.mxu0 %v3283_v36  ;;  %3838 = vmatmul.mubr.f32.vlgmr.msra.gmra.mxu1 %v3287_v20  ;;  %v3435_v37 = vld [vmem:[#allocation5 + $0x408] sm:$0xff]  ;;  %v3450_v36 = vld [vmem:[#allocation5 + $0x480] sm:$0xff] }
 0x844   : > { %4708 = vmatprep.subr.mxu0 %v3465_v23  ;;  %4743 = vmatprep.subr.mxu1 %v3497_v46  ;;  %v3467_v43 = vld [vmem:[#allocation5 + $0x508] sm:$0xff]  ;;  %v3482_v20 = vld [vmem:[#allocation5 + $0x580] sm:$0xff] }
 0x845   : > { %4709 = vmatpush3.msra.mxu0 %v3449_v4  ;;  %4744 = vmatpush3.msra.mxu1 %v3481_v61  ;;  %v3434_v23 = vld [vmem:[#allocation5 + $0x400] sm:$0xff]  ;;  %v3529_v4 = vld [vmem:[#allocation5 + $0x6f8] sm:$0xff] }
 0x846   : > { %4710 = vmatprep.subr.mxu0 %v3464_v30  ;;  %4745 = vmatprep.subr.mxu1 %v3496_v41  ;;  %v3466_v46 = vld [vmem:[#allocation5 + $0x500] sm:$0xff]  ;;  %v3561_v61 = vld [vmem:[#allocation5 + $0x7f8] sm:$0xff] }
 0x847   : > { %4711 = vmatpush3.msra.mxu0 %v3448_v13  ;;  %4746 = vmatpush3.msra.mxu1 %v3480_v34 }
 0x848   : > { %4712 = vmatprep.subr.mxu0 %v3463_v63  ;;  %4747 = vmatprep.subr.mxu1 %v3495_v24 }
 0x849   : > { %4713 = vmatpush3.msra.mxu0 %v3447_v27  ;;  %4748 = vmatpush3.msra.mxu1 %v3479_v31 }
 0x84a   : > { %4714 = vmatprep.subr.mxu0 %v3462_v14  ;;  %4749 = vmatprep.subr.mxu1 %v3494_v12 }
 0x84b   : > { %4715 = vmatpush3.msra.mxu0 %v3446_v52  ;;  %4750 = vmatpush3.msra.mxu1 %v3478_v54  ;;  %v3513_v54 = vld [vmem:[#allocation5 + $0x678] sm:$0xff] }
 0x84c   : > { %4716 = vmatprep.subr.mxu0 %v3461_v0  ;;  %4751 = vmatprep.subr.mxu1 %v3493_v22  ;;  %v3545_v0 = vld [vmem:[#allocation5 + $0x778] sm:$0xff]  ;;  %v3528_v22 = vld [vmem:[#allocation5 + $0x6f0] sm:$0xff] }
 0x84d   : > { %4717 = vmatpush3.msra.mxu0 %v3445_v18  ;;  %4752 = vmatpush3.msra.mxu1 %v3477_v45  ;;  %v3560_v45 = vld [vmem:[#allocation5 + $0x7f0] sm:$0xff] }
 0x84e   : > { %4718 = vmatprep.subr.mxu0 %v3460_v6  ;;  %4753 = vmatprep.subr.mxu1 %v3492_v26  ;;  %v3512_v6 = vld [vmem:[#allocation5 + $0x670] sm:$0xff] }
 0x84f   : > { %4719 = vmatpush3.msra.mxu0 %v3444_v7  ;;  %4754 = vmatpush3.msra.mxu1 %v3476_v59  ;;  %v3544_v26 = vld [vmem:[#allocation5 + $0x770] sm:$0xff]  ;;  %v3527_v7 = vld [vmem:[#allocation5 + $0x6e8] sm:$0xff] }
 0x850   : > { %4720 = vmatprep.subr.mxu0 %v3459_v10  ;;  %4755 = vmatprep.subr.mxu1 %v3491_v47  ;;  %v3559_v59 = vld [vmem:[#allocation5 + $0x7e8] sm:$0xff] }
 0x851   : > { %4721 = vmatpush3.msra.mxu0 %v3443_v58  ;;  %4756 = vmatpush3.msra.mxu1 %v3475_v39  ;;  %v3511_v10 = vld [vmem:[#allocation5 + $0x668] sm:$0xff]  ;;  %v3526_v58 = vld [vmem:[#allocation5 + $0x6e0] sm:$0xff] }
 0x852   : > { %4722 = vmatprep.subr.mxu0 %v3458_v49  ;;  %4757 = vmatprep.subr.mxu1 %v3490_v29  ;;  %v3543_v47 = vld [vmem:[#allocation5 + $0x768] sm:$0xff]  ;;  %v3558_v39 = vld [vmem:[#allocation5 + $0x7e0] sm:$0xff] }
 0x853   : > { %4723 = vmatpush3.msra.mxu0 %v3442_v60  ;;  %4758 = vmatpush3.msra.mxu1 %v3474_v33  ;;  %v3510_v49 = vld [vmem:[#allocation5 + $0x660] sm:$0xff]  ;;  %v3525_v60 = vld [vmem:[#allocation5 + $0x6d8] sm:$0xff] }
 0x854   : > { %4724 = vmatprep.subr.mxu0 %v3457_v56  ;;  %4759 = vmatprep.subr.mxu1 %v3489_v42  ;;  %v3542_v29 = vld [vmem:[#allocation5 + $0x760] sm:$0xff]  ;;  %v3557_v33 = vld [vmem:[#allocation5 + $0x7d8] sm:$0xff] }
 0x855   : > { %4725 = vmatpush3.msra.mxu0 %v3441_v28  ;;  %4760 = vmatpush3.msra.mxu1 %v3473_v35  ;;  %v3509_v56 = vld [vmem:[#allocation5 + $0x658] sm:$0xff]  ;;  %v3524_v28 = vld [vmem:[#allocation5 + $0x6d0] sm:$0xff] }
 0x856   : > { %4726 = vmatprep.subr.mxu0 %v3456_v50  ;;  %4761 = vmatprep.subr.mxu1 %v3488_v51  ;;  %v3541_v42 = vld [vmem:[#allocation5 + $0x758] sm:$0xff]  ;;  %v3556_v35 = vld [vmem:[#allocation5 + $0x7d0] sm:$0xff] }
 0x857   : > { %4727 = vmatpush3.msra.mxu0 %v3440_v11  ;;  %4762 = vmatpush3.msra.mxu1 %v3472_v2  ;;  %v3508_v50 = vld [vmem:[#allocation5 + $0x650] sm:$0xff]  ;;  %v3523_v11 = vld [vmem:[#allocation5 + $0x6c8] sm:$0xff] }
 0x858   : > { %4728 = vmatprep.subr.mxu0 %v3455_v9  ;;  %4763 = vmatprep.subr.mxu1 %v3487_v8  ;;  %v3540_v51 = vld [vmem:[#allocation5 + $0x750] sm:$0xff]  ;;  %v3555_v2 = vld [vmem:[#allocation5 + $0x7c8] sm:$0xff] }
 0x859   : > { %4729 = vmatpush3.msra.mxu0 %v3439_v48  ;;  %4764 = vmatpush3.msra.mxu1 %v3471_v57  ;;  %v3507_v9 = vld [vmem:[#allocation5 + $0x648] sm:$0xff]  ;;  %v3522_v48 = vld [vmem:[#allocation5 + $0x6c0] sm:$0xff] }
 0x85a   : > { %4730 = vmatprep.subr.mxu0 %v3454_v19  ;;  %4765 = vmatprep.subr.mxu1 %v3486_v38  ;;  %v3539_v8 = vld [vmem:[#allocation5 + $0x748] sm:$0xff]  ;;  %v3554_v57 = vld [vmem:[#allocation5 + $0x7c0] sm:$0xff] }
 0x85b   : > { %4731 = vmatpush3.msra.mxu0 %v3438_v17  ;;  %4766 = vmatpush3.msra.mxu1 %v3470_v5  ;;  %v3506_v19 = vld [vmem:[#allocation5 + $0x640] sm:$0xff]  ;;  %v3521_v17 = vld [vmem:[#allocation5 + $0x6b8] sm:$0xff] }
 0x85c   : > { %4732 = vmatprep.subr.mxu0 %v3453_v16  ;;  %4767 = vmatprep.subr.mxu1 %v3485_v3  ;;  %v3538_v38 = vld [vmem:[#allocation5 + $0x740] sm:$0xff]  ;;  %v3553_v5 = vld [vmem:[#allocation5 + $0x7b8] sm:$0xff] }
 0x85d   : > { %4733 = vmatpush3.msra.mxu0 %v3437_v53  ;;  %4768 = vmatpush3.msra.mxu1 %v3469_v32  ;;  %v3505_v16 = vld [vmem:[#allocation5 + $0x638] sm:$0xff]  ;;  %v3520_v53 = vld [vmem:[#allocation5 + $0x6b0] sm:$0xff] }
 0x85e   : > { %4734 = vmatprep.subr.mxu0 %v3452_v25  ;;  %4769 = vmatprep.subr.mxu1 %v3484_v40  ;;  %v3537_v3 = vld [vmem:[#allocation5 + $0x738] sm:$0xff]  ;;  %v3552_v32 = vld [vmem:[#allocation5 + $0x7b0] sm:$0xff] }
 0x85f   : > { %4735 = vmatpush3.msra.mxu0 %v3436_v55  ;;  %4770 = vmatpush3.msra.mxu1 %v3468_v21  ;;  %v3504_v25 = vld [vmem:[#allocation5 + $0x630] sm:$0xff]  ;;  %v3519_v55 = vld [vmem:[#allocation5 + $0x6a8] sm:$0xff] }
 0x860   : > { %4736 = vmatprep.subr.mxu0 %v3451_v62  ;;  %4771 = vmatprep.subr.mxu1 %v3483_v15  ;;  %v3536_v40 = vld [vmem:[#allocation5 + $0x730] sm:$0xff]  ;;  %v3551_v21 = vld [vmem:[#allocation5 + $0x7a8] sm:$0xff] }
 0x861   : > { %4737 = vmatpush3.msra.mxu0 %v3435_v37  ;;  %4772 = vmatpush3.msra.mxu1 %v3467_v43  ;;  %v3503_v62 = vld [vmem:[#allocation5 + $0x628] sm:$0xff]  ;;  %v3518_v37 = vld [vmem:[#allocation5 + $0x6a0] sm:$0xff] }
 0x862   : > { %4738 = vmatprep.subr.mxu0 %v3450_v36  ;;  %4773 = vmatprep.subr.mxu1 %v3482_v20  ;;  %v3535_v15 = vld [vmem:[#allocation5 + $0x728] sm:$0xff]  ;;  %v3550_v43 = vld [vmem:[#allocation5 + $0x7a0] sm:$0xff] }
 0x863   : > { %4739 = vmatpush3.msra.mxu0 %v3434_v23  ;;  %4774 = vmatpush3.msra.mxu1 %v3466_v46  ;;  %v3502_v36 = vld [vmem:[#allocation5 + $0x620] sm:$0xff]  ;;  %v3517_v23 = vld [vmem:[#allocation5 + $0x698] sm:$0xff] }
 0x864   : > { %4778 = vmatprep.subr.mxu0 %v3529_v4  ;;  %4813 = vmatprep.subr.mxu1 %v3561_v61  ;;  %v3534_v20 = vld [vmem:[#allocation5 + $0x720] sm:$0xff]  ;;  %v3549_v46 = vld [vmem:[#allocation5 + $0x798] sm:$0xff] }
 0x865   : > { %v3501_v4 = vld [vmem:[#allocation5 + $0x618] sm:$0xff] }
 0x866   : > { %v3533_v61 = vld [vmem:[#allocation5 + $0x718] sm:$0xff] }
 0x886   : > { %v4565_v30 = vpop.f32.mrf.mxu1 }
 0x887   : > { %v4527_v41 = vpop.f32.mrf.mxu0 }
 0x888   : > { %v4566_v13 = vpop.f32.mrf.mxu1 }
 0x889   : > { %v4528_v34 = vpop.f32.mrf.mxu0  ;;  %v4567_v24 = vadd.f32 %v4566_v13, %v4565_v30  ;;  %v3516_v30 = vld [vmem:[#allocation5 + $0x690] sm:$0xff] }
 0x88a   : > { %v4529_v63 = vadd.f32 %v4528_v34, %v4527_v41  ;;  %v3548_v41 = vld [vmem:[#allocation5 + $0x790] sm:$0xff] }
 0x88b   : > { %v3500_v13 = vld [vmem:[#allocation5 + $0x610] sm:$0xff] }
 0x88c   : > { %v3198_v27 = vadd.f32 %v4529_v63, %v7928_v1  ;;  %v3532_v34 = vld [vmem:[#allocation5 + $0x710] sm:$0xff]  ;;  %v3515_v63 = vld [vmem:[#allocation5 + $0x688] sm:$0xff] }
 0x88e   : > { %v7941_v31 = vadd.f32 %v4567_v24, %v3198_v27  ;;  %v3547_v24 = vld [vmem:[#allocation5 + $0x788] sm:$0xff] }
 0x88f   : > { %v3499_v27 = vld [vmem:[#allocation5 + $0x608] sm:$0xff] }
 0x890   : > { %v3292_v14 = vrot.slane %v7941_v31, 1  ;;  %v3296_v12 = vrot.slane %v7941_v31, 3  ;;  %v3294_v52 = vrot.slane %v7941_v31, 2  ;;  %v3300_v18 = vrot.slane %v7941_v31, 5 }
 0x891   : > { %v3304_v1 = vrot.slane %v7941_v31, 7 }
 0x892   : > { %3907 = vmatprep.mubr.f32.mxu0 %v3292_v14  ;;  %3977 = vmatprep.mubr.f32.mxu1 %v3296_v12  ;;  %v3531_v14 = vld [vmem:[#allocation5 + $0x708] sm:$0xff]  ;;  %v3514_v12 = vld [vmem:[#allocation5 + $0x680] sm:$0xff] }
 0x893   : > { %3908 = vmatmul.mubr.f32.vlgmr.msra.gmra.mxu0 %v7941_v31  ;;  %3978 = vmatmul.mubr.f32.vlgmr.msra.gmra.mxu1 %v3294_v52  ;;  %v3546_v52 = vld [vmem:[#allocation5 + $0x780] sm:$0xff] }
 0x894   : > { %4779 = vmatpush3.msra.mxu0 %v3513_v54  ;;  %4814 = vmatpush3.msra.mxu1 %v3545_v0  ;;  %v3498_v54 = vld [vmem:[#allocation5 + $0x600] sm:$0xff] }
 0x895   : > { %4780 = vmatprep.subr.mxu0 %v3528_v22  ;;  %4047 = vmatprep.mubr.f32.mxu0 %v3300_v18  ;;  %v3530_v0 = vld [vmem:[#allocation5 + $0x700] sm:$0xff]  ;;  %v3298_v22 = vrot.slane %v7941_v31, 4  ;;  %v3302_v18 = vrot.slane %v7941_v31, 6  ;;  %v4137_v31 = vld [vmem:[%s8138_s8 + $0x68] sm:$0xff] }
 0x896   : > { %4815 = vmatprep.subr.mxu1 %v3560_v45  ;;  %4117 = vmatprep.mubr.f32.mxu1 %v3304_v1  ;;  %v4139_v45 = vld [vmem:[%s8138_s8 + $0x78] sm:$0xff]  ;;  %v4138_v1 = vld [vmem:[%s8138_s8 + $0x70] sm:$0xff] }
 0x897   : > { %4781 = vmatpush3.msra.mxu0 %v3512_v6  ;;  %4816 = vmatpush3.msra.mxu1 %v3544_v26  ;;  %v4136_v6 = vld [vmem:[%s8138_s8 + $0x60] sm:$0xff]  ;;  %v4135_v26 = vld [vmem:[%s8138_s8 + $0x58] sm:$0xff] }
 0x898   : > { %4782 = vmatprep.subr.mxu0 %v3527_v7  ;;  %4817 = vmatprep.subr.mxu1 %v3559_v59  ;;  %v4134_v7 = vld [vmem:[%s8138_s8 + $0x50] sm:$0xff]  ;;  %v4133_v59 = vld [vmem:[%s8138_s8 + $0x48] sm:$0xff] }
 0x899   : > { %4783 = vmatpush3.msra.mxu0 %v3511_v10  ;;  %4818 = vmatpush3.msra.mxu1 %v3543_v47  ;;  %v4132_v10 = vld [vmem:[%s8138_s8 + $0x40] sm:$0xff]  ;;  %v4131_v47 = vld [vmem:[%s8138_s8 + $0x38] sm:$0xff] }
 0x89a   : > { %4784 = vmatprep.subr.mxu0 %v3526_v58  ;;  %4819 = vmatprep.subr.mxu1 %v3558_v39  ;;  %v4130_v58 = vld [vmem:[%s8138_s8 + $0x30] sm:$0xff]  ;;  %v4129_v39 = vld [vmem:[%s8138_s8 + $0x28] sm:$0xff] }
 0x89b   : > { %4785 = vmatpush3.msra.mxu0 %v3510_v49  ;;  %4820 = vmatpush3.msra.mxu1 %v3542_v29  ;;  %v4128_v49 = vld [vmem:[%s8138_s8 + $0x20] sm:$0xff]  ;;  %v4127_v29 = vld [vmem:[%s8138_s8 + $0x18] sm:$0xff] }
 0x89c   : > { %4786 = vmatprep.subr.mxu0 %v3525_v60  ;;  %4821 = vmatprep.subr.mxu1 %v3557_v33  ;;  %v4126_v60 = vld [vmem:[%s8138_s8 + $0x10] sm:$0xff]  ;;  %v4125_v33 = vld [vmem:[%s8138_s8 + $0x8] sm:$0xff] }
 0x89d   : > { %4787 = vmatpush3.msra.mxu0 %v3509_v56  ;;  %4822 = vmatpush3.msra.mxu1 %v3541_v42  ;;  %v4124_v56 = vld [vmem:[%s8138_s8] sm:$0xff]  ;;  %v4227_v42 = vld [vmem:[%s8140_s10 + $0x78] sm:$0xff] }
 0x89e   : > { %4788 = vmatprep.subr.mxu0 %v3524_v28  ;;  %4823 = vmatprep.subr.mxu1 %v3556_v35  ;;  %v4226_v28 = vld [vmem:[%s8140_s10 + $0x70] sm:$0xff]  ;;  %v4225_v35 = vld [vmem:[%s8140_s10 + $0x68] sm:$0xff] }
 0x89f   : > { %4789 = vmatpush3.msra.mxu0 %v3508_v50  ;;  %4824 = vmatpush3.msra.mxu1 %v3540_v51  ;;  %v4224_v50 = vld [vmem:[%s8140_s10 + $0x60] sm:$0xff]  ;;  %v4223_v51 = vld [vmem:[%s8140_s10 + $0x58] sm:$0xff] }
 0x8a0   : > { %4790 = vmatprep.subr.mxu0 %v3523_v11  ;;  %4825 = vmatprep.subr.mxu1 %v3555_v2  ;;  %v4222_v11 = vld [vmem:[%s8140_s10 + $0x50] sm:$0xff]  ;;  %v4221_v2 = vld [vmem:[%s8140_s10 + $0x48] sm:$0xff] }
 0x8a1   : > { %4791 = vmatpush3.msra.mxu0 %v3507_v9  ;;  %4826 = vmatpush3.msra.mxu1 %v3539_v8  ;;  %v4220_v9 = vld [vmem:[%s8140_s10 + $0x40] sm:$0xff]  ;;  %v4219_v8 = vld [vmem:[%s8140_s10 + $0x38] sm:$0xff] }
 0x8a2   : > { %4792 = vmatprep.subr.mxu0 %v3522_v48  ;;  %4827 = vmatprep.subr.mxu1 %v3554_v57  ;;  %v4218_v48 = vld [vmem:[%s8140_s10 + $0x30] sm:$0xff]  ;;  %v4217_v57 = vld [vmem:[%s8140_s10 + $0x28] sm:$0xff] }
 0x8a3   : > { %4793 = vmatpush3.msra.mxu0 %v3506_v19  ;;  %4828 = vmatpush3.msra.mxu1 %v3538_v38  ;;  %v4216_v19 = vld [vmem:[%s8140_s10 + $0x20] sm:$0xff]  ;;  %v4215_v38 = vld [vmem:[%s8140_s10 + $0x18] sm:$0xff] }
 0x8a4   : > { %4794 = vmatprep.subr.mxu0 %v3521_v17  ;;  %4829 = vmatprep.subr.mxu1 %v3553_v5 }
 0x8a5   : > { %4795 = vmatpush3.msra.mxu0 %v3505_v16  ;;  %4830 = vmatpush3.msra.mxu1 %v3537_v3 }
 0x8a6   : > { %4796 = vmatprep.subr.mxu0 %v3520_v53  ;;  %4831 = vmatprep.subr.mxu1 %v3552_v32  ;;  %v3562_v32 = vld [vmem:[%s8137_s7] sm:$0x1] }
 0x8a7   : > { %4797 = vmatpush3.msra.mxu0 %v3504_v25  ;;  %4832 = vmatpush3.msra.mxu1 %v3536_v40 }
 0x8a8   : > { %4798 = vmatprep.subr.mxu0 %v3519_v55  ;;  %4833 = vmatprep.subr.mxu1 %v3551_v21 }
 0x8a9   : > { %4799 = vmatpush3.msra.mxu0 %v3503_v62  ;;  %4834 = vmatpush3.msra.mxu1 %v3535_v15 }
 0x8aa   : > { %4800 = vmatprep.subr.mxu0 %v3518_v37  ;;  %4835 = vmatprep.subr.mxu1 %v3550_v43 }
 0x8ab   : > { %4801 = vmatpush3.msra.mxu0 %v3502_v36  ;;  %4836 = vmatpush3.msra.mxu1 %v3534_v20 }
 0x8ac   : > { %4802 = vmatprep.subr.mxu0 %v3517_v23  ;;  %4837 = vmatprep.subr.mxu1 %v3549_v46 }
 0x8ad   : > { %4803 = vmatpush3.msra.mxu0 %v3501_v4  ;;  %4838 = vmatpush3.msra.mxu1 %v3533_v61 }
 0x8ae   : > { %4804 = vmatprep.subr.mxu0 %v3516_v30  ;;  %4839 = vmatprep.subr.mxu1 %v3548_v41 }
 0x8af   : > { %4805 = vmatpush3.msra.mxu0 %v3500_v13  ;;  %4840 = vmatpush3.msra.mxu1 %v3532_v34 }
 0x8b0   : > { %4806 = vmatprep.subr.mxu0 %v3515_v63  ;;  %4841 = vmatprep.subr.mxu1 %v3547_v24 }
 0x8b1   : > { %4807 = vmatpush3.msra.mxu0 %v3499_v27  ;;  %4842 = vmatpush3.msra.mxu1 %v3531_v14 }
 0x8b2   : > { %4808 = vmatprep.subr.mxu0 %v3514_v12  ;;  %4843 = vmatprep.subr.mxu1 %v3546_v52 }
 0x8b3   : > { %4809 = vmatpush3.msra.mxu0 %v3498_v54  ;;  %4844 = vmatpush3.msra.mxu1 %v3530_v0 }
 0x8b4   : > { %4048 = vmatmul.mubr.f32.vlgmr.msra.gmra.mxu0 %v3298_v22  ;;  %4118 = vmatmul.mubr.f32.vlgmr.msra.gmra.mxu1 %v3302_v18 }
 0x8b5   : > { %4882 = vmatprep.subr.mxu0 %v8279_v44  ;;  %4917 = vmatprep.subr.mxu1 %v8279_v44 }
 0x8b6   : > { %4883 = vmatpush3.msra.mxu0 %v4139_v45  ;;  %4914 = vmatprep.mubr.msk.f32.mxu0 %vm5290_vm6, %v8279_v44  ;;  %v4214_v45 = vld [vmem:[%s8140_s10 + $0x10] sm:$0xff] }
 0x8b7   : > { %4884 = vmatprep.subr.mxu0 %v8279_v44  ;;  %4949 = vmatprep.mubr.msk.f32.mxu1 %vm5290_vm6, %v8279_v44 }
 0x8b8   : > { %4885 = vmatpush3.msra.mxu0 %v4138_v1  ;;  %4918 = vmatpush3.msra.mxu1 %v4227_v42  ;;  %v4213_v1 = vld [vmem:[%s8140_s10 + $0x8] sm:$0xff] }
 0x8b9   : > { %4886 = vmatprep.subr.mxu0 %v8279_v44  ;;  %4919 = vmatprep.subr.mxu1 %v8279_v44 }
 0x8ba   : > { %4887 = vmatpush3.msra.mxu0 %v4137_v31  ;;  %4920 = vmatpush3.msra.mxu1 %v4226_v28  ;;  %v4212_v31 = vld [vmem:[%s8140_s10] sm:$0xff] }
 0x8bb   : > { %4888 = vmatprep.subr.mxu0 %v8279_v44  ;;  %4921 = vmatprep.subr.mxu1 %v8279_v44 }
 0x8bc   : > { %4889 = vmatpush3.msra.mxu0 %v4136_v6  ;;  %4922 = vmatpush3.msra.mxu1 %v4225_v35  ;;  %v4140_v6 = vld [vmem:[%s8139_s9] sm:$0x1] }
 0x8bd   : > { %4890 = vmatprep.subr.mxu0 %v8279_v44  ;;  %4923 = vmatprep.subr.mxu1 %v8279_v44 }
 0x8be   : > { %4891 = vmatpush3.msra.mxu0 %v4135_v26  ;;  %4924 = vmatpush3.msra.mxu1 %v4224_v50 }
 0x8bf   : > { %4892 = vmatprep.subr.mxu0 %v8279_v44  ;;  %4925 = vmatprep.subr.mxu1 %v8279_v44 }
 0x8c0   : > { %4893 = vmatpush3.msra.mxu0 %v4134_v7  ;;  %4926 = vmatpush3.msra.mxu1 %v4223_v51 }
 0x8c1   : > { %4894 = vmatprep.subr.mxu0 %v8279_v44  ;;  %4927 = vmatprep.subr.mxu1 %v8279_v44 }
 0x8c2   : > { %4895 = vmatpush3.msra.mxu0 %v4133_v59  ;;  %4928 = vmatpush3.msra.mxu1 %v4222_v11 }
 0x8c3   : > { %4896 = vmatprep.subr.mxu0 %v8279_v44  ;;  %4929 = vmatprep.subr.mxu1 %v8279_v44 }
 0x8c4   : > { %4897 = vmatpush3.msra.mxu0 %v4132_v10  ;;  %4930 = vmatpush3.msra.mxu1 %v4221_v2 }
 0x8c5   : > { %4898 = vmatprep.subr.mxu0 %v8279_v44  ;;  %4931 = vmatprep.subr.mxu1 %v8279_v44 }
 0x8c6   : > { %4899 = vmatpush3.msra.mxu0 %v4131_v47  ;;  %4932 = vmatpush3.msra.mxu1 %v4220_v9  ;;  %v4228_v47 = vld [vmem:[%s8141_s11] sm:$0x1] }
 0x8c7   : > { %4900 = vmatprep.subr.mxu0 %v8279_v44  ;;  %4933 = vmatprep.subr.mxu1 %v8279_v44 }
 0x8c8   : > { %4901 = vmatpush3.msra.mxu0 %v4130_v58  ;;  %4934 = vmatpush3.msra.mxu1 %v4219_v8 }
 0x8c9   : > { %4902 = vmatprep.subr.mxu0 %v8279_v44  ;;  %4935 = vmatprep.subr.mxu1 %v8279_v44 }
 0x8ca   : > { %4903 = vmatpush3.msra.mxu0 %v4129_v39  ;;  %4936 = vmatpush3.msra.mxu1 %v4218_v48 }
 0x8cb   : > { %4904 = vmatprep.subr.mxu0 %v8279_v44  ;;  %4937 = vmatprep.subr.mxu1 %v8279_v44 }
 0x8cc   : > { %4905 = vmatpush3.msra.mxu0 %v4128_v49  ;;  %4938 = vmatpush3.msra.mxu1 %v4217_v57 }
 0x8cd   : > { %4906 = vmatprep.subr.mxu0 %v8279_v44  ;;  %4939 = vmatprep.subr.mxu1 %v8279_v44 }
 0x8ce   : > { %4907 = vmatpush3.msra.mxu0 %v4127_v29  ;;  %4940 = vmatpush3.msra.mxu1 %v4216_v19 }
 0x8cf   : > { %4908 = vmatprep.subr.mxu0 %v8279_v44  ;;  %4941 = vmatprep.subr.mxu1 %v8279_v44 }
 0x8d0   : > { %4909 = vmatpush3.msra.mxu0 %v4126_v60  ;;  %4942 = vmatpush3.msra.mxu1 %v4215_v38 }
 0x8d1   : > { %4910 = vmatprep.subr.mxu0 %v8279_v44  ;;  %4943 = vmatprep.subr.mxu1 %v8279_v44 }
 0x8d2   : > { %4911 = vmatpush3.msra.mxu0 %v4125_v33  ;;  %4944 = vmatpush3.msra.mxu1 %v4214_v45 }
 0x8d3   : > { %4912 = vmatprep.subr.mxu0 %v8279_v44  ;;  %4945 = vmatprep.subr.mxu1 %v8279_v44 }
 0x8d4   : > { %4913 = vmatpush3.msra.mxu0 %v4124_v56  ;;  %4946 = vmatpush3.msra.mxu1 %v4213_v1 }
 0x8d5   : > { %4947 = vmatprep.subr.mxu1 %v8279_v44 }
 0x8d6   : > { %4948 = vmatpush3.msra.mxu1 %v4212_v31 }
 0x8e2   : > { %v4600_v17 = vpop.f32.mrf.mxu0  ;;  %v4635_v16 = vpop.f32.mrf.mxu1 }
 0x8e4   : > { %v4601_v5 = vpop.f32.mrf.mxu0  ;;  %v4636_v25 = vpop.f32.mrf.mxu1 }
 0x8e5   : > { %v4602_v53 = vadd.f32 %v4601_v5, %v4600_v17  ;;  %v4637_v15 = vadd.f32 %v4636_v25, %v4635_v16 }
 0x8e7   : > { %v3630_v55 = vadd.f32 %v4602_v53, %v3562_v32 }
 0x8e9   : > { %v3700_v43 = vadd.f32 %v4637_v15, %v3630_v55 }
 0x903   : > { %v4670_v3 = vpop.f32.mrf.mxu0  ;;  %v4705_v21 = vpop.f32.mrf.mxu1 }
 0x905   : > { %v4671_v40 = vpop.f32.mrf.mxu0  ;;  %v4706_v36 = vpop.f32.mrf.mxu1 }
 0x906   : > { %v4672_v37 = vadd.f32 %v4671_v40, %v4670_v3  ;;  %v4707_v4 = vadd.f32 %v4706_v36, %v4705_v21 }
 0x908   : > { %v3770_v23 = vadd.f32 %v4672_v37, %v3700_v43 }
 0x90a   : > { %v3840_v30 = vadd.f32 %v4707_v4, %v3770_v23 }
 0x953   : > { %v4740_v62 = vpop.f32.mrf.mxu0  ;;  %v4775_v46 = vpop.f32.mrf.mxu1 }
 0x955   : > { %v4741_v20 = vpop.f32.mrf.mxu0  ;;  %v4776_v41 = vpop.f32.mrf.mxu1 }
 0x956   : > { %v4742_v61 = vadd.f32 %v4741_v20, %v4740_v62  ;;  %v4777_v24 = vadd.f32 %v4776_v41, %v4775_v46 }
 0x958   : > { %v3910_v13 = vadd.f32 %v4742_v61, %v3840_v30 }
 0x95a   : > { %v3980_v12 = vadd.f32 %v4777_v24, %v3910_v13 }
 0x974   : > { %v4810_v34 = vpop.f32.mrf.mxu0  ;;  %v4845_v63 = vpop.f32.mrf.mxu1 }
 0x976   : > { %v4811_v27 = vpop.f32.mrf.mxu0  ;;  %v4846_v14 = vpop.f32.mrf.mxu1 }
 0x977   : > { %v4812_v52 = vadd.f32 %v4811_v27, %v4810_v34  ;;  %v4847_v0 = vadd.f32 %v4846_v14, %v4845_v63 }
 0x979   : > { %v4050_v54 = vadd.f32 %v4812_v52, %v3980_v12 }
 0x97b   : > { %v4120_v22 = vadd.f32 %v4847_v0, %v4050_v54 }
 0x97d   : > { %v4123_v18 = vmax.f32 %v4120_v22, 0.0 }
 0x97f   : > { %4915 = vmatmul.mubr.f32.vlgmr.msra.gmra.mxu0 %v4123_v18 }
 0xa3f   : > { %v4207_v26 = vpop.f32.mrf.mxu0 }
 0xa40   : > { %v4208_v7 = vadd.f32 %v4207_v26, %v4140_v6 }
 0xa41   : > { %v4916_v59 = vpop.f32.mrf.mxu0 }
 0xa42   : > { %v4211_v10 = vmax.f32 %v4208_v7, 0.0 }
 0xa44   : > { %4950 = vmatmul.mubr.f32.vlgmr.msra.gmra.mxu1 %v4211_v10 }
 0xb04   : > { %v4295_v44 = vpop.f32.mrf.mxu1 }
 0xb05   : > { %v4296_v58 = vadd.f32 %v4295_v44, %v4228_v47 }
 0xb06   : > { %v4951_v39 = vpop.f32.mrf.mxu1 }
 0xb07   : > { %4299 = vst [vmem:[%s435_s19] sm:$0x1] %v4296_v58 }
 0xb08   : > { %5205 = shalt.err (!%p5202_p3)
}
 0xb09   : > { %s5206_s26 = scalar_lea.hbm %s8095_s29, 16  ;;  %s5210_s17 = scalar_lea.hbm %s8142_s12, 32 }
 0xb0a   : > { %p5207_p2 = scmp.ne.s32.totalorder %s8095_s29, %s5206_s26  ;;  %p5211_p7 = scmp.lt.s32.totalorder %s8095_s29, %s8142_s12 }
 0xb0b   : > { %p5212_p6 = scmp.lt.s32.totalorder %s5210_s17, %s5206_s26 }
 0xb0c   : > { %p5208_p4 = pnand %p5207_p2, %p5395_p5 }
 0xb0d   : > { %p5213_p9 = por %p5212_p6, %p5211_p7 }
 0xb0e   : > { %p5209_p13 = pneg %p5208_p4 }
 0xb10   : > { %p5214_p10 = pnand %p5213_p9, %p5209_p13 }
 0xb12   : > { %5217 = shalt.err (!%p5214_p10)
}
 0xb13   : > { %4960 = dma.vmem_to_hbm [thread:$0]  (%p5395_p5), %s4314_s16, 16, %s8095_s29, %s4301_s23  }
 0xb14 PF: > { %p4977_p12 = scmp.ge.s32.totalorder %s5260_s24, 2  ;;  %s4325_s30 = sand.u32 1, %s5248_s21  }
 0xb15   : > { %p8282_p8 = scmp.ne.s32.totalorder %s8198_s14, 0  ;;  %s4326_s25 = scalar_lea.sflag [#allocation4], %s4325_s30 }
 0xb17   : > { %p4970_p11 = pnand %p4977_p12, %p8282_p8 }
 0xb19   : > { %p4971_p0 = pneg %p4970_p11 }
 0xb1b   : > { %5243 = dma.done.wait (%p4971_p0), %s4326_s25, 16  }
 0xb1c   : > { %5245 = vsyncadd (%p4971_p0), %s4326_s25, 4294967280  ;;  %s8283_s15 = sld [smem:[#allocation11_spill]]  ;;  %p24_p1 = scmp.ge.s32.totalorder %s5382_s27, 4  }
 0xb1d   : > { %s8284_s23 = sld [smem:[#allocation12_spill]]  ;;  %s8285_s21 = smov %s5252_s22 }
 0xb1e   : > { %s8287_s24 = smov %s5382_s27  ;;  %26 = sbr.rel (!%p24_p1) target bundleno = 5 (0x5), region = 112 }
 0xb22   : > { %s8286_s22 = smov %s8283_s15 }
 0xb23   :  { %4330 = vsyncpa [#allocation3], 1 }
 0xb24   :  { %4332 = vsyncpa [#allocation3 + $0x1], 1 }
 0xb25   :  { %4333 = vsyncpa [#allocation6], 1 }
 0xb26   :  { %4334 = vsyncpa [#allocation4], 1 }
 0xb27   :  { %4336 = vsyncpa [#allocation4 + $0x1], 1 }

</bundles_post_ra>
